<compile_context>
chip_gen: v5e
topology: v5e:2x2
jax: 0.10.0
libtpu: 0.0.40
codegen_flags: <defaults>
</compile_context>

<pallas_src>
import functools

import jax
import jax.numpy as jnp
from jax import lax
from jax.experimental import pallas as pl
from jax.experimental.pallas import tpu as pltpu


def _recip(x):
    """Reciprocal on the EUP + one Newton step (off the VALU divide path)."""
    r = pl.reciprocal(x, approx=True)
    return r * (2.0 - x * r)


def _ekta_seq_kernel(x_seq_ref, gram_ref, aexp_ref, acol_ref, ew_ref,
                     scorev_ref, h_init_ref, wih_ref, bih_ref, whh_ref,
                     bhh_ref, wsch_ref,
                     scores_ref, h_ref, hs_ref,
                     *, T, K, P, H, topk):
    """Whole T-step recurrence in one kernel invocation (grid=(1,))."""
    NEG = jnp.float32(-1e30)
    f32 = jnp.float32

    # History buffer: rows [t*K, t*K+K) hold h_t (hidden AFTER step t).
    hs_ref[...] = jnp.zeros_like(hs_ref)

    lane_i = lax.broadcasted_iota(jnp.int32, (1, T), 1)
    lane_f = lane_i.astype(f32)

    # Loop-invariant weights, loaded once and kept in vregs / VMEM.
    wih = wih_ref[...]          # (P+1, 3H)
    bih = bih_ref[...]          # (1, 3H)
    whh = whh_ref[...]          # (H, 3H)
    bhh = bhh_ref[...]          # (1, 3H)
    wsch = wsch_ref[...]        # (1, H)   score weights for the hkp part
    ew = ew_ref[...]            # (T, T*K) expands w_{t'} over the K concept rows

    def step(t, carry):
        h, scores_row = carry                                        # (K,H), (1,T)

        # ---- exercise attention: beta_{t'} = v_{t'} . v_t (precomputed Gram row) ----
        beta = gram_ref[pl.ds(t, 1), :]                              # (1, T)
        beta = jnp.where(lane_i < t, beta, NEG)                      # causal mask

        # top-k (unsorted) selection, statically unrolled; permutation-invariant
        # w.r.t. the following softmax-weighted sum, so it matches torch.topk.
        work = beta
        sel = jnp.zeros_like(beta)
        for _ in range(topk):
            m = jnp.max(work, axis=1, keepdims=True)
            is_max = work == m
            first = jnp.min(jnp.where(is_max, lane_f, f32(T)),
                            axis=1, keepdims=True)
            pick = lane_f == first
            work = jnp.where(pick, NEG, work)
            sel = jnp.where(pick, 1.0, sel)

        masked = jnp.where(sel > 0.0, beta, NEG)
        mmax = jnp.max(masked, axis=1, keepdims=True)
        we = jnp.exp(masked - mmax)
        w = we * _recip(jnp.sum(we, axis=1, keepdims=True))          # (1, T)

        # ---- hkp = alpha @ (sum_{t'} w_{t'} h_{t'}) as one lane-dense matmul ----
        w_exp = jnp.dot(w, ew, preferred_element_type=f32)           # (1, T*K)
        coeff = w_exp * aexp_ref[pl.ds(t, 1), :]                     # (1, T*K)
        hkp = jnp.dot(coeff, hs_ref[...],
                      preferred_element_type=f32)                    # (1, H)
        # (hs is zero for rows >= t, and all-zero at t==0 -> hidden=None hkp term
        #  is folded into scorev host-side.)

        # hkp-part of the score; v-part + bias (+ t==0 term) precomputed host-side.
        sc_h = jnp.sum(hkp * wsch, axis=1, keepdims=True)            # (1, 1)
        scores_row = scores_row + jnp.where(lane_i == t, sc_h, 0.0)  # (1, T)

        # ---- per-concept GRU, input xk = alpha * [v, s] ----
        kstart = pl.multiple_of(t * K, K)
        alpha_col = acol_ref[pl.ds(kstart, K), :]                    # (K, 1)
        x_row = x_seq_ref[pl.ds(t, 1), :]                            # (1, P+1)
        gi_x = jnp.dot(x_row, wih, preferred_element_type=f32)       # (1, 3H)
        gi = alpha_col * gi_x + bih                                  # (K, 3H)
        gh = jnp.dot(h, whh, preferred_element_type=f32) + bhh       # (K, 3H)
        r = jax.nn.sigmoid(gi[:, 0:H] + gh[:, 0:H])
        z = jax.nn.sigmoid(gi[:, H:2 * H] + gh[:, H:2 * H])
        n = jnp.tanh(gi[:, 2 * H:3 * H] + r * gh[:, 2 * H:3 * H])
        h_new = (1.0 - z) * n + z * h                                # (K, H)

        hs_ref[pl.ds(kstart, K), :] = h_new
        return h_new, scores_row

    h0 = h_init_ref[...]
    scores0 = jnp.zeros((1, T), f32)
    h_fin, scores_row = lax.fori_loop(0, T, step, (h0, scores0), unroll=True)

    h_ref[...] = h_fin
    scores_ref[...] = scores_row + scorev_ref[...]


def ekta_attn_seq_forward(v_seq, kn_seq, s_seq, params, k):
    """Run the whole T-step EKTAttnSeqModel recurrence in one fused pallas_call.

    Returns (scores (T,), h_final (K, H), hs_history (T, K, H))."""
    T, P = v_seq.shape
    K, H = params["h_initial"].shape
    f32 = jnp.float32

    v_seq = v_seq.astype(f32)
    kn_seq = kn_seq.astype(f32)
    s_seq = s_seq.astype(f32)
    km = params["knowledge_memory"].astype(f32)            # (K, E)
    h_init = params["h_initial"].astype(f32)               # (K, H)
    w_ih = params["W_ih"].astype(f32)                      # (3H, P+1)
    b_ih = params["b_ih"].astype(f32)
    w_hh = params["W_hh"].astype(f32)                      # (3H, H)
    b_hh = params["b_hh"].astype(f32)
    w_sc = params["W_sc"].astype(f32).reshape(-1)          # (P+H,)
    b_sc = params["b_sc"].astype(f32).reshape(())

    # ---- loop-invariant precompute, hoisted out of the recurrence (runs once) ----
    x_seq = jnp.concatenate([v_seq, s_seq.reshape(T, 1)], axis=1)        # (T, P+1)
    gram = v_seq @ v_seq.T                                               # (T, T)
    alpha_seq = jax.nn.softmax(kn_seq @ km.T, axis=-1)                   # (T, K)
    alpha_exp = jnp.tile(alpha_seq, (1, T))                              # (T, T*K)
    alpha_col = alpha_seq.reshape(T * K, 1)                              # (T*K, 1)
    ew = (jnp.arange(T * K)[None, :] // K
          == jnp.arange(T)[:, None]).astype(f32)                         # (T, T*K)
    # v-part of the score (+ bias); t==0 hidden=None hkp term folded in.
    score_v = v_seq @ w_sc[0:P] + b_sc                                   # (T,)
    hkp0 = alpha_seq[0] @ h_init                                         # (H,)
    score_v = score_v.at[0].add(hkp0 @ w_sc[P:P + H])
    score_v = score_v.reshape(1, T)                                      # lane-major
    wsc_h = w_sc[P:P + H].reshape(1, H)
    wih_t = w_ih.T                                                       # (P+1, 3H)
    whh_t = w_hh.T                                                       # (H, 3H)
    bih = b_ih.reshape(1, 3 * H)
    bhh = b_hh.reshape(1, 3 * H)

    kernel = functools.partial(_ekta_seq_kernel, T=T, K=K, P=P, H=H, topk=int(k))

    def full(shape):  # whole array resident in VMEM, loaded once
        n = len(shape)
        return pl.BlockSpec(shape, lambda i: (0,) * n)

    scores, h_fin, hs_hist = pl.pallas_call(
        kernel,
        grid=(1,),
        in_specs=[full(x_seq.shape), full(gram.shape), full(alpha_exp.shape),
                  full(alpha_col.shape), full(ew.shape), full(score_v.shape),
                  full(h_init.shape), full(wih_t.shape), full(bih.shape),
                  full(whh_t.shape), full(bhh.shape), full(wsc_h.shape)],
        out_specs=(full((1, T)), full((K, H)), full((T * K, H))),
        out_shape=(jax.ShapeDtypeStruct((1, T), f32),
                   jax.ShapeDtypeStruct((K, H), f32),
                   jax.ShapeDtypeStruct((T * K, H), f32)),
        compiler_params=pltpu.CompilerParams(dimension_semantics=("arbitrary",)),
    )(x_seq, gram, alpha_exp, alpha_col, ew, score_v, h_init,
      wih_t, bih, whh_t, bhh, wsc_h)
    return scores.reshape(T), h_fin, hs_hist.reshape(T, K, H)


def ekta_attn_seq_reference(v_seq, kn_seq, s_seq, params, k):
    """Pure-JAX reference mirroring EKTAttnSeqModel.forward + EKTA hidden bookkeeping."""
    T, P = v_seq.shape
    K, H = params["h_initial"].shape
    h = params["h_initial"]
    vs = None
    hs_mat = None
    scores, hs_list = [], []
    for t in range(T):
        v, kn, s = v_seq[t], kn_seq[t], s_seq[t]
        if t == 0:
            attn_h = params["h_initial"].reshape(-1)
        else:
            beta = vs @ v
            vals, idx = jax.lax.top_k(beta, min(t, int(k)))
            w = jax.nn.softmax(vals)
            attn_h = w @ hs_mat[idx]
        alpha = jax.nn.softmax(params["knowledge_memory"] @ kn)
        hkp = alpha @ attn_h.reshape(K, H)
        pred = jnp.concatenate([v, hkp])
        score = pred @ params["W_sc"].reshape(-1) + params["b_sc"].reshape(())
        x = jnp.concatenate([v, s.reshape(1)])
        xk = alpha[:, None] * x[None, :]
        gi = xk @ params["W_ih"].T + params["b_ih"]
        gh = h @ params["W_hh"].T + params["b_hh"]
        r = jax.nn.sigmoid(gi[:, :H] + gh[:, :H])
        z = jax.nn.sigmoid(gi[:, H:2 * H] + gh[:, H:2 * H])
        n = jnp.tanh(gi[:, 2 * H:] + r * gh[:, 2 * H:])
        h = (1.0 - z) * n + z * h
        scores.append(score)
        hs_list.append(h)
        vrow = v.reshape(1, -1)
        hrow = h.reshape(1, -1)
        vs = vrow if vs is None else jnp.concatenate([vs, vrow], axis=0)
        hs_mat = hrow if hs_mat is None else jnp.concatenate([hs_mat, hrow], axis=0)
    return jnp.stack(scores), h, jnp.stack(hs_list)


if __name__ == "__main__":
    P, E, K, H = 32, 32, 16, 32        # topic_size, know_emb_size, know_length, seq_hidden
    T, k = 8, 4                        # sequence length, top-k

    key = jax.random.PRNGKey(0)
    ks = jax.random.split(key, 12)
    sc = 1.0 / (H ** 0.5)
    params = {
        "knowledge_memory": jax.random.uniform(ks[0], (K, E), jnp.float32, -1.0, 1.0),
        "h_initial": jax.random.uniform(ks[1], (K, H), jnp.float32, -1.0, 1.0),
        "W_ih": jax.random.uniform(ks[2], (3 * H, P + 1), jnp.float32, -sc, sc),
        "b_ih": jax.random.uniform(ks[3], (3 * H,), jnp.float32, -sc, sc),
        "W_hh": jax.random.uniform(ks[4], (3 * H, H), jnp.float32, -sc, sc),
        "b_hh": jax.random.uniform(ks[5], (3 * H,), jnp.float32, -sc, sc),
        "W_sc": jax.random.uniform(ks[6], (1, P + H), jnp.float32, -0.1, 0.1),
        "b_sc": jax.random.uniform(ks[7], (1,), jnp.float32, -0.1, 0.1),
    }
    v_seq = jax.random.normal(ks[8], (T, P), jnp.float32)       # topic embeddings (upstream)
    kn_seq = jax.random.normal(ks[9], (T, E), jnp.float32)      # knowledge embeddings (upstream)
    s_seq = (jax.random.uniform(ks[10], (T,)) > 0.5).astype(jnp.float32)   # correctness

    fwd = jax.jit(functools.partial(ekta_attn_seq_forward, k=k))
    scores, h_fin, hs_hist = fwd(v_seq, kn_seq, s_seq, params)
    jax.block_until_ready((scores, h_fin, hs_hist))

    scores_r, h_r, hs_r = ekta_attn_seq_reference(v_seq, kn_seq, s_seq, params, k)
    assert jnp.allclose(scores, scores_r, atol=2e-3, rtol=2e-3), (scores, scores_r)
    assert jnp.allclose(h_fin, h_r, atol=2e-3, rtol=2e-3)
    assert jnp.allclose(hs_hist, hs_r, atol=2e-3, rtol=2e-3)

    print("KERNEL_OK")
</pallas_src>

<mosaic_0001>
module attributes {stable_mosaic.version = 11 : i64} {
  func.func @_ekta_seq_kernel(%arg0: i32, %arg1: memref<8x33xf32, #tpu.memory_space<vmem>>, %arg2: memref<8x8xf32, #tpu.memory_space<vmem>>, %arg3: memref<8x128xf32, #tpu.memory_space<vmem>>, %arg4: memref<128x1xf32, #tpu.memory_space<vmem>>, %arg5: memref<8x128xf32, #tpu.memory_space<vmem>>, %arg6: memref<1x8xf32, #tpu.memory_space<vmem>>, %arg7: memref<16x32xf32, #tpu.memory_space<vmem>>, %arg8: memref<33x96xf32, #tpu.memory_space<vmem>>, %arg9: memref<1x96xf32, #tpu.memory_space<vmem>>, %arg10: memref<32x96xf32, #tpu.memory_space<vmem>>, %arg11: memref<1x96xf32, #tpu.memory_space<vmem>>, %arg12: memref<1x32xf32, #tpu.memory_space<vmem>>, %arg13: memref<1x8xf32, #tpu.memory_space<vmem>>, %arg14: memref<16x32xf32, #tpu.memory_space<vmem>>, %arg15: memref<128x32xf32, #tpu.memory_space<vmem>>) attributes {dimension_semantics = [#tpu.dimension_semantics<arbitrary>], iteration_bounds = array<i64: 1>, scalar_prefetch = 0 : i64, scratch_operands = 0 : i64, tpu.core_type = #tpu.core_type<tc>, window_params = [{pipeline_mode = #tpu.pipeline_mode<synchronous>, transform_indices = @transform_0, window_bounds = array<i64: 8, 33>}, {pipeline_mode = #tpu.pipeline_mode<synchronous>, transform_indices = @transform_1, window_bounds = array<i64: 8, 8>}, {pipeline_mode = #tpu.pipeline_mode<synchronous>, transform_indices = @transform_2, window_bounds = array<i64: 8, 128>}, {pipeline_mode = #tpu.pipeline_mode<synchronous>, transform_indices = @transform_3, window_bounds = array<i64: 128, 1>}, {pipeline_mode = #tpu.pipeline_mode<synchronous>, transform_indices = @transform_4, window_bounds = array<i64: 8, 128>}, {pipeline_mode = #tpu.pipeline_mode<synchronous>, transform_indices = @transform_5, window_bounds = array<i64: 1, 8>}, {pipeline_mode = #tpu.pipeline_mode<synchronous>, transform_indices = @transform_6, window_bounds = array<i64: 16, 32>}, {pipeline_mode = #tpu.pipeline_mode<synchronous>, transform_indices = @transform_7, window_bounds = array<i64: 33, 96>}, {pipeline_mode = #tpu.pipeline_mode<synchronous>, transform_indices = @transform_8, window_bounds = array<i64: 1, 96>}, {pipeline_mode = #tpu.pipeline_mode<synchronous>, transform_indices = @transform_9, window_bounds = array<i64: 32, 96>}, {pipeline_mode = #tpu.pipeline_mode<synchronous>, transform_indices = @transform_10, window_bounds = array<i64: 1, 96>}, {pipeline_mode = #tpu.pipeline_mode<synchronous>, transform_indices = @transform_11, window_bounds = array<i64: 1, 32>}, {pipeline_mode = #tpu.pipeline_mode<synchronous>, transform_indices = @transform_12, window_bounds = array<i64: 1, 8>}, {pipeline_mode = #tpu.pipeline_mode<synchronous>, transform_indices = @transform_13, window_bounds = array<i64: 16, 32>}, {pipeline_mode = #tpu.pipeline_mode<synchronous>, transform_indices = @transform_14, window_bounds = array<i64: 128, 32>}]} {
    %cst = arith.constant 0.000000e+00 : f32
    %0 = vector.broadcast %cst : f32 to vector<128x32xf32>
    %c0 = arith.constant 0 : index
    %c0_0 = arith.constant 0 : index
    %1 = vector.load %arg15[%c0, %c0_0] : memref<128x32xf32, #tpu.memory_space<vmem>>, vector<128x32xf32>
    tpu.vector_store %arg15[%c0, %c0_0], %0 {strides = array<i32>} : memref<128x32xf32, #tpu.memory_space<vmem>>, vector<128x32xf32>,
    %2 = tpu.iota {dimensions = array<i32: 1>} : vector<1x8xi32>
    %3 = arith.sitofp %2 : vector<1x8xi32> to vector<1x8xf32>
    %c0_1 = arith.constant 0 : index
    %c0_2 = arith.constant 0 : index
    %4 = vector.load %arg8[%c0_1, %c0_2] : memref<33x96xf32, #tpu.memory_space<vmem>>, vector<33x96xf32>
    %c0_3 = arith.constant 0 : index
    %c0_4 = arith.constant 0 : index
    %5 = vector.load %arg9[%c0_3, %c0_4] : memref<1x96xf32, #tpu.memory_space<vmem>>, vector<1x96xf32>
    %c0_5 = arith.constant 0 : index
    %c0_6 = arith.constant 0 : index
    %6 = vector.load %arg10[%c0_5, %c0_6] : memref<32x96xf32, #tpu.memory_space<vmem>>, vector<32x96xf32>
    %c0_7 = arith.constant 0 : index
    %c0_8 = arith.constant 0 : index
    %7 = vector.load %arg11[%c0_7, %c0_8] : memref<1x96xf32, #tpu.memory_space<vmem>>, vector<1x96xf32>
    %c0_9 = arith.constant 0 : index
    %c0_10 = arith.constant 0 : index
    %8 = vector.load %arg12[%c0_9, %c0_10] : memref<1x32xf32, #tpu.memory_space<vmem>>, vector<1x32xf32>
    %c0_11 = arith.constant 0 : index
    %c0_12 = arith.constant 0 : index
    %9 = vector.load %arg5[%c0_11, %c0_12] : memref<8x128xf32, #tpu.memory_space<vmem>>, vector<8x128xf32>
    %c0_13 = arith.constant 0 : index
    %c0_14 = arith.constant 0 : index
    %10 = vector.load %arg7[%c0_13, %c0_14] : memref<16x32xf32, #tpu.memory_space<vmem>>, vector<16x32xf32>
    %cst_15 = arith.constant 0.000000e+00 : f32
    %11 = vector.broadcast %cst_15 : f32 to vector<1x8xf32>
    %cst_16 = arith.constant -1.000000e+30 : f32
    %c0_i32 = arith.constant 0 : i32
    %12 = arith.index_cast %c0_i32 : i32 to index
    %c0_17 = arith.constant 0 : index
    %13 = vector.load %arg2[%12, %c0_17] : memref<8x8xf32, #tpu.memory_space<vmem>>, vector<1x8xf32>
    %14 = vector.broadcast %c0_i32 : i32 to vector<1x8xi32>
    %15 = arith.cmpi slt, %2, %14 : vector<1x8xi32>
    %16 = vector.broadcast %cst_16 : f32 to vector<1x8xf32>
    %17 = arith.select %15, %13, %16 : vector<1x8xi1>, vector<1x8xf32>
    %cst_18 = arith.constant 0.000000e+00 : f32
    %18 = vector.broadcast %cst_18 : f32 to vector<1x8xf32>
    %cst_19 = arith.constant dense<0xFF800000> : vector<1xf32>
    %19 = vector.multi_reduction <maximumf>, %17, %cst_19 [1] : vector<1x8xf32> to vector<1xf32>
    %20 = vector.shape_cast %19 : vector<1xf32> to vector<1x1xf32>
    %21 = vector.broadcast %20 : vector<1x1xf32> to vector<1x8xf32>
    %22 = arith.cmpf oeq, %17, %21 : vector<1x8xf32>
    %cst_20 = arith.constant 8.000000e+00 : f32
    %23 = vector.broadcast %cst_20 : f32 to vector<1x8xf32>
    %24 = arith.select %22, %3, %23 : vector<1x8xi1>, vector<1x8xf32>
    %cst_21 = arith.constant dense<0x7F800000> : vector<1xf32>
    %25 = vector.multi_reduction <minimumf>, %24, %cst_21 [1] : vector<1x8xf32> to vector<1xf32>
    %26 = vector.shape_cast %25 : vector<1xf32> to vector<1x1xf32>
    %27 = vector.broadcast %26 : vector<1x1xf32> to vector<1x8xf32>
    %28 = arith.cmpf oeq, %3, %27 : vector<1x8xf32>
    %29 = vector.broadcast %cst_16 : f32 to vector<1x8xf32>
    %30 = arith.select %28, %29, %17 : vector<1x8xi1>, vector<1x8xf32>
    %cst_22 = arith.constant 1.000000e+00 : f32
    %31 = vector.broadcast %cst_22 : f32 to vector<1x8xf32>
    %32 = arith.select %28, %31, %18 : vector<1x8xi1>, vector<1x8xf32>
    %cst_23 = arith.constant dense<0xFF800000> : vector<1xf32>
    %33 = vector.multi_reduction <maximumf>, %30, %cst_23 [1] : vector<1x8xf32> to vector<1xf32>
    %34 = vector.shape_cast %33 : vector<1xf32> to vector<1x1xf32>
    %35 = vector.broadcast %34 : vector<1x1xf32> to vector<1x8xf32>
    %36 = arith.cmpf oeq, %30, %35 : vector<1x8xf32>
    %cst_24 = arith.constant 8.000000e+00 : f32
    %37 = vector.broadcast %cst_24 : f32 to vector<1x8xf32>
    %38 = arith.select %36, %3, %37 : vector<1x8xi1>, vector<1x8xf32>
    %cst_25 = arith.constant dense<0x7F800000> : vector<1xf32>
    %39 = vector.multi_reduction <minimumf>, %38, %cst_25 [1] : vector<1x8xf32> to vector<1xf32>
    %40 = vector.shape_cast %39 : vector<1xf32> to vector<1x1xf32>
    %41 = vector.broadcast %40 : vector<1x1xf32> to vector<1x8xf32>
    %42 = arith.cmpf oeq, %3, %41 : vector<1x8xf32>
    %43 = vector.broadcast %cst_16 : f32 to vector<1x8xf32>
    %44 = arith.select %42, %43, %30 : vector<1x8xi1>, vector<1x8xf32>
    %cst_26 = arith.constant 1.000000e+00 : f32
    %45 = vector.broadcast %cst_26 : f32 to vector<1x8xf32>
    %46 = arith.select %42, %45, %32 : vector<1x8xi1>, vector<1x8xf32>
    %cst_27 = arith.constant dense<0xFF800000> : vector<1xf32>
    %47 = vector.multi_reduction <maximumf>, %44, %cst_27 [1] : vector<1x8xf32> to vector<1xf32>
    %48 = vector.shape_cast %47 : vector<1xf32> to vector<1x1xf32>
    %49 = vector.broadcast %48 : vector<1x1xf32> to vector<1x8xf32>
    %50 = arith.cmpf oeq, %44, %49 : vector<1x8xf32>
    %cst_28 = arith.constant 8.000000e+00 : f32
    %51 = vector.broadcast %cst_28 : f32 to vector<1x8xf32>
    %52 = arith.select %50, %3, %51 : vector<1x8xi1>, vector<1x8xf32>
    %cst_29 = arith.constant dense<0x7F800000> : vector<1xf32>
    %53 = vector.multi_reduction <minimumf>, %52, %cst_29 [1] : vector<1x8xf32> to vector<1xf32>
    %54 = vector.shape_cast %53 : vector<1xf32> to vector<1x1xf32>
    %55 = vector.broadcast %54 : vector<1x1xf32> to vector<1x8xf32>
    %56 = arith.cmpf oeq, %3, %55 : vector<1x8xf32>
    %57 = vector.broadcast %cst_16 : f32 to vector<1x8xf32>
    %58 = arith.select %56, %57, %44 : vector<1x8xi1>, vector<1x8xf32>
    %cst_30 = arith.constant 1.000000e+00 : f32
    %59 = vector.broadcast %cst_30 : f32 to vector<1x8xf32>
    %60 = arith.select %56, %59, %46 : vector<1x8xi1>, vector<1x8xf32>
    %cst_31 = arith.constant dense<0xFF800000> : vector<1xf32>
    %61 = vector.multi_reduction <maximumf>, %58, %cst_31 [1] : vector<1x8xf32> to vector<1xf32>
    %62 = vector.shape_cast %61 : vector<1xf32> to vector<1x1xf32>
    %63 = vector.broadcast %62 : vector<1x1xf32> to vector<1x8xf32>
    %64 = arith.cmpf oeq, %58, %63 : vector<1x8xf32>
    %cst_32 = arith.constant 8.000000e+00 : f32
    %65 = vector.broadcast %cst_32 : f32 to vector<1x8xf32>
    %66 = arith.select %64, %3, %65 : vector<1x8xi1>, vector<1x8xf32>
    %cst_33 = arith.constant dense<0x7F800000> : vector<1xf32>
    %67 = vector.multi_reduction <minimumf>, %66, %cst_33 [1] : vector<1x8xf32> to vector<1xf32>
    %68 = vector.shape_cast %67 : vector<1xf32> to vector<1x1xf32>
    %69 = vector.broadcast %68 : vector<1x1xf32> to vector<1x8xf32>
    %70 = arith.cmpf oeq, %3, %69 : vector<1x8xf32>
    %cst_34 = arith.constant 1.000000e+00 : f32
    %71 = vector.broadcast %cst_34 : f32 to vector<1x8xf32>
    %72 = arith.select %70, %71, %60 : vector<1x8xi1>, vector<1x8xf32>
    %cst_35 = arith.constant 0.000000e+00 : f32
    %73 = vector.broadcast %cst_35 : f32 to vector<1x8xf32>
    %74 = arith.cmpf ogt, %72, %73 : vector<1x8xf32>
    %75 = vector.broadcast %cst_16 : f32 to vector<1x8xf32>
    %76 = arith.select %74, %17, %75 : vector<1x8xi1>, vector<1x8xf32>
    %cst_36 = arith.constant dense<0xFF800000> : vector<1xf32>
    %77 = vector.multi_reduction <maximumf>, %76, %cst_36 [1] : vector<1x8xf32> to vector<1xf32>
    %78 = vector.shape_cast %77 : vector<1xf32> to vector<1x1xf32>
    %79 = vector.broadcast %78 : vector<1x1xf32> to vector<1x8xf32>
    %80 = arith.subf %76, %79 : vector<1x8xf32>
    %81 = math.exp %80 : vector<1x8xf32>
    %cst_37 = arith.constant dense<0.000000e+00> : vector<1xf32>
    %82 = vector.multi_reduction <add>, %81, %cst_37 [1] : vector<1x8xf32> to vector<1xf32>
    %83 = vector.shape_cast %82 : vector<1xf32> to vector<1x1xf32>
    %84 = tpu.reciprocal %83 {approx = true} : vector<1x1xf32> -> vector<1x1xf32>
    %85 = arith.mulf %83, %84 : vector<1x1xf32>
    %cst_38 = arith.constant 2.000000e+00 : f32
    %86 = vector.broadcast %cst_38 : f32 to vector<1x1xf32>
    %87 = arith.subf %86, %85 : vector<1x1xf32>
    %88 = arith.mulf %84, %87 : vector<1x1xf32>
    %89 = vector.broadcast %88 : vector<1x1xf32> to vector<1x8xf32>
    %90 = arith.mulf %81, %89 : vector<1x8xf32>
    %cst_39 = arith.constant dense<0.000000e+00> : vector<1x128xf32>
    %91 = tpu.matmul %90, %9, %cst_39 {dimension_numbers = #tpu.dot_dimension_numbers<[1], [0], [0], [1], [0, 0, 1, 1], [], []>} : vector<1x8xf32>, vector<8x128xf32>, vector<1x128xf32> -> vector<1x128xf32>
    %92 = arith.index_cast %c0_i32 : i32 to index
    %c0_40 = arith.constant 0 : index
    %93 = vector.load %arg3[%92, %c0_40] : memref<8x128xf32, #tpu.memory_space<vmem>>, vector<1x128xf32>
    %94 = arith.mulf %91, %93 : vector<1x128xf32>
    %c0_41 = arith.constant 0 : index
    %c0_42 = arith.constant 0 : index
    %95 = vector.load %arg15[%c0_41, %c0_42] : memref<128x32xf32, #tpu.memory_space<vmem>>, vector<128x32xf32>
    %cst_43 = arith.constant dense<0.000000e+00> : vector<1x32xf32>
    %96 = tpu.matmul %94, %95, %cst_43 {dimension_numbers = #tpu.dot_dimension_numbers<[1], [0], [0], [1], [0, 0, 1, 1], [], []>} : vector<1x128xf32>, vector<128x32xf32>, vector<1x32xf32> -> vector<1x32xf32>
    %97 = arith.mulf %96, %8 : vector<1x32xf32>
    %cst_44 = arith.constant dense<0.000000e+00> : vector<1xf32>
    %98 = vector.multi_reduction <add>, %97, %cst_44 [1] : vector<1x32xf32> to vector<1xf32>
    %99 = vector.shape_cast %98 : vector<1xf32> to vector<1x1xf32>
    %100 = vector.broadcast %c0_i32 : i32 to vector<1x8xi32>
    %101 = arith.cmpi eq, %2, %100 : vector<1x8xi32>
    %cst_45 = arith.constant 0.000000e+00 : f32
    %102 = vector.shape_cast %99 : vector<1x1xf32> to vector<1x1xf32>
    %103 = vector.broadcast %102 : vector<1x1xf32> to vector<1x8xf32>
    %104 = vector.broadcast %cst_45 : f32 to vector<1x8xf32>
    %105 = arith.select %101, %103, %104 : vector<1x8xi1>, vector<1x8xf32>
    %106 = arith.addf %11, %105 : vector<1x8xf32>
    %c16_i32 = arith.constant 16 : i32
    %107 = arith.muli %c0_i32, %c16_i32 : i32
    %108 = tpu.assume_multiple %107, 16 : i32
    %109 = arith.index_cast %108 : i32 to index
    %c0_46 = arith.constant 0 : index
    %110 = vector.load %arg4[%109, %c0_46] : memref<128x1xf32, #tpu.memory_space<vmem>>, vector<16x1xf32>
    %111 = arith.index_cast %c0_i32 : i32 to index
    %c0_47 = arith.constant 0 : index
    %112 = vector.load %arg1[%111, %c0_47] : memref<8x33xf32, #tpu.memory_space<vmem>>, vector<1x33xf32>
    %cst_48 = arith.constant dense<0.000000e+00> : vector<1x96xf32>
    %113 = tpu.matmul %112, %4, %cst_48 {dimension_numbers = #tpu.dot_dimension_numbers<[1], [0], [0], [1], [0, 0, 1, 1], [], []>} : vector<1x33xf32>, vector<33x96xf32>, vector<1x96xf32> -> vector<1x96xf32>
    %114 = vector.broadcast %110 : vector<16x1xf32> to vector<16x96xf32>
    %115 = vector.broadcast %113 : vector<1x96xf32> to vector<16x96xf32>
    %116 = arith.mulf %114, %115 : vector<16x96xf32>
    %117 = vector.broadcast %5 : vector<1x96xf32> to vector<16x96xf32>
    %118 = arith.addf %116, %117 : vector<16x96xf32>
    %cst_49 = arith.constant dense<0.000000e+00> : vector<16x96xf32>
    %119 = tpu.matmul %10, %6, %cst_49 {dimension_numbers = #tpu.dot_dimension_numbers<[1], [0], [0], [1], [0, 0, 1, 1], [], []>} : vector<16x32xf32>, vector<32x96xf32>, vector<16x96xf32> -> vector<16x96xf32>
    %120 = vector.broadcast %7 : vector<1x96xf32> to vector<16x96xf32>
    %121 = arith.addf %119, %120 : vector<16x96xf32>
    %122 = vector.extract_strided_slice %118 {offsets = [0, 0], sizes = [16, 32], strides = [1, 1]} : vector<16x96xf32> to vector<16x32xf32>
    %123 = vector.extract_strided_slice %121 {offsets = [0, 0], sizes = [16, 32], strides = [1, 1]} : vector<16x96xf32> to vector<16x32xf32>
    %124 = arith.addf %122, %123 : vector<16x32xf32>
    %125 = arith.negf %124 : vector<16x32xf32>
    %126 = math.exp %125 : vector<16x32xf32>
    %cst_50 = arith.constant 1.000000e+00 : f32
    %127 = vector.broadcast %cst_50 : f32 to vector<16x32xf32>
    %128 = arith.addf %127, %126 : vector<16x32xf32>
    %129 = arith.divf %127, %128 : vector<16x32xf32>
    %130 = vector.extract_strided_slice %118 {offsets = [0, 32], sizes = [16, 32], strides = [1, 1]} : vector<16x96xf32> to vector<16x32xf32>
    %131 = vector.extract_strided_slice %121 {offsets = [0, 32], sizes = [16, 32], strides = [1, 1]} : vector<16x96xf32> to vector<16x32xf32>
    %132 = arith.addf %130, %131 : vector<16x32xf32>
    %133 = arith.negf %132 : vector<16x32xf32>
    %134 = math.exp %133 : vector<16x32xf32>
    %cst_51 = arith.constant 1.000000e+00 : f32
    %135 = vector.broadcast %cst_51 : f32 to vector<16x32xf32>
    %136 = arith.addf %135, %134 : vector<16x32xf32>
    %137 = arith.divf %135, %136 : vector<16x32xf32>
    %138 = vector.extract_strided_slice %118 {offsets = [0, 64], sizes = [16, 32], strides = [1, 1]} : vector<16x96xf32> to vector<16x32xf32>
    %139 = vector.extract_strided_slice %121 {offsets = [0, 64], sizes = [16, 32], strides = [1, 1]} : vector<16x96xf32> to vector<16x32xf32>
    %140 = arith.mulf %129, %139 : vector<16x32xf32>
    %141 = arith.addf %138, %140 : vector<16x32xf32>
    %142 = math.tanh %141 : vector<16x32xf32>
    %cst_52 = arith.constant 1.000000e+00 : f32
    %143 = vector.broadcast %cst_52 : f32 to vector<16x32xf32>
    %144 = arith.subf %143, %137 : vector<16x32xf32>
    %145 = arith.mulf %144, %142 : vector<16x32xf32>
    %146 = arith.mulf %137, %10 : vector<16x32xf32>
    %147 = arith.addf %145, %146 : vector<16x32xf32>
    %148 = arith.index_cast %108 : i32 to index
    %c0_53 = arith.constant 0 : index
    %149 = vector.load %arg15[%148, %c0_53] : memref<128x32xf32, #tpu.memory_space<vmem>>, vector<16x32xf32>
    tpu.vector_store %arg15[%148, %c0_53], %147 {strides = array<i32>} : memref<128x32xf32, #tpu.memory_space<vmem>>, vector<16x32xf32>,
    %c1_i32 = arith.constant 1 : i32
    %150 = arith.index_cast %c1_i32 : i32 to index
    %c0_54 = arith.constant 0 : index
    %151 = vector.load %arg2[%150, %c0_54] : memref<8x8xf32, #tpu.memory_space<vmem>>, vector<1x8xf32>
    %152 = vector.broadcast %c1_i32 : i32 to vector<1x8xi32>
    %153 = arith.cmpi slt, %2, %152 : vector<1x8xi32>
    %154 = vector.broadcast %cst_16 : f32 to vector<1x8xf32>
    %155 = arith.select %153, %151, %154 : vector<1x8xi1>, vector<1x8xf32>
    %cst_55 = arith.constant 0.000000e+00 : f32
    %156 = vector.broadcast %cst_55 : f32 to vector<1x8xf32>
    %cst_56 = arith.constant dense<0xFF800000> : vector<1xf32>
    %157 = vector.multi_reduction <maximumf>, %155, %cst_56 [1] : vector<1x8xf32> to vector<1xf32>
    %158 = vector.shape_cast %157 : vector<1xf32> to vector<1x1xf32>
    %159 = vector.broadcast %158 : vector<1x1xf32> to vector<1x8xf32>
    %160 = arith.cmpf oeq, %155, %159 : vector<1x8xf32>
    %cst_57 = arith.constant 8.000000e+00 : f32
    %161 = vector.broadcast %cst_57 : f32 to vector<1x8xf32>
    %162 = arith.select %160, %3, %161 : vector<1x8xi1>, vector<1x8xf32>
    %cst_58 = arith.constant dense<0x7F800000> : vector<1xf32>
    %163 = vector.multi_reduction <minimumf>, %162, %cst_58 [1] : vector<1x8xf32> to vector<1xf32>
    %164 = vector.shape_cast %163 : vector<1xf32> to vector<1x1xf32>
    %165 = vector.broadcast %164 : vector<1x1xf32> to vector<1x8xf32>
    %166 = arith.cmpf oeq, %3, %165 : vector<1x8xf32>
    %167 = vector.broadcast %cst_16 : f32 to vector<1x8xf32>
    %168 = arith.select %166, %167, %155 : vector<1x8xi1>, vector<1x8xf32>
    %cst_59 = arith.constant 1.000000e+00 : f32
    %169 = vector.broadcast %cst_59 : f32 to vector<1x8xf32>
    %170 = arith.select %166, %169, %156 : vector<1x8xi1>, vector<1x8xf32>
    %cst_60 = arith.constant dense<0xFF800000> : vector<1xf32>
    %171 = vector.multi_reduction <maximumf>, %168, %cst_60 [1] : vector<1x8xf32> to vector<1xf32>
    %172 = vector.shape_cast %171 : vector<1xf32> to vector<1x1xf32>
    %173 = vector.broadcast %172 : vector<1x1xf32> to vector<1x8xf32>
    %174 = arith.cmpf oeq, %168, %173 : vector<1x8xf32>
    %cst_61 = arith.constant 8.000000e+00 : f32
    %175 = vector.broadcast %cst_61 : f32 to vector<1x8xf32>
    %176 = arith.select %174, %3, %175 : vector<1x8xi1>, vector<1x8xf32>
    %cst_62 = arith.constant dense<0x7F800000> : vector<1xf32>
    %177 = vector.multi_reduction <minimumf>, %176, %cst_62 [1] : vector<1x8xf32> to vector<1xf32>
    %178 = vector.shape_cast %177 : vector<1xf32> to vector<1x1xf32>
    %179 = vector.broadcast %178 : vector<1x1xf32> to vector<1x8xf32>
    %180 = arith.cmpf oeq, %3, %179 : vector<1x8xf32>
    %181 = vector.broadcast %cst_16 : f32 to vector<1x8xf32>
    %182 = arith.select %180, %181, %168 : vector<1x8xi1>, vector<1x8xf32>
    %cst_63 = arith.constant 1.000000e+00 : f32
    %183 = vector.broadcast %cst_63 : f32 to vector<1x8xf32>
    %184 = arith.select %180, %183, %170 : vector<1x8xi1>, vector<1x8xf32>
    %cst_64 = arith.constant dense<0xFF800000> : vector<1xf32>
    %185 = vector.multi_reduction <maximumf>, %182, %cst_64 [1] : vector<1x8xf32> to vector<1xf32>
    %186 = vector.shape_cast %185 : vector<1xf32> to vector<1x1xf32>
    %187 = vector.broadcast %186 : vector<1x1xf32> to vector<1x8xf32>
    %188 = arith.cmpf oeq, %182, %187 : vector<1x8xf32>
    %cst_65 = arith.constant 8.000000e+00 : f32
    %189 = vector.broadcast %cst_65 : f32 to vector<1x8xf32>
    %190 = arith.select %188, %3, %189 : vector<1x8xi1>, vector<1x8xf32>
    %cst_66 = arith.constant dense<0x7F800000> : vector<1xf32>
    %191 = vector.multi_reduction <minimumf>, %190, %cst_66 [1] : vector<1x8xf32> to vector<1xf32>
    %192 = vector.shape_cast %191 : vector<1xf32> to vector<1x1xf32>
    %193 = vector.broadcast %192 : vector<1x1xf32> to vector<1x8xf32>
    %194 = arith.cmpf oeq, %3, %193 : vector<1x8xf32>
    %195 = vector.broadcast %cst_16 : f32 to vector<1x8xf32>
    %196 = arith.select %194, %195, %182 : vector<1x8xi1>, vector<1x8xf32>
    %cst_67 = arith.constant 1.000000e+00 : f32
    %197 = vector.broadcast %cst_67 : f32 to vector<1x8xf32>
    %198 = arith.select %194, %197, %184 : vector<1x8xi1>, vector<1x8xf32>
    %cst_68 = arith.constant dense<0xFF800000> : vector<1xf32>
    %199 = vector.multi_reduction <maximumf>, %196, %cst_68 [1] : vector<1x8xf32> to vector<1xf32>
    %200 = vector.shape_cast %199 : vector<1xf32> to vector<1x1xf32>
    %201 = vector.broadcast %200 : vector<1x1xf32> to vector<1x8xf32>
    %202 = arith.cmpf oeq, %196, %201 : vector<1x8xf32>
    %cst_69 = arith.constant 8.000000e+00 : f32
    %203 = vector.broadcast %cst_69 : f32 to vector<1x8xf32>
    %204 = arith.select %202, %3, %203 : vector<1x8xi1>, vector<1x8xf32>
    %cst_70 = arith.constant dense<0x7F800000> : vector<1xf32>
    %205 = vector.multi_reduction <minimumf>, %204, %cst_70 [1] : vector<1x8xf32> to vector<1xf32>
    %206 = vector.shape_cast %205 : vector<1xf32> to vector<1x1xf32>
    %207 = vector.broadcast %206 : vector<1x1xf32> to vector<1x8xf32>
    %208 = arith.cmpf oeq, %3, %207 : vector<1x8xf32>
    %cst_71 = arith.constant 1.000000e+00 : f32
    %209 = vector.broadcast %cst_71 : f32 to vector<1x8xf32>
    %210 = arith.select %208, %209, %198 : vector<1x8xi1>, vector<1x8xf32>
    %cst_72 = arith.constant 0.000000e+00 : f32
    %211 = vector.broadcast %cst_72 : f32 to vector<1x8xf32>
    %212 = arith.cmpf ogt, %210, %211 : vector<1x8xf32>
    %213 = vector.broadcast %cst_16 : f32 to vector<1x8xf32>
    %214 = arith.select %212, %155, %213 : vector<1x8xi1>, vector<1x8xf32>
    %cst_73 = arith.constant dense<0xFF800000> : vector<1xf32>
    %215 = vector.multi_reduction <maximumf>, %214, %cst_73 [1] : vector<1x8xf32> to vector<1xf32>
    %216 = vector.shape_cast %215 : vector<1xf32> to vector<1x1xf32>
    %217 = vector.broadcast %216 : vector<1x1xf32> to vector<1x8xf32>
    %218 = arith.subf %214, %217 : vector<1x8xf32>
    %219 = math.exp %218 : vector<1x8xf32>
    %cst_74 = arith.constant dense<0.000000e+00> : vector<1xf32>
    %220 = vector.multi_reduction <add>, %219, %cst_74 [1] : vector<1x8xf32> to vector<1xf32>
    %221 = vector.shape_cast %220 : vector<1xf32> to vector<1x1xf32>
    %222 = tpu.reciprocal %221 {approx = true} : vector<1x1xf32> -> vector<1x1xf32>
    %223 = arith.mulf %221, %222 : vector<1x1xf32>
    %cst_75 = arith.constant 2.000000e+00 : f32
    %224 = vector.broadcast %cst_75 : f32 to vector<1x1xf32>
    %225 = arith.subf %224, %223 : vector<1x1xf32>
    %226 = arith.mulf %222, %225 : vector<1x1xf32>
    %227 = vector.broadcast %226 : vector<1x1xf32> to vector<1x8xf32>
    %228 = arith.mulf %219, %227 : vector<1x8xf32>
    %cst_76 = arith.constant dense<0.000000e+00> : vector<1x128xf32>
    %229 = tpu.matmul %228, %9, %cst_76 {dimension_numbers = #tpu.dot_dimension_numbers<[1], [0], [0], [1], [0, 0, 1, 1], [], []>} : vector<1x8xf32>, vector<8x128xf32>, vector<1x128xf32> -> vector<1x128xf32>
    %230 = arith.index_cast %c1_i32 : i32 to index
    %c0_77 = arith.constant 0 : index
    %231 = vector.load %arg3[%230, %c0_77] : memref<8x128xf32, #tpu.memory_space<vmem>>, vector<1x128xf32>
    %232 = arith.mulf %229, %231 : vector<1x128xf32>
    %c0_78 = arith.constant 0 : index
    %c0_79 = arith.constant 0 : index
    %233 = vector.load %arg15[%c0_78, %c0_79] : memref<128x32xf32, #tpu.memory_space<vmem>>, vector<128x32xf32>
    %cst_80 = arith.constant dense<0.000000e+00> : vector<1x32xf32>
    %234 = tpu.matmul %232, %233, %cst_80 {dimension_numbers = #tpu.dot_dimension_numbers<[1], [0], [0], [1], [0, 0, 1, 1], [], []>} : vector<1x128xf32>, vector<128x32xf32>, vector<1x32xf32> -> vector<1x32xf32>
    %235 = arith.mulf %234, %8 : vector<1x32xf32>
    %cst_81 = arith.constant dense<0.000000e+00> : vector<1xf32>
    %236 = vector.multi_reduction <add>, %235, %cst_81 [1] : vector<1x32xf32> to vector<1xf32>
    %237 = vector.shape_cast %236 : vector<1xf32> to vector<1x1xf32>
    %238 = vector.broadcast %c1_i32 : i32 to vector<1x8xi32>
    %239 = arith.cmpi eq, %2, %238 : vector<1x8xi32>
    %cst_82 = arith.constant 0.000000e+00 : f32
    %240 = vector.shape_cast %237 : vector<1x1xf32> to vector<1x1xf32>
    %241 = vector.broadcast %240 : vector<1x1xf32> to vector<1x8xf32>
    %242 = vector.broadcast %cst_82 : f32 to vector<1x8xf32>
    %243 = arith.select %239, %241, %242 : vector<1x8xi1>, vector<1x8xf32>
    %244 = arith.addf %106, %243 : vector<1x8xf32>
    %c16_i32_83 = arith.constant 16 : i32
    %245 = arith.muli %c1_i32, %c16_i32_83 : i32
    %246 = tpu.assume_multiple %245, 16 : i32
    %247 = arith.index_cast %246 : i32 to index
    %c0_84 = arith.constant 0 : index
    %248 = vector.load %arg4[%247, %c0_84] : memref<128x1xf32, #tpu.memory_space<vmem>>, vector<16x1xf32>
    %249 = arith.index_cast %c1_i32 : i32 to index
    %c0_85 = arith.constant 0 : index
    %250 = vector.load %arg1[%249, %c0_85] : memref<8x33xf32, #tpu.memory_space<vmem>>, vector<1x33xf32>
    %cst_86 = arith.constant dense<0.000000e+00> : vector<1x96xf32>
    %251 = tpu.matmul %250, %4, %cst_86 {dimension_numbers = #tpu.dot_dimension_numbers<[1], [0], [0], [1], [0, 0, 1, 1], [], []>} : vector<1x33xf32>, vector<33x96xf32>, vector<1x96xf32> -> vector<1x96xf32>
    %252 = vector.broadcast %248 : vector<16x1xf32> to vector<16x96xf32>
    %253 = vector.broadcast %251 : vector<1x96xf32> to vector<16x96xf32>
    %254 = arith.mulf %252, %253 : vector<16x96xf32>
    %255 = vector.broadcast %5 : vector<1x96xf32> to vector<16x96xf32>
    %256 = arith.addf %254, %255 : vector<16x96xf32>
    %cst_87 = arith.constant dense<0.000000e+00> : vector<16x96xf32>
    %257 = tpu.matmul %147, %6, %cst_87 {dimension_numbers = #tpu.dot_dimension_numbers<[1], [0], [0], [1], [0, 0, 1, 1], [], []>} : vector<16x32xf32>, vector<32x96xf32>, vector<16x96xf32> -> vector<16x96xf32>
    %258 = vector.broadcast %7 : vector<1x96xf32> to vector<16x96xf32>
    %259 = arith.addf %257, %258 : vector<16x96xf32>
    %260 = vector.extract_strided_slice %256 {offsets = [0, 0], sizes = [16, 32], strides = [1, 1]} : vector<16x96xf32> to vector<16x32xf32>
    %261 = vector.extract_strided_slice %259 {offsets = [0, 0], sizes = [16, 32], strides = [1, 1]} : vector<16x96xf32> to vector<16x32xf32>
    %262 = arith.addf %260, %261 : vector<16x32xf32>
    %263 = arith.negf %262 : vector<16x32xf32>
    %264 = math.exp %263 : vector<16x32xf32>
    %cst_88 = arith.constant 1.000000e+00 : f32
    %265 = vector.broadcast %cst_88 : f32 to vector<16x32xf32>
    %266 = arith.addf %265, %264 : vector<16x32xf32>
    %267 = arith.divf %265, %266 : vector<16x32xf32>
    %268 = vector.extract_strided_slice %256 {offsets = [0, 32], sizes = [16, 32], strides = [1, 1]} : vector<16x96xf32> to vector<16x32xf32>
    %269 = vector.extract_strided_slice %259 {offsets = [0, 32], sizes = [16, 32], strides = [1, 1]} : vector<16x96xf32> to vector<16x32xf32>
    %270 = arith.addf %268, %269 : vector<16x32xf32>
    %271 = arith.negf %270 : vector<16x32xf32>
    %272 = math.exp %271 : vector<16x32xf32>
    %cst_89 = arith.constant 1.000000e+00 : f32
    %273 = vector.broadcast %cst_89 : f32 to vector<16x32xf32>
    %274 = arith.addf %273, %272 : vector<16x32xf32>
    %275 = arith.divf %273, %274 : vector<16x32xf32>
    %276 = vector.extract_strided_slice %256 {offsets = [0, 64], sizes = [16, 32], strides = [1, 1]} : vector<16x96xf32> to vector<16x32xf32>
    %277 = vector.extract_strided_slice %259 {offsets = [0, 64], sizes = [16, 32], strides = [1, 1]} : vector<16x96xf32> to vector<16x32xf32>
    %278 = arith.mulf %267, %277 : vector<16x32xf32>
    %279 = arith.addf %276, %278 : vector<16x32xf32>
    %280 = math.tanh %279 : vector<16x32xf32>
    %cst_90 = arith.constant 1.000000e+00 : f32
    %281 = vector.broadcast %cst_90 : f32 to vector<16x32xf32>
    %282 = arith.subf %281, %275 : vector<16x32xf32>
    %283 = arith.mulf %282, %280 : vector<16x32xf32>
    %284 = arith.mulf %275, %147 : vector<16x32xf32>
    %285 = arith.addf %283, %284 : vector<16x32xf32>
    %286 = arith.index_cast %246 : i32 to index
    %c0_91 = arith.constant 0 : index
    %287 = vector.load %arg15[%286, %c0_91] : memref<128x32xf32, #tpu.memory_space<vmem>>, vector<16x32xf32>
    tpu.vector_store %arg15[%286, %c0_91], %285 {strides = array<i32>} : memref<128x32xf32, #tpu.memory_space<vmem>>, vector<16x32xf32>,
    %c2_i32 = arith.constant 2 : i32
    %288 = arith.index_cast %c2_i32 : i32 to index
    %c0_92 = arith.constant 0 : index
    %289 = vector.load %arg2[%288, %c0_92] : memref<8x8xf32, #tpu.memory_space<vmem>>, vector<1x8xf32>
    %290 = vector.broadcast %c2_i32 : i32 to vector<1x8xi32>
    %291 = arith.cmpi slt, %2, %290 : vector<1x8xi32>
    %292 = vector.broadcast %cst_16 : f32 to vector<1x8xf32>
    %293 = arith.select %291, %289, %292 : vector<1x8xi1>, vector<1x8xf32>
    %cst_93 = arith.constant 0.000000e+00 : f32
    %294 = vector.broadcast %cst_93 : f32 to vector<1x8xf32>
    %cst_94 = arith.constant dense<0xFF800000> : vector<1xf32>
    %295 = vector.multi_reduction <maximumf>, %293, %cst_94 [1] : vector<1x8xf32> to vector<1xf32>
    %296 = vector.shape_cast %295 : vector<1xf32> to vector<1x1xf32>
    %297 = vector.broadcast %296 : vector<1x1xf32> to vector<1x8xf32>
    %298 = arith.cmpf oeq, %293, %297 : vector<1x8xf32>
    %cst_95 = arith.constant 8.000000e+00 : f32
    %299 = vector.broadcast %cst_95 : f32 to vector<1x8xf32>
    %300 = arith.select %298, %3, %299 : vector<1x8xi1>, vector<1x8xf32>
    %cst_96 = arith.constant dense<0x7F800000> : vector<1xf32>
    %301 = vector.multi_reduction <minimumf>, %300, %cst_96 [1] : vector<1x8xf32> to vector<1xf32>
    %302 = vector.shape_cast %301 : vector<1xf32> to vector<1x1xf32>
    %303 = vector.broadcast %302 : vector<1x1xf32> to vector<1x8xf32>
    %304 = arith.cmpf oeq, %3, %303 : vector<1x8xf32>
    %305 = vector.broadcast %cst_16 : f32 to vector<1x8xf32>
    %306 = arith.select %304, %305, %293 : vector<1x8xi1>, vector<1x8xf32>
    %cst_97 = arith.constant 1.000000e+00 : f32
    %307 = vector.broadcast %cst_97 : f32 to vector<1x8xf32>
    %308 = arith.select %304, %307, %294 : vector<1x8xi1>, vector<1x8xf32>
    %cst_98 = arith.constant dense<0xFF800000> : vector<1xf32>
    %309 = vector.multi_reduction <maximumf>, %306, %cst_98 [1] : vector<1x8xf32> to vector<1xf32>
    %310 = vector.shape_cast %309 : vector<1xf32> to vector<1x1xf32>
    %311 = vector.broadcast %310 : vector<1x1xf32> to vector<1x8xf32>
    %312 = arith.cmpf oeq, %306, %311 : vector<1x8xf32>
    %cst_99 = arith.constant 8.000000e+00 : f32
    %313 = vector.broadcast %cst_99 : f32 to vector<1x8xf32>
    %314 = arith.select %312, %3, %313 : vector<1x8xi1>, vector<1x8xf32>
    %cst_100 = arith.constant dense<0x7F800000> : vector<1xf32>
    %315 = vector.multi_reduction <minimumf>, %314, %cst_100 [1] : vector<1x8xf32> to vector<1xf32>
    %316 = vector.shape_cast %315 : vector<1xf32> to vector<1x1xf32>
    %317 = vector.broadcast %316 : vector<1x1xf32> to vector<1x8xf32>
    %318 = arith.cmpf oeq, %3, %317 : vector<1x8xf32>
    %319 = vector.broadcast %cst_16 : f32 to vector<1x8xf32>
    %320 = arith.select %318, %319, %306 : vector<1x8xi1>, vector<1x8xf32>
    %cst_101 = arith.constant 1.000000e+00 : f32
    %321 = vector.broadcast %cst_101 : f32 to vector<1x8xf32>
    %322 = arith.select %318, %321, %308 : vector<1x8xi1>, vector<1x8xf32>
    %cst_102 = arith.constant dense<0xFF800000> : vector<1xf32>
    %323 = vector.multi_reduction <maximumf>, %320, %cst_102 [1] : vector<1x8xf32> to vector<1xf32>
    %324 = vector.shape_cast %323 : vector<1xf32> to vector<1x1xf32>
    %325 = vector.broadcast %324 : vector<1x1xf32> to vector<1x8xf32>
    %326 = arith.cmpf oeq, %320, %325 : vector<1x8xf32>
    %cst_103 = arith.constant 8.000000e+00 : f32
    %327 = vector.broadcast %cst_103 : f32 to vector<1x8xf32>
    %328 = arith.select %326, %3, %327 : vector<1x8xi1>, vector<1x8xf32>
    %cst_104 = arith.constant dense<0x7F800000> : vector<1xf32>
    %329 = vector.multi_reduction <minimumf>, %328, %cst_104 [1] : vector<1x8xf32> to vector<1xf32>
    %330 = vector.shape_cast %329 : vector<1xf32> to vector<1x1xf32>
    %331 = vector.broadcast %330 : vector<1x1xf32> to vector<1x8xf32>
    %332 = arith.cmpf oeq, %3, %331 : vector<1x8xf32>
    %333 = vector.broadcast %cst_16 : f32 to vector<1x8xf32>
    %334 = arith.select %332, %333, %320 : vector<1x8xi1>, vector<1x8xf32>
    %cst_105 = arith.constant 1.000000e+00 : f32
    %335 = vector.broadcast %cst_105 : f32 to vector<1x8xf32>
    %336 = arith.select %332, %335, %322 : vector<1x8xi1>, vector<1x8xf32>
    %cst_106 = arith.constant dense<0xFF800000> : vector<1xf32>
    %337 = vector.multi_reduction <maximumf>, %334, %cst_106 [1] : vector<1x8xf32> to vector<1xf32>
    %338 = vector.shape_cast %337 : vector<1xf32> to vector<1x1xf32>
    %339 = vector.broadcast %338 : vector<1x1xf32> to vector<1x8xf32>
    %340 = arith.cmpf oeq, %334, %339 : vector<1x8xf32>
    %cst_107 = arith.constant 8.000000e+00 : f32
    %341 = vector.broadcast %cst_107 : f32 to vector<1x8xf32>
    %342 = arith.select %340, %3, %341 : vector<1x8xi1>, vector<1x8xf32>
    %cst_108 = arith.constant dense<0x7F800000> : vector<1xf32>
    %343 = vector.multi_reduction <minimumf>, %342, %cst_108 [1] : vector<1x8xf32> to vector<1xf32>
    %344 = vector.shape_cast %343 : vector<1xf32> to vector<1x1xf32>
    %345 = vector.broadcast %344 : vector<1x1xf32> to vector<1x8xf32>
    %346 = arith.cmpf oeq, %3, %345 : vector<1x8xf32>
    %cst_109 = arith.constant 1.000000e+00 : f32
    %347 = vector.broadcast %cst_109 : f32 to vector<1x8xf32>
    %348 = arith.select %346, %347, %336 : vector<1x8xi1>, vector<1x8xf32>
    %cst_110 = arith.constant 0.000000e+00 : f32
    %349 = vector.broadcast %cst_110 : f32 to vector<1x8xf32>
    %350 = arith.cmpf ogt, %348, %349 : vector<1x8xf32>
    %351 = vector.broadcast %cst_16 : f32 to vector<1x8xf32>
    %352 = arith.select %350, %293, %351 : vector<1x8xi1>, vector<1x8xf32>
    %cst_111 = arith.constant dense<0xFF800000> : vector<1xf32>
    %353 = vector.multi_reduction <maximumf>, %352, %cst_111 [1] : vector<1x8xf32> to vector<1xf32>
    %354 = vector.shape_cast %353 : vector<1xf32> to vector<1x1xf32>
    %355 = vector.broadcast %354 : vector<1x1xf32> to vector<1x8xf32>
    %356 = arith.subf %352, %355 : vector<1x8xf32>
    %357 = math.exp %356 : vector<1x8xf32>
    %cst_112 = arith.constant dense<0.000000e+00> : vector<1xf32>
    %358 = vector.multi_reduction <add>, %357, %cst_112 [1] : vector<1x8xf32> to vector<1xf32>
    %359 = vector.shape_cast %358 : vector<1xf32> to vector<1x1xf32>
    %360 = tpu.reciprocal %359 {approx = true} : vector<1x1xf32> -> vector<1x1xf32>
    %361 = arith.mulf %359, %360 : vector<1x1xf32>
    %cst_113 = arith.constant 2.000000e+00 : f32
    %362 = vector.broadcast %cst_113 : f32 to vector<1x1xf32>
    %363 = arith.subf %362, %361 : vector<1x1xf32>
    %364 = arith.mulf %360, %363 : vector<1x1xf32>
    %365 = vector.broadcast %364 : vector<1x1xf32> to vector<1x8xf32>
    %366 = arith.mulf %357, %365 : vector<1x8xf32>
    %cst_114 = arith.constant dense<0.000000e+00> : vector<1x128xf32>
    %367 = tpu.matmul %366, %9, %cst_114 {dimension_numbers = #tpu.dot_dimension_numbers<[1], [0], [0], [1], [0, 0, 1, 1], [], []>} : vector<1x8xf32>, vector<8x128xf32>, vector<1x128xf32> -> vector<1x128xf32>
    %368 = arith.index_cast %c2_i32 : i32 to index
    %c0_115 = arith.constant 0 : index
    %369 = vector.load %arg3[%368, %c0_115] : memref<8x128xf32, #tpu.memory_space<vmem>>, vector<1x128xf32>
    %370 = arith.mulf %367, %369 : vector<1x128xf32>
    %c0_116 = arith.constant 0 : index
    %c0_117 = arith.constant 0 : index
    %371 = vector.load %arg15[%c0_116, %c0_117] : memref<128x32xf32, #tpu.memory_space<vmem>>, vector<128x32xf32>
    %cst_118 = arith.constant dense<0.000000e+00> : vector<1x32xf32>
    %372 = tpu.matmul %370, %371, %cst_118 {dimension_numbers = #tpu.dot_dimension_numbers<[1], [0], [0], [1], [0, 0, 1, 1], [], []>} : vector<1x128xf32>, vector<128x32xf32>, vector<1x32xf32> -> vector<1x32xf32>
    %373 = arith.mulf %372, %8 : vector<1x32xf32>
    %cst_119 = arith.constant dense<0.000000e+00> : vector<1xf32>
    %374 = vector.multi_reduction <add>, %373, %cst_119 [1] : vector<1x32xf32> to vector<1xf32>
    %375 = vector.shape_cast %374 : vector<1xf32> to vector<1x1xf32>
    %376 = vector.broadcast %c2_i32 : i32 to vector<1x8xi32>
    %377 = arith.cmpi eq, %2, %376 : vector<1x8xi32>
    %cst_120 = arith.constant 0.000000e+00 : f32
    %378 = vector.shape_cast %375 : vector<1x1xf32> to vector<1x1xf32>
    %379 = vector.broadcast %378 : vector<1x1xf32> to vector<1x8xf32>
    %380 = vector.broadcast %cst_120 : f32 to vector<1x8xf32>
    %381 = arith.select %377, %379, %380 : vector<1x8xi1>, vector<1x8xf32>
    %382 = arith.addf %244, %381 : vector<1x8xf32>
    %c16_i32_121 = arith.constant 16 : i32
    %383 = arith.muli %c2_i32, %c16_i32_121 : i32
    %384 = tpu.assume_multiple %383, 16 : i32
    %385 = arith.index_cast %384 : i32 to index
    %c0_122 = arith.constant 0 : index
    %386 = vector.load %arg4[%385, %c0_122] : memref<128x1xf32, #tpu.memory_space<vmem>>, vector<16x1xf32>
    %387 = arith.index_cast %c2_i32 : i32 to index
    %c0_123 = arith.constant 0 : index
    %388 = vector.load %arg1[%387, %c0_123] : memref<8x33xf32, #tpu.memory_space<vmem>>, vector<1x33xf32>
    %cst_124 = arith.constant dense<0.000000e+00> : vector<1x96xf32>
    %389 = tpu.matmul %388, %4, %cst_124 {dimension_numbers = #tpu.dot_dimension_numbers<[1], [0], [0], [1], [0, 0, 1, 1], [], []>} : vector<1x33xf32>, vector<33x96xf32>, vector<1x96xf32> -> vector<1x96xf32>
    %390 = vector.broadcast %386 : vector<16x1xf32> to vector<16x96xf32>
    %391 = vector.broadcast %389 : vector<1x96xf32> to vector<16x96xf32>
    %392 = arith.mulf %390, %391 : vector<16x96xf32>
    %393 = vector.broadcast %5 : vector<1x96xf32> to vector<16x96xf32>
    %394 = arith.addf %392, %393 : vector<16x96xf32>
    %cst_125 = arith.constant dense<0.000000e+00> : vector<16x96xf32>
    %395 = tpu.matmul %285, %6, %cst_125 {dimension_numbers = #tpu.dot_dimension_numbers<[1], [0], [0], [1], [0, 0, 1, 1], [], []>} : vector<16x32xf32>, vector<32x96xf32>, vector<16x96xf32> -> vector<16x96xf32>
    %396 = vector.broadcast %7 : vector<1x96xf32> to vector<16x96xf32>
    %397 = arith.addf %395, %396 : vector<16x96xf32>
    %398 = vector.extract_strided_slice %394 {offsets = [0, 0], sizes = [16, 32], strides = [1, 1]} : vector<16x96xf32> to vector<16x32xf32>
    %399 = vector.extract_strided_slice %397 {offsets = [0, 0], sizes = [16, 32], strides = [1, 1]} : vector<16x96xf32> to vector<16x32xf32>
    %400 = arith.addf %398, %399 : vector<16x32xf32>
    %401 = arith.negf %400 : vector<16x32xf32>
    %402 = math.exp %401 : vector<16x32xf32>
    %cst_126 = arith.constant 1.000000e+00 : f32
    %403 = vector.broadcast %cst_126 : f32 to vector<16x32xf32>
    %404 = arith.addf %403, %402 : vector<16x32xf32>
    %405 = arith.divf %403, %404 : vector<16x32xf32>
    %406 = vector.extract_strided_slice %394 {offsets = [0, 32], sizes = [16, 32], strides = [1, 1]} : vector<16x96xf32> to vector<16x32xf32>
    %407 = vector.extract_strided_slice %397 {offsets = [0, 32], sizes = [16, 32], strides = [1, 1]} : vector<16x96xf32> to vector<16x32xf32>
    %408 = arith.addf %406, %407 : vector<16x32xf32>
    %409 = arith.negf %408 : vector<16x32xf32>
    %410 = math.exp %409 : vector<16x32xf32>
    %cst_127 = arith.constant 1.000000e+00 : f32
    %411 = vector.broadcast %cst_127 : f32 to vector<16x32xf32>
    %412 = arith.addf %411, %410 : vector<16x32xf32>
    %413 = arith.divf %411, %412 : vector<16x32xf32>
    %414 = vector.extract_strided_slice %394 {offsets = [0, 64], sizes = [16, 32], strides = [1, 1]} : vector<16x96xf32> to vector<16x32xf32>
    %415 = vector.extract_strided_slice %397 {offsets = [0, 64], sizes = [16, 32], strides = [1, 1]} : vector<16x96xf32> to vector<16x32xf32>
    %416 = arith.mulf %405, %415 : vector<16x32xf32>
    %417 = arith.addf %414, %416 : vector<16x32xf32>
    %418 = math.tanh %417 : vector<16x32xf32>
    %cst_128 = arith.constant 1.000000e+00 : f32
    %419 = vector.broadcast %cst_128 : f32 to vector<16x32xf32>
    %420 = arith.subf %419, %413 : vector<16x32xf32>
    %421 = arith.mulf %420, %418 : vector<16x32xf32>
    %422 = arith.mulf %413, %285 : vector<16x32xf32>
    %423 = arith.addf %421, %422 : vector<16x32xf32>
    %424 = arith.index_cast %384 : i32 to index
    %c0_129 = arith.constant 0 : index
    %425 = vector.load %arg15[%424, %c0_129] : memref<128x32xf32, #tpu.memory_space<vmem>>, vector<16x32xf32>
    tpu.vector_store %arg15[%424, %c0_129], %423 {strides = array<i32>} : memref<128x32xf32, #tpu.memory_space<vmem>>, vector<16x32xf32>,
    %c3_i32 = arith.constant 3 : i32
    %426 = arith.index_cast %c3_i32 : i32 to index
    %c0_130 = arith.constant 0 : index
    %427 = vector.load %arg2[%426, %c0_130] : memref<8x8xf32, #tpu.memory_space<vmem>>, vector<1x8xf32>
    %428 = vector.broadcast %c3_i32 : i32 to vector<1x8xi32>
    %429 = arith.cmpi slt, %2, %428 : vector<1x8xi32>
    %430 = vector.broadcast %cst_16 : f32 to vector<1x8xf32>
    %431 = arith.select %429, %427, %430 : vector<1x8xi1>, vector<1x8xf32>
    %cst_131 = arith.constant 0.000000e+00 : f32
    %432 = vector.broadcast %cst_131 : f32 to vector<1x8xf32>
    %cst_132 = arith.constant dense<0xFF800000> : vector<1xf32>
    %433 = vector.multi_reduction <maximumf>, %431, %cst_132 [1] : vector<1x8xf32> to vector<1xf32>
    %434 = vector.shape_cast %433 : vector<1xf32> to vector<1x1xf32>
    %435 = vector.broadcast %434 : vector<1x1xf32> to vector<1x8xf32>
    %436 = arith.cmpf oeq, %431, %435 : vector<1x8xf32>
    %cst_133 = arith.constant 8.000000e+00 : f32
    %437 = vector.broadcast %cst_133 : f32 to vector<1x8xf32>
    %438 = arith.select %436, %3, %437 : vector<1x8xi1>, vector<1x8xf32>
    %cst_134 = arith.constant dense<0x7F800000> : vector<1xf32>
    %439 = vector.multi_reduction <minimumf>, %438, %cst_134 [1] : vector<1x8xf32> to vector<1xf32>
    %440 = vector.shape_cast %439 : vector<1xf32> to vector<1x1xf32>
    %441 = vector.broadcast %440 : vector<1x1xf32> to vector<1x8xf32>
    %442 = arith.cmpf oeq, %3, %441 : vector<1x8xf32>
    %443 = vector.broadcast %cst_16 : f32 to vector<1x8xf32>
    %444 = arith.select %442, %443, %431 : vector<1x8xi1>, vector<1x8xf32>
    %cst_135 = arith.constant 1.000000e+00 : f32
    %445 = vector.broadcast %cst_135 : f32 to vector<1x8xf32>
    %446 = arith.select %442, %445, %432 : vector<1x8xi1>, vector<1x8xf32>
    %cst_136 = arith.constant dense<0xFF800000> : vector<1xf32>
    %447 = vector.multi_reduction <maximumf>, %444, %cst_136 [1] : vector<1x8xf32> to vector<1xf32>
    %448 = vector.shape_cast %447 : vector<1xf32> to vector<1x1xf32>
    %449 = vector.broadcast %448 : vector<1x1xf32> to vector<1x8xf32>
    %450 = arith.cmpf oeq, %444, %449 : vector<1x8xf32>
    %cst_137 = arith.constant 8.000000e+00 : f32
    %451 = vector.broadcast %cst_137 : f32 to vector<1x8xf32>
    %452 = arith.select %450, %3, %451 : vector<1x8xi1>, vector<1x8xf32>
    %cst_138 = arith.constant dense<0x7F800000> : vector<1xf32>
    %453 = vector.multi_reduction <minimumf>, %452, %cst_138 [1] : vector<1x8xf32> to vector<1xf32>
    %454 = vector.shape_cast %453 : vector<1xf32> to vector<1x1xf32>
    %455 = vector.broadcast %454 : vector<1x1xf32> to vector<1x8xf32>
    %456 = arith.cmpf oeq, %3, %455 : vector<1x8xf32>
    %457 = vector.broadcast %cst_16 : f32 to vector<1x8xf32>
    %458 = arith.select %456, %457, %444 : vector<1x8xi1>, vector<1x8xf32>
    %cst_139 = arith.constant 1.000000e+00 : f32
    %459 = vector.broadcast %cst_139 : f32 to vector<1x8xf32>
    %460 = arith.select %456, %459, %446 : vector<1x8xi1>, vector<1x8xf32>
    %cst_140 = arith.constant dense<0xFF800000> : vector<1xf32>
    %461 = vector.multi_reduction <maximumf>, %458, %cst_140 [1] : vector<1x8xf32> to vector<1xf32>
    %462 = vector.shape_cast %461 : vector<1xf32> to vector<1x1xf32>
    %463 = vector.broadcast %462 : vector<1x1xf32> to vector<1x8xf32>
    %464 = arith.cmpf oeq, %458, %463 : vector<1x8xf32>
    %cst_141 = arith.constant 8.000000e+00 : f32
    %465 = vector.broadcast %cst_141 : f32 to vector<1x8xf32>
    %466 = arith.select %464, %3, %465 : vector<1x8xi1>, vector<1x8xf32>
    %cst_142 = arith.constant dense<0x7F800000> : vector<1xf32>
    %467 = vector.multi_reduction <minimumf>, %466, %cst_142 [1] : vector<1x8xf32> to vector<1xf32>
    %468 = vector.shape_cast %467 : vector<1xf32> to vector<1x1xf32>
    %469 = vector.broadcast %468 : vector<1x1xf32> to vector<1x8xf32>
    %470 = arith.cmpf oeq, %3, %469 : vector<1x8xf32>
    %471 = vector.broadcast %cst_16 : f32 to vector<1x8xf32>
    %472 = arith.select %470, %471, %458 : vector<1x8xi1>, vector<1x8xf32>
    %cst_143 = arith.constant 1.000000e+00 : f32
    %473 = vector.broadcast %cst_143 : f32 to vector<1x8xf32>
    %474 = arith.select %470, %473, %460 : vector<1x8xi1>, vector<1x8xf32>
    %cst_144 = arith.constant dense<0xFF800000> : vector<1xf32>
    %475 = vector.multi_reduction <maximumf>, %472, %cst_144 [1] : vector<1x8xf32> to vector<1xf32>
    %476 = vector.shape_cast %475 : vector<1xf32> to vector<1x1xf32>
    %477 = vector.broadcast %476 : vector<1x1xf32> to vector<1x8xf32>
    %478 = arith.cmpf oeq, %472, %477 : vector<1x8xf32>
    %cst_145 = arith.constant 8.000000e+00 : f32
    %479 = vector.broadcast %cst_145 : f32 to vector<1x8xf32>
    %480 = arith.select %478, %3, %479 : vector<1x8xi1>, vector<1x8xf32>
    %cst_146 = arith.constant dense<0x7F800000> : vector<1xf32>
    %481 = vector.multi_reduction <minimumf>, %480, %cst_146 [1] : vector<1x8xf32> to vector<1xf32>
    %482 = vector.shape_cast %481 : vector<1xf32> to vector<1x1xf32>
    %483 = vector.broadcast %482 : vector<1x1xf32> to vector<1x8xf32>
    %484 = arith.cmpf oeq, %3, %483 : vector<1x8xf32>
    %cst_147 = arith.constant 1.000000e+00 : f32
    %485 = vector.broadcast %cst_147 : f32 to vector<1x8xf32>
    %486 = arith.select %484, %485, %474 : vector<1x8xi1>, vector<1x8xf32>
    %cst_148 = arith.constant 0.000000e+00 : f32
    %487 = vector.broadcast %cst_148 : f32 to vector<1x8xf32>
    %488 = arith.cmpf ogt, %486, %487 : vector<1x8xf32>
    %489 = vector.broadcast %cst_16 : f32 to vector<1x8xf32>
    %490 = arith.select %488, %431, %489 : vector<1x8xi1>, vector<1x8xf32>
    %cst_149 = arith.constant dense<0xFF800000> : vector<1xf32>
    %491 = vector.multi_reduction <maximumf>, %490, %cst_149 [1] : vector<1x8xf32> to vector<1xf32>
    %492 = vector.shape_cast %491 : vector<1xf32> to vector<1x1xf32>
    %493 = vector.broadcast %492 : vector<1x1xf32> to vector<1x8xf32>
    %494 = arith.subf %490, %493 : vector<1x8xf32>
    %495 = math.exp %494 : vector<1x8xf32>
    %cst_150 = arith.constant dense<0.000000e+00> : vector<1xf32>
    %496 = vector.multi_reduction <add>, %495, %cst_150 [1] : vector<1x8xf32> to vector<1xf32>
    %497 = vector.shape_cast %496 : vector<1xf32> to vector<1x1xf32>
    %498 = tpu.reciprocal %497 {approx = true} : vector<1x1xf32> -> vector<1x1xf32>
    %499 = arith.mulf %497, %498 : vector<1x1xf32>
    %cst_151 = arith.constant 2.000000e+00 : f32
    %500 = vector.broadcast %cst_151 : f32 to vector<1x1xf32>
    %501 = arith.subf %500, %499 : vector<1x1xf32>
    %502 = arith.mulf %498, %501 : vector<1x1xf32>
    %503 = vector.broadcast %502 : vector<1x1xf32> to vector<1x8xf32>
    %504 = arith.mulf %495, %503 : vector<1x8xf32>
    %cst_152 = arith.constant dense<0.000000e+00> : vector<1x128xf32>
    %505 = tpu.matmul %504, %9, %cst_152 {dimension_numbers = #tpu.dot_dimension_numbers<[1], [0], [0], [1], [0, 0, 1, 1], [], []>} : vector<1x8xf32>, vector<8x128xf32>, vector<1x128xf32> -> vector<1x128xf32>
    %506 = arith.index_cast %c3_i32 : i32 to index
    %c0_153 = arith.constant 0 : index
    %507 = vector.load %arg3[%506, %c0_153] : memref<8x128xf32, #tpu.memory_space<vmem>>, vector<1x128xf32>
    %508 = arith.mulf %505, %507 : vector<1x128xf32>
    %c0_154 = arith.constant 0 : index
    %c0_155 = arith.constant 0 : index
    %509 = vector.load %arg15[%c0_154, %c0_155] : memref<128x32xf32, #tpu.memory_space<vmem>>, vector<128x32xf32>
    %cst_156 = arith.constant dense<0.000000e+00> : vector<1x32xf32>
    %510 = tpu.matmul %508, %509, %cst_156 {dimension_numbers = #tpu.dot_dimension_numbers<[1], [0], [0], [1], [0, 0, 1, 1], [], []>} : vector<1x128xf32>, vector<128x32xf32>, vector<1x32xf32> -> vector<1x32xf32>
    %511 = arith.mulf %510, %8 : vector<1x32xf32>
    %cst_157 = arith.constant dense<0.000000e+00> : vector<1xf32>
    %512 = vector.multi_reduction <add>, %511, %cst_157 [1] : vector<1x32xf32> to vector<1xf32>
    %513 = vector.shape_cast %512 : vector<1xf32> to vector<1x1xf32>
    %514 = vector.broadcast %c3_i32 : i32 to vector<1x8xi32>
    %515 = arith.cmpi eq, %2, %514 : vector<1x8xi32>
    %cst_158 = arith.constant 0.000000e+00 : f32
    %516 = vector.shape_cast %513 : vector<1x1xf32> to vector<1x1xf32>
    %517 = vector.broadcast %516 : vector<1x1xf32> to vector<1x8xf32>
    %518 = vector.broadcast %cst_158 : f32 to vector<1x8xf32>
    %519 = arith.select %515, %517, %518 : vector<1x8xi1>, vector<1x8xf32>
    %520 = arith.addf %382, %519 : vector<1x8xf32>
    %c16_i32_159 = arith.constant 16 : i32
    %521 = arith.muli %c3_i32, %c16_i32_159 : i32
    %522 = tpu.assume_multiple %521, 16 : i32
    %523 = arith.index_cast %522 : i32 to index
    %c0_160 = arith.constant 0 : index
    %524 = vector.load %arg4[%523, %c0_160] : memref<128x1xf32, #tpu.memory_space<vmem>>, vector<16x1xf32>
    %525 = arith.index_cast %c3_i32 : i32 to index
    %c0_161 = arith.constant 0 : index
    %526 = vector.load %arg1[%525, %c0_161] : memref<8x33xf32, #tpu.memory_space<vmem>>, vector<1x33xf32>
    %cst_162 = arith.constant dense<0.000000e+00> : vector<1x96xf32>
    %527 = tpu.matmul %526, %4, %cst_162 {dimension_numbers = #tpu.dot_dimension_numbers<[1], [0], [0], [1], [0, 0, 1, 1], [], []>} : vector<1x33xf32>, vector<33x96xf32>, vector<1x96xf32> -> vector<1x96xf32>
    %528 = vector.broadcast %524 : vector<16x1xf32> to vector<16x96xf32>
    %529 = vector.broadcast %527 : vector<1x96xf32> to vector<16x96xf32>
    %530 = arith.mulf %528, %529 : vector<16x96xf32>
    %531 = vector.broadcast %5 : vector<1x96xf32> to vector<16x96xf32>
    %532 = arith.addf %530, %531 : vector<16x96xf32>
    %cst_163 = arith.constant dense<0.000000e+00> : vector<16x96xf32>
    %533 = tpu.matmul %423, %6, %cst_163 {dimension_numbers = #tpu.dot_dimension_numbers<[1], [0], [0], [1], [0, 0, 1, 1], [], []>} : vector<16x32xf32>, vector<32x96xf32>, vector<16x96xf32> -> vector<16x96xf32>
    %534 = vector.broadcast %7 : vector<1x96xf32> to vector<16x96xf32>
    %535 = arith.addf %533, %534 : vector<16x96xf32>
    %536 = vector.extract_strided_slice %532 {offsets = [0, 0], sizes = [16, 32], strides = [1, 1]} : vector<16x96xf32> to vector<16x32xf32>
    %537 = vector.extract_strided_slice %535 {offsets = [0, 0], sizes = [16, 32], strides = [1, 1]} : vector<16x96xf32> to vector<16x32xf32>
    %538 = arith.addf %536, %537 : vector<16x32xf32>
    %539 = arith.negf %538 : vector<16x32xf32>
    %540 = math.exp %539 : vector<16x32xf32>
    %cst_164 = arith.constant 1.000000e+00 : f32
    %541 = vector.broadcast %cst_164 : f32 to vector<16x32xf32>
    %542 = arith.addf %541, %540 : vector<16x32xf32>
    %543 = arith.divf %541, %542 : vector<16x32xf32>
    %544 = vector.extract_strided_slice %532 {offsets = [0, 32], sizes = [16, 32], strides = [1, 1]} : vector<16x96xf32> to vector<16x32xf32>
    %545 = vector.extract_strided_slice %535 {offsets = [0, 32], sizes = [16, 32], strides = [1, 1]} : vector<16x96xf32> to vector<16x32xf32>
    %546 = arith.addf %544, %545 : vector<16x32xf32>
    %547 = arith.negf %546 : vector<16x32xf32>
    %548 = math.exp %547 : vector<16x32xf32>
    %cst_165 = arith.constant 1.000000e+00 : f32
    %549 = vector.broadcast %cst_165 : f32 to vector<16x32xf32>
    %550 = arith.addf %549, %548 : vector<16x32xf32>
    %551 = arith.divf %549, %550 : vector<16x32xf32>
    %552 = vector.extract_strided_slice %532 {offsets = [0, 64], sizes = [16, 32], strides = [1, 1]} : vector<16x96xf32> to vector<16x32xf32>
    %553 = vector.extract_strided_slice %535 {offsets = [0, 64], sizes = [16, 32], strides = [1, 1]} : vector<16x96xf32> to vector<16x32xf32>
    %554 = arith.mulf %543, %553 : vector<16x32xf32>
    %555 = arith.addf %552, %554 : vector<16x32xf32>
    %556 = math.tanh %555 : vector<16x32xf32>
    %cst_166 = arith.constant 1.000000e+00 : f32
    %557 = vector.broadcast %cst_166 : f32 to vector<16x32xf32>
    %558 = arith.subf %557, %551 : vector<16x32xf32>
    %559 = arith.mulf %558, %556 : vector<16x32xf32>
    %560 = arith.mulf %551, %423 : vector<16x32xf32>
    %561 = arith.addf %559, %560 : vector<16x32xf32>
    %562 = arith.index_cast %522 : i32 to index
    %c0_167 = arith.constant 0 : index
    %563 = vector.load %arg15[%562, %c0_167] : memref<128x32xf32, #tpu.memory_space<vmem>>, vector<16x32xf32>
    tpu.vector_store %arg15[%562, %c0_167], %561 {strides = array<i32>} : memref<128x32xf32, #tpu.memory_space<vmem>>, vector<16x32xf32>,
    %c4_i32 = arith.constant 4 : i32
    %564 = arith.index_cast %c4_i32 : i32 to index
    %c0_168 = arith.constant 0 : index
    %565 = vector.load %arg2[%564, %c0_168] : memref<8x8xf32, #tpu.memory_space<vmem>>, vector<1x8xf32>
    %566 = vector.broadcast %c4_i32 : i32 to vector<1x8xi32>
    %567 = arith.cmpi slt, %2, %566 : vector<1x8xi32>
    %568 = vector.broadcast %cst_16 : f32 to vector<1x8xf32>
    %569 = arith.select %567, %565, %568 : vector<1x8xi1>, vector<1x8xf32>
    %cst_169 = arith.constant 0.000000e+00 : f32
    %570 = vector.broadcast %cst_169 : f32 to vector<1x8xf32>
    %cst_170 = arith.constant dense<0xFF800000> : vector<1xf32>
    %571 = vector.multi_reduction <maximumf>, %569, %cst_170 [1] : vector<1x8xf32> to vector<1xf32>
    %572 = vector.shape_cast %571 : vector<1xf32> to vector<1x1xf32>
    %573 = vector.broadcast %572 : vector<1x1xf32> to vector<1x8xf32>
    %574 = arith.cmpf oeq, %569, %573 : vector<1x8xf32>
    %cst_171 = arith.constant 8.000000e+00 : f32
    %575 = vector.broadcast %cst_171 : f32 to vector<1x8xf32>
    %576 = arith.select %574, %3, %575 : vector<1x8xi1>, vector<1x8xf32>
    %cst_172 = arith.constant dense<0x7F800000> : vector<1xf32>
    %577 = vector.multi_reduction <minimumf>, %576, %cst_172 [1] : vector<1x8xf32> to vector<1xf32>
    %578 = vector.shape_cast %577 : vector<1xf32> to vector<1x1xf32>
    %579 = vector.broadcast %578 : vector<1x1xf32> to vector<1x8xf32>
    %580 = arith.cmpf oeq, %3, %579 : vector<1x8xf32>
    %581 = vector.broadcast %cst_16 : f32 to vector<1x8xf32>
    %582 = arith.select %580, %581, %569 : vector<1x8xi1>, vector<1x8xf32>
    %cst_173 = arith.constant 1.000000e+00 : f32
    %583 = vector.broadcast %cst_173 : f32 to vector<1x8xf32>
    %584 = arith.select %580, %583, %570 : vector<1x8xi1>, vector<1x8xf32>
    %cst_174 = arith.constant dense<0xFF800000> : vector<1xf32>
    %585 = vector.multi_reduction <maximumf>, %582, %cst_174 [1] : vector<1x8xf32> to vector<1xf32>
    %586 = vector.shape_cast %585 : vector<1xf32> to vector<1x1xf32>
    %587 = vector.broadcast %586 : vector<1x1xf32> to vector<1x8xf32>
    %588 = arith.cmpf oeq, %582, %587 : vector<1x8xf32>
    %cst_175 = arith.constant 8.000000e+00 : f32
    %589 = vector.broadcast %cst_175 : f32 to vector<1x8xf32>
    %590 = arith.select %588, %3, %589 : vector<1x8xi1>, vector<1x8xf32>
    %cst_176 = arith.constant dense<0x7F800000> : vector<1xf32>
    %591 = vector.multi_reduction <minimumf>, %590, %cst_176 [1] : vector<1x8xf32> to vector<1xf32>
    %592 = vector.shape_cast %591 : vector<1xf32> to vector<1x1xf32>
    %593 = vector.broadcast %592 : vector<1x1xf32> to vector<1x8xf32>
    %594 = arith.cmpf oeq, %3, %593 : vector<1x8xf32>
    %595 = vector.broadcast %cst_16 : f32 to vector<1x8xf32>
    %596 = arith.select %594, %595, %582 : vector<1x8xi1>, vector<1x8xf32>
    %cst_177 = arith.constant 1.000000e+00 : f32
    %597 = vector.broadcast %cst_177 : f32 to vector<1x8xf32>
    %598 = arith.select %594, %597, %584 : vector<1x8xi1>, vector<1x8xf32>
    %cst_178 = arith.constant dense<0xFF800000> : vector<1xf32>
    %599 = vector.multi_reduction <maximumf>, %596, %cst_178 [1] : vector<1x8xf32> to vector<1xf32>
    %600 = vector.shape_cast %599 : vector<1xf32> to vector<1x1xf32>
    %601 = vector.broadcast %600 : vector<1x1xf32> to vector<1x8xf32>
    %602 = arith.cmpf oeq, %596, %601 : vector<1x8xf32>
    %cst_179 = arith.constant 8.000000e+00 : f32
    %603 = vector.broadcast %cst_179 : f32 to vector<1x8xf32>
    %604 = arith.select %602, %3, %603 : vector<1x8xi1>, vector<1x8xf32>
    %cst_180 = arith.constant dense<0x7F800000> : vector<1xf32>
    %605 = vector.multi_reduction <minimumf>, %604, %cst_180 [1] : vector<1x8xf32> to vector<1xf32>
    %606 = vector.shape_cast %605 : vector<1xf32> to vector<1x1xf32>
    %607 = vector.broadcast %606 : vector<1x1xf32> to vector<1x8xf32>
    %608 = arith.cmpf oeq, %3, %607 : vector<1x8xf32>
    %609 = vector.broadcast %cst_16 : f32 to vector<1x8xf32>
    %610 = arith.select %608, %609, %596 : vector<1x8xi1>, vector<1x8xf32>
    %cst_181 = arith.constant 1.000000e+00 : f32
    %611 = vector.broadcast %cst_181 : f32 to vector<1x8xf32>
    %612 = arith.select %608, %611, %598 : vector<1x8xi1>, vector<1x8xf32>
    %cst_182 = arith.constant dense<0xFF800000> : vector<1xf32>
    %613 = vector.multi_reduction <maximumf>, %610, %cst_182 [1] : vector<1x8xf32> to vector<1xf32>
    %614 = vector.shape_cast %613 : vector<1xf32> to vector<1x1xf32>
    %615 = vector.broadcast %614 : vector<1x1xf32> to vector<1x8xf32>
    %616 = arith.cmpf oeq, %610, %615 : vector<1x8xf32>
    %cst_183 = arith.constant 8.000000e+00 : f32
    %617 = vector.broadcast %cst_183 : f32 to vector<1x8xf32>
    %618 = arith.select %616, %3, %617 : vector<1x8xi1>, vector<1x8xf32>
    %cst_184 = arith.constant dense<0x7F800000> : vector<1xf32>
    %619 = vector.multi_reduction <minimumf>, %618, %cst_184 [1] : vector<1x8xf32> to vector<1xf32>
    %620 = vector.shape_cast %619 : vector<1xf32> to vector<1x1xf32>
    %621 = vector.broadcast %620 : vector<1x1xf32> to vector<1x8xf32>
    %622 = arith.cmpf oeq, %3, %621 : vector<1x8xf32>
    %cst_185 = arith.constant 1.000000e+00 : f32
    %623 = vector.broadcast %cst_185 : f32 to vector<1x8xf32>
    %624 = arith.select %622, %623, %612 : vector<1x8xi1>, vector<1x8xf32>
    %cst_186 = arith.constant 0.000000e+00 : f32
    %625 = vector.broadcast %cst_186 : f32 to vector<1x8xf32>
    %626 = arith.cmpf ogt, %624, %625 : vector<1x8xf32>
    %627 = vector.broadcast %cst_16 : f32 to vector<1x8xf32>
    %628 = arith.select %626, %569, %627 : vector<1x8xi1>, vector<1x8xf32>
    %cst_187 = arith.constant dense<0xFF800000> : vector<1xf32>
    %629 = vector.multi_reduction <maximumf>, %628, %cst_187 [1] : vector<1x8xf32> to vector<1xf32>
    %630 = vector.shape_cast %629 : vector<1xf32> to vector<1x1xf32>
    %631 = vector.broadcast %630 : vector<1x1xf32> to vector<1x8xf32>
    %632 = arith.subf %628, %631 : vector<1x8xf32>
    %633 = math.exp %632 : vector<1x8xf32>
    %cst_188 = arith.constant dense<0.000000e+00> : vector<1xf32>
    %634 = vector.multi_reduction <add>, %633, %cst_188 [1] : vector<1x8xf32> to vector<1xf32>
    %635 = vector.shape_cast %634 : vector<1xf32> to vector<1x1xf32>
    %636 = tpu.reciprocal %635 {approx = true} : vector<1x1xf32> -> vector<1x1xf32>
    %637 = arith.mulf %635, %636 : vector<1x1xf32>
    %cst_189 = arith.constant 2.000000e+00 : f32
    %638 = vector.broadcast %cst_189 : f32 to vector<1x1xf32>
    %639 = arith.subf %638, %637 : vector<1x1xf32>
    %640 = arith.mulf %636, %639 : vector<1x1xf32>
    %641 = vector.broadcast %640 : vector<1x1xf32> to vector<1x8xf32>
    %642 = arith.mulf %633, %641 : vector<1x8xf32>
    %cst_190 = arith.constant dense<0.000000e+00> : vector<1x128xf32>
    %643 = tpu.matmul %642, %9, %cst_190 {dimension_numbers = #tpu.dot_dimension_numbers<[1], [0], [0], [1], [0, 0, 1, 1], [], []>} : vector<1x8xf32>, vector<8x128xf32>, vector<1x128xf32> -> vector<1x128xf32>
    %644 = arith.index_cast %c4_i32 : i32 to index
    %c0_191 = arith.constant 0 : index
    %645 = vector.load %arg3[%644, %c0_191] : memref<8x128xf32, #tpu.memory_space<vmem>>, vector<1x128xf32>
    %646 = arith.mulf %643, %645 : vector<1x128xf32>
    %c0_192 = arith.constant 0 : index
    %c0_193 = arith.constant 0 : index
    %647 = vector.load %arg15[%c0_192, %c0_193] : memref<128x32xf32, #tpu.memory_space<vmem>>, vector<128x32xf32>
    %cst_194 = arith.constant dense<0.000000e+00> : vector<1x32xf32>
    %648 = tpu.matmul %646, %647, %cst_194 {dimension_numbers = #tpu.dot_dimension_numbers<[1], [0], [0], [1], [0, 0, 1, 1], [], []>} : vector<1x128xf32>, vector<128x32xf32>, vector<1x32xf32> -> vector<1x32xf32>
    %649 = arith.mulf %648, %8 : vector<1x32xf32>
    %cst_195 = arith.constant dense<0.000000e+00> : vector<1xf32>
    %650 = vector.multi_reduction <add>, %649, %cst_195 [1] : vector<1x32xf32> to vector<1xf32>
    %651 = vector.shape_cast %650 : vector<1xf32> to vector<1x1xf32>
    %652 = vector.broadcast %c4_i32 : i32 to vector<1x8xi32>
    %653 = arith.cmpi eq, %2, %652 : vector<1x8xi32>
    %cst_196 = arith.constant 0.000000e+00 : f32
    %654 = vector.shape_cast %651 : vector<1x1xf32> to vector<1x1xf32>
    %655 = vector.broadcast %654 : vector<1x1xf32> to vector<1x8xf32>
    %656 = vector.broadcast %cst_196 : f32 to vector<1x8xf32>
    %657 = arith.select %653, %655, %656 : vector<1x8xi1>, vector<1x8xf32>
    %658 = arith.addf %520, %657 : vector<1x8xf32>
    %c16_i32_197 = arith.constant 16 : i32
    %659 = arith.muli %c4_i32, %c16_i32_197 : i32
    %660 = tpu.assume_multiple %659, 16 : i32
    %661 = arith.index_cast %660 : i32 to index
    %c0_198 = arith.constant 0 : index
    %662 = vector.load %arg4[%661, %c0_198] : memref<128x1xf32, #tpu.memory_space<vmem>>, vector<16x1xf32>
    %663 = arith.index_cast %c4_i32 : i32 to index
    %c0_199 = arith.constant 0 : index
    %664 = vector.load %arg1[%663, %c0_199] : memref<8x33xf32, #tpu.memory_space<vmem>>, vector<1x33xf32>
    %cst_200 = arith.constant dense<0.000000e+00> : vector<1x96xf32>
    %665 = tpu.matmul %664, %4, %cst_200 {dimension_numbers = #tpu.dot_dimension_numbers<[1], [0], [0], [1], [0, 0, 1, 1], [], []>} : vector<1x33xf32>, vector<33x96xf32>, vector<1x96xf32> -> vector<1x96xf32>
    %666 = vector.broadcast %662 : vector<16x1xf32> to vector<16x96xf32>
    %667 = vector.broadcast %665 : vector<1x96xf32> to vector<16x96xf32>
    %668 = arith.mulf %666, %667 : vector<16x96xf32>
    %669 = vector.broadcast %5 : vector<1x96xf32> to vector<16x96xf32>
    %670 = arith.addf %668, %669 : vector<16x96xf32>
    %cst_201 = arith.constant dense<0.000000e+00> : vector<16x96xf32>
    %671 = tpu.matmul %561, %6, %cst_201 {dimension_numbers = #tpu.dot_dimension_numbers<[1], [0], [0], [1], [0, 0, 1, 1], [], []>} : vector<16x32xf32>, vector<32x96xf32>, vector<16x96xf32> -> vector<16x96xf32>
    %672 = vector.broadcast %7 : vector<1x96xf32> to vector<16x96xf32>
    %673 = arith.addf %671, %672 : vector<16x96xf32>
    %674 = vector.extract_strided_slice %670 {offsets = [0, 0], sizes = [16, 32], strides = [1, 1]} : vector<16x96xf32> to vector<16x32xf32>
    %675 = vector.extract_strided_slice %673 {offsets = [0, 0], sizes = [16, 32], strides = [1, 1]} : vector<16x96xf32> to vector<16x32xf32>
    %676 = arith.addf %674, %675 : vector<16x32xf32>
    %677 = arith.negf %676 : vector<16x32xf32>
    %678 = math.exp %677 : vector<16x32xf32>
    %cst_202 = arith.constant 1.000000e+00 : f32
    %679 = vector.broadcast %cst_202 : f32 to vector<16x32xf32>
    %680 = arith.addf %679, %678 : vector<16x32xf32>
    %681 = arith.divf %679, %680 : vector<16x32xf32>
    %682 = vector.extract_strided_slice %670 {offsets = [0, 32], sizes = [16, 32], strides = [1, 1]} : vector<16x96xf32> to vector<16x32xf32>
    %683 = vector.extract_strided_slice %673 {offsets = [0, 32], sizes = [16, 32], strides = [1, 1]} : vector<16x96xf32> to vector<16x32xf32>
    %684 = arith.addf %682, %683 : vector<16x32xf32>
    %685 = arith.negf %684 : vector<16x32xf32>
    %686 = math.exp %685 : vector<16x32xf32>
    %cst_203 = arith.constant 1.000000e+00 : f32
    %687 = vector.broadcast %cst_203 : f32 to vector<16x32xf32>
    %688 = arith.addf %687, %686 : vector<16x32xf32>
    %689 = arith.divf %687, %688 : vector<16x32xf32>
    %690 = vector.extract_strided_slice %670 {offsets = [0, 64], sizes = [16, 32], strides = [1, 1]} : vector<16x96xf32> to vector<16x32xf32>
    %691 = vector.extract_strided_slice %673 {offsets = [0, 64], sizes = [16, 32], strides = [1, 1]} : vector<16x96xf32> to vector<16x32xf32>
    %692 = arith.mulf %681, %691 : vector<16x32xf32>
    %693 = arith.addf %690, %692 : vector<16x32xf32>
    %694 = math.tanh %693 : vector<16x32xf32>
    %cst_204 = arith.constant 1.000000e+00 : f32
    %695 = vector.broadcast %cst_204 : f32 to vector<16x32xf32>
    %696 = arith.subf %695, %689 : vector<16x32xf32>
    %697 = arith.mulf %696, %694 : vector<16x32xf32>
    %698 = arith.mulf %689, %561 : vector<16x32xf32>
    %699 = arith.addf %697, %698 : vector<16x32xf32>
    %700 = arith.index_cast %660 : i32 to index
    %c0_205 = arith.constant 0 : index
    %701 = vector.load %arg15[%700, %c0_205] : memref<128x32xf32, #tpu.memory_space<vmem>>, vector<16x32xf32>
    tpu.vector_store %arg15[%700, %c0_205], %699 {strides = array<i32>} : memref<128x32xf32, #tpu.memory_space<vmem>>, vector<16x32xf32>,
    %c5_i32 = arith.constant 5 : i32
    %702 = arith.index_cast %c5_i32 : i32 to index
    %c0_206 = arith.constant 0 : index
    %703 = vector.load %arg2[%702, %c0_206] : memref<8x8xf32, #tpu.memory_space<vmem>>, vector<1x8xf32>
    %704 = vector.broadcast %c5_i32 : i32 to vector<1x8xi32>
    %705 = arith.cmpi slt, %2, %704 : vector<1x8xi32>
    %706 = vector.broadcast %cst_16 : f32 to vector<1x8xf32>
    %707 = arith.select %705, %703, %706 : vector<1x8xi1>, vector<1x8xf32>
    %cst_207 = arith.constant 0.000000e+00 : f32
    %708 = vector.broadcast %cst_207 : f32 to vector<1x8xf32>
    %cst_208 = arith.constant dense<0xFF800000> : vector<1xf32>
    %709 = vector.multi_reduction <maximumf>, %707, %cst_208 [1] : vector<1x8xf32> to vector<1xf32>
    %710 = vector.shape_cast %709 : vector<1xf32> to vector<1x1xf32>
    %711 = vector.broadcast %710 : vector<1x1xf32> to vector<1x8xf32>
    %712 = arith.cmpf oeq, %707, %711 : vector<1x8xf32>
    %cst_209 = arith.constant 8.000000e+00 : f32
    %713 = vector.broadcast %cst_209 : f32 to vector<1x8xf32>
    %714 = arith.select %712, %3, %713 : vector<1x8xi1>, vector<1x8xf32>
    %cst_210 = arith.constant dense<0x7F800000> : vector<1xf32>
    %715 = vector.multi_reduction <minimumf>, %714, %cst_210 [1] : vector<1x8xf32> to vector<1xf32>
    %716 = vector.shape_cast %715 : vector<1xf32> to vector<1x1xf32>
    %717 = vector.broadcast %716 : vector<1x1xf32> to vector<1x8xf32>
    %718 = arith.cmpf oeq, %3, %717 : vector<1x8xf32>
    %719 = vector.broadcast %cst_16 : f32 to vector<1x8xf32>
    %720 = arith.select %718, %719, %707 : vector<1x8xi1>, vector<1x8xf32>
    %cst_211 = arith.constant 1.000000e+00 : f32
    %721 = vector.broadcast %cst_211 : f32 to vector<1x8xf32>
    %722 = arith.select %718, %721, %708 : vector<1x8xi1>, vector<1x8xf32>
    %cst_212 = arith.constant dense<0xFF800000> : vector<1xf32>
    %723 = vector.multi_reduction <maximumf>, %720, %cst_212 [1] : vector<1x8xf32> to vector<1xf32>
    %724 = vector.shape_cast %723 : vector<1xf32> to vector<1x1xf32>
    %725 = vector.broadcast %724 : vector<1x1xf32> to vector<1x8xf32>
    %726 = arith.cmpf oeq, %720, %725 : vector<1x8xf32>
    %cst_213 = arith.constant 8.000000e+00 : f32
    %727 = vector.broadcast %cst_213 : f32 to vector<1x8xf32>
    %728 = arith.select %726, %3, %727 : vector<1x8xi1>, vector<1x8xf32>
    %cst_214 = arith.constant dense<0x7F800000> : vector<1xf32>
    %729 = vector.multi_reduction <minimumf>, %728, %cst_214 [1] : vector<1x8xf32> to vector<1xf32>
    %730 = vector.shape_cast %729 : vector<1xf32> to vector<1x1xf32>
    %731 = vector.broadcast %730 : vector<1x1xf32> to vector<1x8xf32>
    %732 = arith.cmpf oeq, %3, %731 : vector<1x8xf32>
    %733 = vector.broadcast %cst_16 : f32 to vector<1x8xf32>
    %734 = arith.select %732, %733, %720 : vector<1x8xi1>, vector<1x8xf32>
    %cst_215 = arith.constant 1.000000e+00 : f32
    %735 = vector.broadcast %cst_215 : f32 to vector<1x8xf32>
    %736 = arith.select %732, %735, %722 : vector<1x8xi1>, vector<1x8xf32>
    %cst_216 = arith.constant dense<0xFF800000> : vector<1xf32>
    %737 = vector.multi_reduction <maximumf>, %734, %cst_216 [1] : vector<1x8xf32> to vector<1xf32>
    %738 = vector.shape_cast %737 : vector<1xf32> to vector<1x1xf32>
    %739 = vector.broadcast %738 : vector<1x1xf32> to vector<1x8xf32>
    %740 = arith.cmpf oeq, %734, %739 : vector<1x8xf32>
    %cst_217 = arith.constant 8.000000e+00 : f32
    %741 = vector.broadcast %cst_217 : f32 to vector<1x8xf32>
    %742 = arith.select %740, %3, %741 : vector<1x8xi1>, vector<1x8xf32>
    %cst_218 = arith.constant dense<0x7F800000> : vector<1xf32>
    %743 = vector.multi_reduction <minimumf>, %742, %cst_218 [1] : vector<1x8xf32> to vector<1xf32>
    %744 = vector.shape_cast %743 : vector<1xf32> to vector<1x1xf32>
    %745 = vector.broadcast %744 : vector<1x1xf32> to vector<1x8xf32>
    %746 = arith.cmpf oeq, %3, %745 : vector<1x8xf32>
    %747 = vector.broadcast %cst_16 : f32 to vector<1x8xf32>
    %748 = arith.select %746, %747, %734 : vector<1x8xi1>, vector<1x8xf32>
    %cst_219 = arith.constant 1.000000e+00 : f32
    %749 = vector.broadcast %cst_219 : f32 to vector<1x8xf32>
    %750 = arith.select %746, %749, %736 : vector<1x8xi1>, vector<1x8xf32>
    %cst_220 = arith.constant dense<0xFF800000> : vector<1xf32>
    %751 = vector.multi_reduction <maximumf>, %748, %cst_220 [1] : vector<1x8xf32> to vector<1xf32>
    %752 = vector.shape_cast %751 : vector<1xf32> to vector<1x1xf32>
    %753 = vector.broadcast %752 : vector<1x1xf32> to vector<1x8xf32>
    %754 = arith.cmpf oeq, %748, %753 : vector<1x8xf32>
    %cst_221 = arith.constant 8.000000e+00 : f32
    %755 = vector.broadcast %cst_221 : f32 to vector<1x8xf32>
    %756 = arith.select %754, %3, %755 : vector<1x8xi1>, vector<1x8xf32>
    %cst_222 = arith.constant dense<0x7F800000> : vector<1xf32>
    %757 = vector.multi_reduction <minimumf>, %756, %cst_222 [1] : vector<1x8xf32> to vector<1xf32>
    %758 = vector.shape_cast %757 : vector<1xf32> to vector<1x1xf32>
    %759 = vector.broadcast %758 : vector<1x1xf32> to vector<1x8xf32>
    %760 = arith.cmpf oeq, %3, %759 : vector<1x8xf32>
    %cst_223 = arith.constant 1.000000e+00 : f32
    %761 = vector.broadcast %cst_223 : f32 to vector<1x8xf32>
    %762 = arith.select %760, %761, %750 : vector<1x8xi1>, vector<1x8xf32>
    %cst_224 = arith.constant 0.000000e+00 : f32
    %763 = vector.broadcast %cst_224 : f32 to vector<1x8xf32>
    %764 = arith.cmpf ogt, %762, %763 : vector<1x8xf32>
    %765 = vector.broadcast %cst_16 : f32 to vector<1x8xf32>
    %766 = arith.select %764, %707, %765 : vector<1x8xi1>, vector<1x8xf32>
    %cst_225 = arith.constant dense<0xFF800000> : vector<1xf32>
    %767 = vector.multi_reduction <maximumf>, %766, %cst_225 [1] : vector<1x8xf32> to vector<1xf32>
    %768 = vector.shape_cast %767 : vector<1xf32> to vector<1x1xf32>
    %769 = vector.broadcast %768 : vector<1x1xf32> to vector<1x8xf32>
    %770 = arith.subf %766, %769 : vector<1x8xf32>
    %771 = math.exp %770 : vector<1x8xf32>
    %cst_226 = arith.constant dense<0.000000e+00> : vector<1xf32>
    %772 = vector.multi_reduction <add>, %771, %cst_226 [1] : vector<1x8xf32> to vector<1xf32>
    %773 = vector.shape_cast %772 : vector<1xf32> to vector<1x1xf32>
    %774 = tpu.reciprocal %773 {approx = true} : vector<1x1xf32> -> vector<1x1xf32>
    %775 = arith.mulf %773, %774 : vector<1x1xf32>
    %cst_227 = arith.constant 2.000000e+00 : f32
    %776 = vector.broadcast %cst_227 : f32 to vector<1x1xf32>
    %777 = arith.subf %776, %775 : vector<1x1xf32>
    %778 = arith.mulf %774, %777 : vector<1x1xf32>
    %779 = vector.broadcast %778 : vector<1x1xf32> to vector<1x8xf32>
    %780 = arith.mulf %771, %779 : vector<1x8xf32>
    %cst_228 = arith.constant dense<0.000000e+00> : vector<1x128xf32>
    %781 = tpu.matmul %780, %9, %cst_228 {dimension_numbers = #tpu.dot_dimension_numbers<[1], [0], [0], [1], [0, 0, 1, 1], [], []>} : vector<1x8xf32>, vector<8x128xf32>, vector<1x128xf32> -> vector<1x128xf32>
    %782 = arith.index_cast %c5_i32 : i32 to index
    %c0_229 = arith.constant 0 : index
    %783 = vector.load %arg3[%782, %c0_229] : memref<8x128xf32, #tpu.memory_space<vmem>>, vector<1x128xf32>
    %784 = arith.mulf %781, %783 : vector<1x128xf32>
    %c0_230 = arith.constant 0 : index
    %c0_231 = arith.constant 0 : index
    %785 = vector.load %arg15[%c0_230, %c0_231] : memref<128x32xf32, #tpu.memory_space<vmem>>, vector<128x32xf32>
    %cst_232 = arith.constant dense<0.000000e+00> : vector<1x32xf32>
    %786 = tpu.matmul %784, %785, %cst_232 {dimension_numbers = #tpu.dot_dimension_numbers<[1], [0], [0], [1], [0, 0, 1, 1], [], []>} : vector<1x128xf32>, vector<128x32xf32>, vector<1x32xf32> -> vector<1x32xf32>
    %787 = arith.mulf %786, %8 : vector<1x32xf32>
    %cst_233 = arith.constant dense<0.000000e+00> : vector<1xf32>
    %788 = vector.multi_reduction <add>, %787, %cst_233 [1] : vector<1x32xf32> to vector<1xf32>
    %789 = vector.shape_cast %788 : vector<1xf32> to vector<1x1xf32>
    %790 = vector.broadcast %c5_i32 : i32 to vector<1x8xi32>
    %791 = arith.cmpi eq, %2, %790 : vector<1x8xi32>
    %cst_234 = arith.constant 0.000000e+00 : f32
    %792 = vector.shape_cast %789 : vector<1x1xf32> to vector<1x1xf32>
    %793 = vector.broadcast %792 : vector<1x1xf32> to vector<1x8xf32>
    %794 = vector.broadcast %cst_234 : f32 to vector<1x8xf32>
    %795 = arith.select %791, %793, %794 : vector<1x8xi1>, vector<1x8xf32>
    %796 = arith.addf %658, %795 : vector<1x8xf32>
    %c16_i32_235 = arith.constant 16 : i32
    %797 = arith.muli %c5_i32, %c16_i32_235 : i32
    %798 = tpu.assume_multiple %797, 16 : i32
    %799 = arith.index_cast %798 : i32 to index
    %c0_236 = arith.constant 0 : index
    %800 = vector.load %arg4[%799, %c0_236] : memref<128x1xf32, #tpu.memory_space<vmem>>, vector<16x1xf32>
    %801 = arith.index_cast %c5_i32 : i32 to index
    %c0_237 = arith.constant 0 : index
    %802 = vector.load %arg1[%801, %c0_237] : memref<8x33xf32, #tpu.memory_space<vmem>>, vector<1x33xf32>
    %cst_238 = arith.constant dense<0.000000e+00> : vector<1x96xf32>
    %803 = tpu.matmul %802, %4, %cst_238 {dimension_numbers = #tpu.dot_dimension_numbers<[1], [0], [0], [1], [0, 0, 1, 1], [], []>} : vector<1x33xf32>, vector<33x96xf32>, vector<1x96xf32> -> vector<1x96xf32>
    %804 = vector.broadcast %800 : vector<16x1xf32> to vector<16x96xf32>
    %805 = vector.broadcast %803 : vector<1x96xf32> to vector<16x96xf32>
    %806 = arith.mulf %804, %805 : vector<16x96xf32>
    %807 = vector.broadcast %5 : vector<1x96xf32> to vector<16x96xf32>
    %808 = arith.addf %806, %807 : vector<16x96xf32>
    %cst_239 = arith.constant dense<0.000000e+00> : vector<16x96xf32>
    %809 = tpu.matmul %699, %6, %cst_239 {dimension_numbers = #tpu.dot_dimension_numbers<[1], [0], [0], [1], [0, 0, 1, 1], [], []>} : vector<16x32xf32>, vector<32x96xf32>, vector<16x96xf32> -> vector<16x96xf32>
    %810 = vector.broadcast %7 : vector<1x96xf32> to vector<16x96xf32>
    %811 = arith.addf %809, %810 : vector<16x96xf32>
    %812 = vector.extract_strided_slice %808 {offsets = [0, 0], sizes = [16, 32], strides = [1, 1]} : vector<16x96xf32> to vector<16x32xf32>
    %813 = vector.extract_strided_slice %811 {offsets = [0, 0], sizes = [16, 32], strides = [1, 1]} : vector<16x96xf32> to vector<16x32xf32>
    %814 = arith.addf %812, %813 : vector<16x32xf32>
    %815 = arith.negf %814 : vector<16x32xf32>
    %816 = math.exp %815 : vector<16x32xf32>
    %cst_240 = arith.constant 1.000000e+00 : f32
    %817 = vector.broadcast %cst_240 : f32 to vector<16x32xf32>
    %818 = arith.addf %817, %816 : vector<16x32xf32>
    %819 = arith.divf %817, %818 : vector<16x32xf32>
    %820 = vector.extract_strided_slice %808 {offsets = [0, 32], sizes = [16, 32], strides = [1, 1]} : vector<16x96xf32> to vector<16x32xf32>
    %821 = vector.extract_strided_slice %811 {offsets = [0, 32], sizes = [16, 32], strides = [1, 1]} : vector<16x96xf32> to vector<16x32xf32>
    %822 = arith.addf %820, %821 : vector<16x32xf32>
    %823 = arith.negf %822 : vector<16x32xf32>
    %824 = math.exp %823 : vector<16x32xf32>
    %cst_241 = arith.constant 1.000000e+00 : f32
    %825 = vector.broadcast %cst_241 : f32 to vector<16x32xf32>
    %826 = arith.addf %825, %824 : vector<16x32xf32>
    %827 = arith.divf %825, %826 : vector<16x32xf32>
    %828 = vector.extract_strided_slice %808 {offsets = [0, 64], sizes = [16, 32], strides = [1, 1]} : vector<16x96xf32> to vector<16x32xf32>
    %829 = vector.extract_strided_slice %811 {offsets = [0, 64], sizes = [16, 32], strides = [1, 1]} : vector<16x96xf32> to vector<16x32xf32>
    %830 = arith.mulf %819, %829 : vector<16x32xf32>
    %831 = arith.addf %828, %830 : vector<16x32xf32>
    %832 = math.tanh %831 : vector<16x32xf32>
    %cst_242 = arith.constant 1.000000e+00 : f32
    %833 = vector.broadcast %cst_242 : f32 to vector<16x32xf32>
    %834 = arith.subf %833, %827 : vector<16x32xf32>
    %835 = arith.mulf %834, %832 : vector<16x32xf32>
    %836 = arith.mulf %827, %699 : vector<16x32xf32>
    %837 = arith.addf %835, %836 : vector<16x32xf32>
    %838 = arith.index_cast %798 : i32 to index
    %c0_243 = arith.constant 0 : index
    %839 = vector.load %arg15[%838, %c0_243] : memref<128x32xf32, #tpu.memory_space<vmem>>, vector<16x32xf32>
    tpu.vector_store %arg15[%838, %c0_243], %837 {strides = array<i32>} : memref<128x32xf32, #tpu.memory_space<vmem>>, vector<16x32xf32>,
    %c6_i32 = arith.constant 6 : i32
    %840 = arith.index_cast %c6_i32 : i32 to index
    %c0_244 = arith.constant 0 : index
    %841 = vector.load %arg2[%840, %c0_244] : memref<8x8xf32, #tpu.memory_space<vmem>>, vector<1x8xf32>
    %842 = vector.broadcast %c6_i32 : i32 to vector<1x8xi32>
    %843 = arith.cmpi slt, %2, %842 : vector<1x8xi32>
    %844 = vector.broadcast %cst_16 : f32 to vector<1x8xf32>
    %845 = arith.select %843, %841, %844 : vector<1x8xi1>, vector<1x8xf32>
    %cst_245 = arith.constant 0.000000e+00 : f32
    %846 = vector.broadcast %cst_245 : f32 to vector<1x8xf32>
    %cst_246 = arith.constant dense<0xFF800000> : vector<1xf32>
    %847 = vector.multi_reduction <maximumf>, %845, %cst_246 [1] : vector<1x8xf32> to vector<1xf32>
    %848 = vector.shape_cast %847 : vector<1xf32> to vector<1x1xf32>
    %849 = vector.broadcast %848 : vector<1x1xf32> to vector<1x8xf32>
    %850 = arith.cmpf oeq, %845, %849 : vector<1x8xf32>
    %cst_247 = arith.constant 8.000000e+00 : f32
    %851 = vector.broadcast %cst_247 : f32 to vector<1x8xf32>
    %852 = arith.select %850, %3, %851 : vector<1x8xi1>, vector<1x8xf32>
    %cst_248 = arith.constant dense<0x7F800000> : vector<1xf32>
    %853 = vector.multi_reduction <minimumf>, %852, %cst_248 [1] : vector<1x8xf32> to vector<1xf32>
    %854 = vector.shape_cast %853 : vector<1xf32> to vector<1x1xf32>
    %855 = vector.broadcast %854 : vector<1x1xf32> to vector<1x8xf32>
    %856 = arith.cmpf oeq, %3, %855 : vector<1x8xf32>
    %857 = vector.broadcast %cst_16 : f32 to vector<1x8xf32>
    %858 = arith.select %856, %857, %845 : vector<1x8xi1>, vector<1x8xf32>
    %cst_249 = arith.constant 1.000000e+00 : f32
    %859 = vector.broadcast %cst_249 : f32 to vector<1x8xf32>
    %860 = arith.select %856, %859, %846 : vector<1x8xi1>, vector<1x8xf32>
    %cst_250 = arith.constant dense<0xFF800000> : vector<1xf32>
    %861 = vector.multi_reduction <maximumf>, %858, %cst_250 [1] : vector<1x8xf32> to vector<1xf32>
    %862 = vector.shape_cast %861 : vector<1xf32> to vector<1x1xf32>
    %863 = vector.broadcast %862 : vector<1x1xf32> to vector<1x8xf32>
    %864 = arith.cmpf oeq, %858, %863 : vector<1x8xf32>
    %cst_251 = arith.constant 8.000000e+00 : f32
    %865 = vector.broadcast %cst_251 : f32 to vector<1x8xf32>
    %866 = arith.select %864, %3, %865 : vector<1x8xi1>, vector<1x8xf32>
    %cst_252 = arith.constant dense<0x7F800000> : vector<1xf32>
    %867 = vector.multi_reduction <minimumf>, %866, %cst_252 [1] : vector<1x8xf32> to vector<1xf32>
    %868 = vector.shape_cast %867 : vector<1xf32> to vector<1x1xf32>
    %869 = vector.broadcast %868 : vector<1x1xf32> to vector<1x8xf32>
    %870 = arith.cmpf oeq, %3, %869 : vector<1x8xf32>
    %871 = vector.broadcast %cst_16 : f32 to vector<1x8xf32>
    %872 = arith.select %870, %871, %858 : vector<1x8xi1>, vector<1x8xf32>
    %cst_253 = arith.constant 1.000000e+00 : f32
    %873 = vector.broadcast %cst_253 : f32 to vector<1x8xf32>
    %874 = arith.select %870, %873, %860 : vector<1x8xi1>, vector<1x8xf32>
    %cst_254 = arith.constant dense<0xFF800000> : vector<1xf32>
    %875 = vector.multi_reduction <maximumf>, %872, %cst_254 [1] : vector<1x8xf32> to vector<1xf32>
    %876 = vector.shape_cast %875 : vector<1xf32> to vector<1x1xf32>
    %877 = vector.broadcast %876 : vector<1x1xf32> to vector<1x8xf32>
    %878 = arith.cmpf oeq, %872, %877 : vector<1x8xf32>
    %cst_255 = arith.constant 8.000000e+00 : f32
    %879 = vector.broadcast %cst_255 : f32 to vector<1x8xf32>
    %880 = arith.select %878, %3, %879 : vector<1x8xi1>, vector<1x8xf32>
    %cst_256 = arith.constant dense<0x7F800000> : vector<1xf32>
    %881 = vector.multi_reduction <minimumf>, %880, %cst_256 [1] : vector<1x8xf32> to vector<1xf32>
    %882 = vector.shape_cast %881 : vector<1xf32> to vector<1x1xf32>
    %883 = vector.broadcast %882 : vector<1x1xf32> to vector<1x8xf32>
    %884 = arith.cmpf oeq, %3, %883 : vector<1x8xf32>
    %885 = vector.broadcast %cst_16 : f32 to vector<1x8xf32>
    %886 = arith.select %884, %885, %872 : vector<1x8xi1>, vector<1x8xf32>
    %cst_257 = arith.constant 1.000000e+00 : f32
    %887 = vector.broadcast %cst_257 : f32 to vector<1x8xf32>
    %888 = arith.select %884, %887, %874 : vector<1x8xi1>, vector<1x8xf32>
    %cst_258 = arith.constant dense<0xFF800000> : vector<1xf32>
    %889 = vector.multi_reduction <maximumf>, %886, %cst_258 [1] : vector<1x8xf32> to vector<1xf32>
    %890 = vector.shape_cast %889 : vector<1xf32> to vector<1x1xf32>
    %891 = vector.broadcast %890 : vector<1x1xf32> to vector<1x8xf32>
    %892 = arith.cmpf oeq, %886, %891 : vector<1x8xf32>
    %cst_259 = arith.constant 8.000000e+00 : f32
    %893 = vector.broadcast %cst_259 : f32 to vector<1x8xf32>
    %894 = arith.select %892, %3, %893 : vector<1x8xi1>, vector<1x8xf32>
    %cst_260 = arith.constant dense<0x7F800000> : vector<1xf32>
    %895 = vector.multi_reduction <minimumf>, %894, %cst_260 [1] : vector<1x8xf32> to vector<1xf32>
    %896 = vector.shape_cast %895 : vector<1xf32> to vector<1x1xf32>
    %897 = vector.broadcast %896 : vector<1x1xf32> to vector<1x8xf32>
    %898 = arith.cmpf oeq, %3, %897 : vector<1x8xf32>
    %cst_261 = arith.constant 1.000000e+00 : f32
    %899 = vector.broadcast %cst_261 : f32 to vector<1x8xf32>
    %900 = arith.select %898, %899, %888 : vector<1x8xi1>, vector<1x8xf32>
    %cst_262 = arith.constant 0.000000e+00 : f32
    %901 = vector.broadcast %cst_262 : f32 to vector<1x8xf32>
    %902 = arith.cmpf ogt, %900, %901 : vector<1x8xf32>
    %903 = vector.broadcast %cst_16 : f32 to vector<1x8xf32>
    %904 = arith.select %902, %845, %903 : vector<1x8xi1>, vector<1x8xf32>
    %cst_263 = arith.constant dense<0xFF800000> : vector<1xf32>
    %905 = vector.multi_reduction <maximumf>, %904, %cst_263 [1] : vector<1x8xf32> to vector<1xf32>
    %906 = vector.shape_cast %905 : vector<1xf32> to vector<1x1xf32>
    %907 = vector.broadcast %906 : vector<1x1xf32> to vector<1x8xf32>
    %908 = arith.subf %904, %907 : vector<1x8xf32>
    %909 = math.exp %908 : vector<1x8xf32>
    %cst_264 = arith.constant dense<0.000000e+00> : vector<1xf32>
    %910 = vector.multi_reduction <add>, %909, %cst_264 [1] : vector<1x8xf32> to vector<1xf32>
    %911 = vector.shape_cast %910 : vector<1xf32> to vector<1x1xf32>
    %912 = tpu.reciprocal %911 {approx = true} : vector<1x1xf32> -> vector<1x1xf32>
    %913 = arith.mulf %911, %912 : vector<1x1xf32>
    %cst_265 = arith.constant 2.000000e+00 : f32
    %914 = vector.broadcast %cst_265 : f32 to vector<1x1xf32>
    %915 = arith.subf %914, %913 : vector<1x1xf32>
    %916 = arith.mulf %912, %915 : vector<1x1xf32>
    %917 = vector.broadcast %916 : vector<1x1xf32> to vector<1x8xf32>
    %918 = arith.mulf %909, %917 : vector<1x8xf32>
    %cst_266 = arith.constant dense<0.000000e+00> : vector<1x128xf32>
    %919 = tpu.matmul %918, %9, %cst_266 {dimension_numbers = #tpu.dot_dimension_numbers<[1], [0], [0], [1], [0, 0, 1, 1], [], []>} : vector<1x8xf32>, vector<8x128xf32>, vector<1x128xf32> -> vector<1x128xf32>
    %920 = arith.index_cast %c6_i32 : i32 to index
    %c0_267 = arith.constant 0 : index
    %921 = vector.load %arg3[%920, %c0_267] : memref<8x128xf32, #tpu.memory_space<vmem>>, vector<1x128xf32>
    %922 = arith.mulf %919, %921 : vector<1x128xf32>
    %c0_268 = arith.constant 0 : index
    %c0_269 = arith.constant 0 : index
    %923 = vector.load %arg15[%c0_268, %c0_269] : memref<128x32xf32, #tpu.memory_space<vmem>>, vector<128x32xf32>
    %cst_270 = arith.constant dense<0.000000e+00> : vector<1x32xf32>
    %924 = tpu.matmul %922, %923, %cst_270 {dimension_numbers = #tpu.dot_dimension_numbers<[1], [0], [0], [1], [0, 0, 1, 1], [], []>} : vector<1x128xf32>, vector<128x32xf32>, vector<1x32xf32> -> vector<1x32xf32>
    %925 = arith.mulf %924, %8 : vector<1x32xf32>
    %cst_271 = arith.constant dense<0.000000e+00> : vector<1xf32>
    %926 = vector.multi_reduction <add>, %925, %cst_271 [1] : vector<1x32xf32> to vector<1xf32>
    %927 = vector.shape_cast %926 : vector<1xf32> to vector<1x1xf32>
    %928 = vector.broadcast %c6_i32 : i32 to vector<1x8xi32>
    %929 = arith.cmpi eq, %2, %928 : vector<1x8xi32>
    %cst_272 = arith.constant 0.000000e+00 : f32
    %930 = vector.shape_cast %927 : vector<1x1xf32> to vector<1x1xf32>
    %931 = vector.broadcast %930 : vector<1x1xf32> to vector<1x8xf32>
    %932 = vector.broadcast %cst_272 : f32 to vector<1x8xf32>
    %933 = arith.select %929, %931, %932 : vector<1x8xi1>, vector<1x8xf32>
    %934 = arith.addf %796, %933 : vector<1x8xf32>
    %c16_i32_273 = arith.constant 16 : i32
    %935 = arith.muli %c6_i32, %c16_i32_273 : i32
    %936 = tpu.assume_multiple %935, 16 : i32
    %937 = arith.index_cast %936 : i32 to index
    %c0_274 = arith.constant 0 : index
    %938 = vector.load %arg4[%937, %c0_274] : memref<128x1xf32, #tpu.memory_space<vmem>>, vector<16x1xf32>
    %939 = arith.index_cast %c6_i32 : i32 to index
    %c0_275 = arith.constant 0 : index
    %940 = vector.load %arg1[%939, %c0_275] : memref<8x33xf32, #tpu.memory_space<vmem>>, vector<1x33xf32>
    %cst_276 = arith.constant dense<0.000000e+00> : vector<1x96xf32>
    %941 = tpu.matmul %940, %4, %cst_276 {dimension_numbers = #tpu.dot_dimension_numbers<[1], [0], [0], [1], [0, 0, 1, 1], [], []>} : vector<1x33xf32>, vector<33x96xf32>, vector<1x96xf32> -> vector<1x96xf32>
    %942 = vector.broadcast %938 : vector<16x1xf32> to vector<16x96xf32>
    %943 = vector.broadcast %941 : vector<1x96xf32> to vector<16x96xf32>
    %944 = arith.mulf %942, %943 : vector<16x96xf32>
    %945 = vector.broadcast %5 : vector<1x96xf32> to vector<16x96xf32>
    %946 = arith.addf %944, %945 : vector<16x96xf32>
    %cst_277 = arith.constant dense<0.000000e+00> : vector<16x96xf32>
    %947 = tpu.matmul %837, %6, %cst_277 {dimension_numbers = #tpu.dot_dimension_numbers<[1], [0], [0], [1], [0, 0, 1, 1], [], []>} : vector<16x32xf32>, vector<32x96xf32>, vector<16x96xf32> -> vector<16x96xf32>
    %948 = vector.broadcast %7 : vector<1x96xf32> to vector<16x96xf32>
    %949 = arith.addf %947, %948 : vector<16x96xf32>
    %950 = vector.extract_strided_slice %946 {offsets = [0, 0], sizes = [16, 32], strides = [1, 1]} : vector<16x96xf32> to vector<16x32xf32>
    %951 = vector.extract_strided_slice %949 {offsets = [0, 0], sizes = [16, 32], strides = [1, 1]} : vector<16x96xf32> to vector<16x32xf32>
    %952 = arith.addf %950, %951 : vector<16x32xf32>
    %953 = arith.negf %952 : vector<16x32xf32>
    %954 = math.exp %953 : vector<16x32xf32>
    %cst_278 = arith.constant 1.000000e+00 : f32
    %955 = vector.broadcast %cst_278 : f32 to vector<16x32xf32>
    %956 = arith.addf %955, %954 : vector<16x32xf32>
    %957 = arith.divf %955, %956 : vector<16x32xf32>
    %958 = vector.extract_strided_slice %946 {offsets = [0, 32], sizes = [16, 32], strides = [1, 1]} : vector<16x96xf32> to vector<16x32xf32>
    %959 = vector.extract_strided_slice %949 {offsets = [0, 32], sizes = [16, 32], strides = [1, 1]} : vector<16x96xf32> to vector<16x32xf32>
    %960 = arith.addf %958, %959 : vector<16x32xf32>
    %961 = arith.negf %960 : vector<16x32xf32>
    %962 = math.exp %961 : vector<16x32xf32>
    %cst_279 = arith.constant 1.000000e+00 : f32
    %963 = vector.broadcast %cst_279 : f32 to vector<16x32xf32>
    %964 = arith.addf %963, %962 : vector<16x32xf32>
    %965 = arith.divf %963, %964 : vector<16x32xf32>
    %966 = vector.extract_strided_slice %946 {offsets = [0, 64], sizes = [16, 32], strides = [1, 1]} : vector<16x96xf32> to vector<16x32xf32>
    %967 = vector.extract_strided_slice %949 {offsets = [0, 64], sizes = [16, 32], strides = [1, 1]} : vector<16x96xf32> to vector<16x32xf32>
    %968 = arith.mulf %957, %967 : vector<16x32xf32>
    %969 = arith.addf %966, %968 : vector<16x32xf32>
    %970 = math.tanh %969 : vector<16x32xf32>
    %cst_280 = arith.constant 1.000000e+00 : f32
    %971 = vector.broadcast %cst_280 : f32 to vector<16x32xf32>
    %972 = arith.subf %971, %965 : vector<16x32xf32>
    %973 = arith.mulf %972, %970 : vector<16x32xf32>
    %974 = arith.mulf %965, %837 : vector<16x32xf32>
    %975 = arith.addf %973, %974 : vector<16x32xf32>
    %976 = arith.index_cast %936 : i32 to index
    %c0_281 = arith.constant 0 : index
    %977 = vector.load %arg15[%976, %c0_281] : memref<128x32xf32, #tpu.memory_space<vmem>>, vector<16x32xf32>
    tpu.vector_store %arg15[%976, %c0_281], %975 {strides = array<i32>} : memref<128x32xf32, #tpu.memory_space<vmem>>, vector<16x32xf32>,
    %c7_i32 = arith.constant 7 : i32
    %978 = arith.index_cast %c7_i32 : i32 to index
    %c0_282 = arith.constant 0 : index
    %979 = vector.load %arg2[%978, %c0_282] : memref<8x8xf32, #tpu.memory_space<vmem>>, vector<1x8xf32>
    %980 = vector.broadcast %c7_i32 : i32 to vector<1x8xi32>
    %981 = arith.cmpi slt, %2, %980 : vector<1x8xi32>
    %982 = vector.broadcast %cst_16 : f32 to vector<1x8xf32>
    %983 = arith.select %981, %979, %982 : vector<1x8xi1>, vector<1x8xf32>
    %cst_283 = arith.constant 0.000000e+00 : f32
    %984 = vector.broadcast %cst_283 : f32 to vector<1x8xf32>
    %cst_284 = arith.constant dense<0xFF800000> : vector<1xf32>
    %985 = vector.multi_reduction <maximumf>, %983, %cst_284 [1] : vector<1x8xf32> to vector<1xf32>
    %986 = vector.shape_cast %985 : vector<1xf32> to vector<1x1xf32>
    %987 = vector.broadcast %986 : vector<1x1xf32> to vector<1x8xf32>
    %988 = arith.cmpf oeq, %983, %987 : vector<1x8xf32>
    %cst_285 = arith.constant 8.000000e+00 : f32
    %989 = vector.broadcast %cst_285 : f32 to vector<1x8xf32>
    %990 = arith.select %988, %3, %989 : vector<1x8xi1>, vector<1x8xf32>
    %cst_286 = arith.constant dense<0x7F800000> : vector<1xf32>
    %991 = vector.multi_reduction <minimumf>, %990, %cst_286 [1] : vector<1x8xf32> to vector<1xf32>
    %992 = vector.shape_cast %991 : vector<1xf32> to vector<1x1xf32>
    %993 = vector.broadcast %992 : vector<1x1xf32> to vector<1x8xf32>
    %994 = arith.cmpf oeq, %3, %993 : vector<1x8xf32>
    %995 = vector.broadcast %cst_16 : f32 to vector<1x8xf32>
    %996 = arith.select %994, %995, %983 : vector<1x8xi1>, vector<1x8xf32>
    %cst_287 = arith.constant 1.000000e+00 : f32
    %997 = vector.broadcast %cst_287 : f32 to vector<1x8xf32>
    %998 = arith.select %994, %997, %984 : vector<1x8xi1>, vector<1x8xf32>
    %cst_288 = arith.constant dense<0xFF800000> : vector<1xf32>
    %999 = vector.multi_reduction <maximumf>, %996, %cst_288 [1] : vector<1x8xf32> to vector<1xf32>
    %1000 = vector.shape_cast %999 : vector<1xf32> to vector<1x1xf32>
    %1001 = vector.broadcast %1000 : vector<1x1xf32> to vector<1x8xf32>
    %1002 = arith.cmpf oeq, %996, %1001 : vector<1x8xf32>
    %cst_289 = arith.constant 8.000000e+00 : f32
    %1003 = vector.broadcast %cst_289 : f32 to vector<1x8xf32>
    %1004 = arith.select %1002, %3, %1003 : vector<1x8xi1>, vector<1x8xf32>
    %cst_290 = arith.constant dense<0x7F800000> : vector<1xf32>
    %1005 = vector.multi_reduction <minimumf>, %1004, %cst_290 [1] : vector<1x8xf32> to vector<1xf32>
    %1006 = vector.shape_cast %1005 : vector<1xf32> to vector<1x1xf32>
    %1007 = vector.broadcast %1006 : vector<1x1xf32> to vector<1x8xf32>
    %1008 = arith.cmpf oeq, %3, %1007 : vector<1x8xf32>
    %1009 = vector.broadcast %cst_16 : f32 to vector<1x8xf32>
    %1010 = arith.select %1008, %1009, %996 : vector<1x8xi1>, vector<1x8xf32>
    %cst_291 = arith.constant 1.000000e+00 : f32
    %1011 = vector.broadcast %cst_291 : f32 to vector<1x8xf32>
    %1012 = arith.select %1008, %1011, %998 : vector<1x8xi1>, vector<1x8xf32>
    %cst_292 = arith.constant dense<0xFF800000> : vector<1xf32>
    %1013 = vector.multi_reduction <maximumf>, %1010, %cst_292 [1] : vector<1x8xf32> to vector<1xf32>
    %1014 = vector.shape_cast %1013 : vector<1xf32> to vector<1x1xf32>
    %1015 = vector.broadcast %1014 : vector<1x1xf32> to vector<1x8xf32>
    %1016 = arith.cmpf oeq, %1010, %1015 : vector<1x8xf32>
    %cst_293 = arith.constant 8.000000e+00 : f32
    %1017 = vector.broadcast %cst_293 : f32 to vector<1x8xf32>
    %1018 = arith.select %1016, %3, %1017 : vector<1x8xi1>, vector<1x8xf32>
    %cst_294 = arith.constant dense<0x7F800000> : vector<1xf32>
    %1019 = vector.multi_reduction <minimumf>, %1018, %cst_294 [1] : vector<1x8xf32> to vector<1xf32>
    %1020 = vector.shape_cast %1019 : vector<1xf32> to vector<1x1xf32>
    %1021 = vector.broadcast %1020 : vector<1x1xf32> to vector<1x8xf32>
    %1022 = arith.cmpf oeq, %3, %1021 : vector<1x8xf32>
    %1023 = vector.broadcast %cst_16 : f32 to vector<1x8xf32>
    %1024 = arith.select %1022, %1023, %1010 : vector<1x8xi1>, vector<1x8xf32>
    %cst_295 = arith.constant 1.000000e+00 : f32
    %1025 = vector.broadcast %cst_295 : f32 to vector<1x8xf32>
    %1026 = arith.select %1022, %1025, %1012 : vector<1x8xi1>, vector<1x8xf32>
    %cst_296 = arith.constant dense<0xFF800000> : vector<1xf32>
    %1027 = vector.multi_reduction <maximumf>, %1024, %cst_296 [1] : vector<1x8xf32> to vector<1xf32>
    %1028 = vector.shape_cast %1027 : vector<1xf32> to vector<1x1xf32>
    %1029 = vector.broadcast %1028 : vector<1x1xf32> to vector<1x8xf32>
    %1030 = arith.cmpf oeq, %1024, %1029 : vector<1x8xf32>
    %cst_297 = arith.constant 8.000000e+00 : f32
    %1031 = vector.broadcast %cst_297 : f32 to vector<1x8xf32>
    %1032 = arith.select %1030, %3, %1031 : vector<1x8xi1>, vector<1x8xf32>
    %cst_298 = arith.constant dense<0x7F800000> : vector<1xf32>
    %1033 = vector.multi_reduction <minimumf>, %1032, %cst_298 [1] : vector<1x8xf32> to vector<1xf32>
    %1034 = vector.shape_cast %1033 : vector<1xf32> to vector<1x1xf32>
    %1035 = vector.broadcast %1034 : vector<1x1xf32> to vector<1x8xf32>
    %1036 = arith.cmpf oeq, %3, %1035 : vector<1x8xf32>
    %cst_299 = arith.constant 1.000000e+00 : f32
    %1037 = vector.broadcast %cst_299 : f32 to vector<1x8xf32>
    %1038 = arith.select %1036, %1037, %1026 : vector<1x8xi1>, vector<1x8xf32>
    %cst_300 = arith.constant 0.000000e+00 : f32
    %1039 = vector.broadcast %cst_300 : f32 to vector<1x8xf32>
    %1040 = arith.cmpf ogt, %1038, %1039 : vector<1x8xf32>
    %1041 = vector.broadcast %cst_16 : f32 to vector<1x8xf32>
    %1042 = arith.select %1040, %983, %1041 : vector<1x8xi1>, vector<1x8xf32>
    %cst_301 = arith.constant dense<0xFF800000> : vector<1xf32>
    %1043 = vector.multi_reduction <maximumf>, %1042, %cst_301 [1] : vector<1x8xf32> to vector<1xf32>
    %1044 = vector.shape_cast %1043 : vector<1xf32> to vector<1x1xf32>
    %1045 = vector.broadcast %1044 : vector<1x1xf32> to vector<1x8xf32>
    %1046 = arith.subf %1042, %1045 : vector<1x8xf32>
    %1047 = math.exp %1046 : vector<1x8xf32>
    %cst_302 = arith.constant dense<0.000000e+00> : vector<1xf32>
    %1048 = vector.multi_reduction <add>, %1047, %cst_302 [1] : vector<1x8xf32> to vector<1xf32>
    %1049 = vector.shape_cast %1048 : vector<1xf32> to vector<1x1xf32>
    %1050 = tpu.reciprocal %1049 {approx = true} : vector<1x1xf32> -> vector<1x1xf32>
    %1051 = arith.mulf %1049, %1050 : vector<1x1xf32>
    %cst_303 = arith.constant 2.000000e+00 : f32
    %1052 = vector.broadcast %cst_303 : f32 to vector<1x1xf32>
    %1053 = arith.subf %1052, %1051 : vector<1x1xf32>
    %1054 = arith.mulf %1050, %1053 : vector<1x1xf32>
    %1055 = vector.broadcast %1054 : vector<1x1xf32> to vector<1x8xf32>
    %1056 = arith.mulf %1047, %1055 : vector<1x8xf32>
    %cst_304 = arith.constant dense<0.000000e+00> : vector<1x128xf32>
    %1057 = tpu.matmul %1056, %9, %cst_304 {dimension_numbers = #tpu.dot_dimension_numbers<[1], [0], [0], [1], [0, 0, 1, 1], [], []>} : vector<1x8xf32>, vector<8x128xf32>, vector<1x128xf32> -> vector<1x128xf32>
    %1058 = arith.index_cast %c7_i32 : i32 to index
    %c0_305 = arith.constant 0 : index
    %1059 = vector.load %arg3[%1058, %c0_305] : memref<8x128xf32, #tpu.memory_space<vmem>>, vector<1x128xf32>
    %1060 = arith.mulf %1057, %1059 : vector<1x128xf32>
    %c0_306 = arith.constant 0 : index
    %c0_307 = arith.constant 0 : index
    %1061 = vector.load %arg15[%c0_306, %c0_307] : memref<128x32xf32, #tpu.memory_space<vmem>>, vector<128x32xf32>
    %cst_308 = arith.constant dense<0.000000e+00> : vector<1x32xf32>
    %1062 = tpu.matmul %1060, %1061, %cst_308 {dimension_numbers = #tpu.dot_dimension_numbers<[1], [0], [0], [1], [0, 0, 1, 1], [], []>} : vector<1x128xf32>, vector<128x32xf32>, vector<1x32xf32> -> vector<1x32xf32>
    %1063 = arith.mulf %1062, %8 : vector<1x32xf32>
    %cst_309 = arith.constant dense<0.000000e+00> : vector<1xf32>
    %1064 = vector.multi_reduction <add>, %1063, %cst_309 [1] : vector<1x32xf32> to vector<1xf32>
    %1065 = vector.shape_cast %1064 : vector<1xf32> to vector<1x1xf32>
    %1066 = vector.broadcast %c7_i32 : i32 to vector<1x8xi32>
    %1067 = arith.cmpi eq, %2, %1066 : vector<1x8xi32>
    %cst_310 = arith.constant 0.000000e+00 : f32
    %1068 = vector.shape_cast %1065 : vector<1x1xf32> to vector<1x1xf32>
    %1069 = vector.broadcast %1068 : vector<1x1xf32> to vector<1x8xf32>
    %1070 = vector.broadcast %cst_310 : f32 to vector<1x8xf32>
    %1071 = arith.select %1067, %1069, %1070 : vector<1x8xi1>, vector<1x8xf32>
    %1072 = arith.addf %934, %1071 : vector<1x8xf32>
    %c16_i32_311 = arith.constant 16 : i32
    %1073 = arith.muli %c7_i32, %c16_i32_311 : i32
    %1074 = tpu.assume_multiple %1073, 16 : i32
    %1075 = arith.index_cast %1074 : i32 to index
    %c0_312 = arith.constant 0 : index
    %1076 = vector.load %arg4[%1075, %c0_312] : memref<128x1xf32, #tpu.memory_space<vmem>>, vector<16x1xf32>
    %1077 = arith.index_cast %c7_i32 : i32 to index
    %c0_313 = arith.constant 0 : index
    %1078 = vector.load %arg1[%1077, %c0_313] : memref<8x33xf32, #tpu.memory_space<vmem>>, vector<1x33xf32>
    %cst_314 = arith.constant dense<0.000000e+00> : vector<1x96xf32>
    %1079 = tpu.matmul %1078, %4, %cst_314 {dimension_numbers = #tpu.dot_dimension_numbers<[1], [0], [0], [1], [0, 0, 1, 1], [], []>} : vector<1x33xf32>, vector<33x96xf32>, vector<1x96xf32> -> vector<1x96xf32>
    %1080 = vector.broadcast %1076 : vector<16x1xf32> to vector<16x96xf32>
    %1081 = vector.broadcast %1079 : vector<1x96xf32> to vector<16x96xf32>
    %1082 = arith.mulf %1080, %1081 : vector<16x96xf32>
    %1083 = vector.broadcast %5 : vector<1x96xf32> to vector<16x96xf32>
    %1084 = arith.addf %1082, %1083 : vector<16x96xf32>
    %cst_315 = arith.constant dense<0.000000e+00> : vector<16x96xf32>
    %1085 = tpu.matmul %975, %6, %cst_315 {dimension_numbers = #tpu.dot_dimension_numbers<[1], [0], [0], [1], [0, 0, 1, 1], [], []>} : vector<16x32xf32>, vector<32x96xf32>, vector<16x96xf32> -> vector<16x96xf32>
    %1086 = vector.broadcast %7 : vector<1x96xf32> to vector<16x96xf32>
    %1087 = arith.addf %1085, %1086 : vector<16x96xf32>
    %1088 = vector.extract_strided_slice %1084 {offsets = [0, 0], sizes = [16, 32], strides = [1, 1]} : vector<16x96xf32> to vector<16x32xf32>
    %1089 = vector.extract_strided_slice %1087 {offsets = [0, 0], sizes = [16, 32], strides = [1, 1]} : vector<16x96xf32> to vector<16x32xf32>
    %1090 = arith.addf %1088, %1089 : vector<16x32xf32>
    %1091 = arith.negf %1090 : vector<16x32xf32>
    %1092 = math.exp %1091 : vector<16x32xf32>
    %cst_316 = arith.constant 1.000000e+00 : f32
    %1093 = vector.broadcast %cst_316 : f32 to vector<16x32xf32>
    %1094 = arith.addf %1093, %1092 : vector<16x32xf32>
    %1095 = arith.divf %1093, %1094 : vector<16x32xf32>
    %1096 = vector.extract_strided_slice %1084 {offsets = [0, 32], sizes = [16, 32], strides = [1, 1]} : vector<16x96xf32> to vector<16x32xf32>
    %1097 = vector.extract_strided_slice %1087 {offsets = [0, 32], sizes = [16, 32], strides = [1, 1]} : vector<16x96xf32> to vector<16x32xf32>
    %1098 = arith.addf %1096, %1097 : vector<16x32xf32>
    %1099 = arith.negf %1098 : vector<16x32xf32>
    %1100 = math.exp %1099 : vector<16x32xf32>
    %cst_317 = arith.constant 1.000000e+00 : f32
    %1101 = vector.broadcast %cst_317 : f32 to vector<16x32xf32>
    %1102 = arith.addf %1101, %1100 : vector<16x32xf32>
    %1103 = arith.divf %1101, %1102 : vector<16x32xf32>
    %1104 = vector.extract_strided_slice %1084 {offsets = [0, 64], sizes = [16, 32], strides = [1, 1]} : vector<16x96xf32> to vector<16x32xf32>
    %1105 = vector.extract_strided_slice %1087 {offsets = [0, 64], sizes = [16, 32], strides = [1, 1]} : vector<16x96xf32> to vector<16x32xf32>
    %1106 = arith.mulf %1095, %1105 : vector<16x32xf32>
    %1107 = arith.addf %1104, %1106 : vector<16x32xf32>
    %1108 = math.tanh %1107 : vector<16x32xf32>
    %cst_318 = arith.constant 1.000000e+00 : f32
    %1109 = vector.broadcast %cst_318 : f32 to vector<16x32xf32>
    %1110 = arith.subf %1109, %1103 : vector<16x32xf32>
    %1111 = arith.mulf %1110, %1108 : vector<16x32xf32>
    %1112 = arith.mulf %1103, %975 : vector<16x32xf32>
    %1113 = arith.addf %1111, %1112 : vector<16x32xf32>
    %1114 = arith.index_cast %1074 : i32 to index
    %c0_319 = arith.constant 0 : index
    %1115 = vector.load %arg15[%1114, %c0_319] : memref<128x32xf32, #tpu.memory_space<vmem>>, vector<16x32xf32>
    tpu.vector_store %arg15[%1114, %c0_319], %1113 {strides = array<i32>} : memref<128x32xf32, #tpu.memory_space<vmem>>, vector<16x32xf32>,
    %c8_i32 = arith.constant 8 : i32
    %c0_320 = arith.constant 0 : index
    %c0_321 = arith.constant 0 : index
    %1116 = vector.load %arg14[%c0_320, %c0_321] : memref<16x32xf32, #tpu.memory_space<vmem>>, vector<16x32xf32>
    tpu.vector_store %arg14[%c0_320, %c0_321], %1113 {strides = array<i32>} : memref<16x32xf32, #tpu.memory_space<vmem>>, vector<16x32xf32>,
    %c0_322 = arith.constant 0 : index
    %c0_323 = arith.constant 0 : index
    %1117 = vector.load %arg6[%c0_322, %c0_323] : memref<1x8xf32, #tpu.memory_space<vmem>>, vector<1x8xf32>
    %1118 = arith.addf %1072, %1117 : vector<1x8xf32>
    %c0_324 = arith.constant 0 : index
    %c0_325 = arith.constant 0 : index
    %1119 = vector.load %arg13[%c0_324, %c0_325] : memref<1x8xf32, #tpu.memory_space<vmem>>, vector<1x8xf32>
    tpu.vector_store %arg13[%c0_324, %c0_325], %1118 {strides = array<i32>} : memref<1x8xf32, #tpu.memory_space<vmem>>, vector<1x8xf32>,
    return
  }
  func.func @transform_0(%arg0: i32) -> (i32, i32) {
    %c0_i32 = arith.constant 0 : i32
    %c0_i32_0 = arith.constant 0 : i32
    %c0_i32_1 = arith.constant 0 : i32
    return %c0_i32, %c0_i32_0 : i32, i32
  }
  func.func @transform_1(%arg0: i32) -> (i32, i32) {
    %c0_i32 = arith.constant 0 : i32
    %c0_i32_0 = arith.constant 0 : i32
    %c0_i32_1 = arith.constant 0 : i32
    return %c0_i32, %c0_i32_0 : i32, i32
  }
  func.func @transform_2(%arg0: i32) -> (i32, i32) {
    %c0_i32 = arith.constant 0 : i32
    %c0_i32_0 = arith.constant 0 : i32
    %c0_i32_1 = arith.constant 0 : i32
    return %c0_i32, %c0_i32_0 : i32, i32
  }
  func.func @transform_3(%arg0: i32) -> (i32, i32) {
    %c0_i32 = arith.constant 0 : i32
    %c0_i32_0 = arith.constant 0 : i32
    %c0_i32_1 = arith.constant 0 : i32
    return %c0_i32, %c0_i32_0 : i32, i32
  }
  func.func @transform_4(%arg0: i32) -> (i32, i32) {
    %c0_i32 = arith.constant 0 : i32
    %c0_i32_0 = arith.constant 0 : i32
    %c0_i32_1 = arith.constant 0 : i32
    return %c0_i32, %c0_i32_0 : i32, i32
  }
  func.func @transform_5(%arg0: i32) -> (i32, i32) {
    %c0_i32 = arith.constant 0 : i32
    %c0_i32_0 = arith.constant 0 : i32
    %c0_i32_1 = arith.constant 0 : i32
    return %c0_i32, %c0_i32_0 : i32, i32
  }
  func.func @transform_6(%arg0: i32) -> (i32, i32) {
    %c0_i32 = arith.constant 0 : i32
    %c0_i32_0 = arith.constant 0 : i32
    %c0_i32_1 = arith.constant 0 : i32
    return %c0_i32, %c0_i32_0 : i32, i32
  }
  func.func @transform_7(%arg0: i32) -> (i32, i32) {
    %c0_i32 = arith.constant 0 : i32
    %c0_i32_0 = arith.constant 0 : i32
    %c0_i32_1 = arith.constant 0 : i32
    return %c0_i32, %c0_i32_0 : i32, i32
  }
  func.func @transform_8(%arg0: i32) -> (i32, i32) {
    %c0_i32 = arith.constant 0 : i32
    %c0_i32_0 = arith.constant 0 : i32
    %c0_i32_1 = arith.constant 0 : i32
    return %c0_i32, %c0_i32_0 : i32, i32
  }
  func.func @transform_9(%arg0: i32) -> (i32, i32) {
    %c0_i32 = arith.constant 0 : i32
    %c0_i32_0 = arith.constant 0 : i32
    %c0_i32_1 = arith.constant 0 : i32
    return %c0_i32, %c0_i32_0 : i32, i32
  }
  func.func @transform_10(%arg0: i32) -> (i32, i32) {
    %c0_i32 = arith.constant 0 : i32
    %c0_i32_0 = arith.constant 0 : i32
    %c0_i32_1 = arith.constant 0 : i32
    return %c0_i32, %c0_i32_0 : i32, i32
  }
  func.func @transform_11(%arg0: i32) -> (i32, i32) {
    %c0_i32 = arith.constant 0 : i32
    %c0_i32_0 = arith.constant 0 : i32
    %c0_i32_1 = arith.constant 0 : i32
    return %c0_i32, %c0_i32_0 : i32, i32
  }
  func.func @transform_12(%arg0: i32) -> (i32, i32) {
    %c0_i32 = arith.constant 0 : i32
    %c0_i32_0 = arith.constant 0 : i32
    %c0_i32_1 = arith.constant 0 : i32
    return %c0_i32, %c0_i32_0 : i32, i32
  }
  func.func @transform_13(%arg0: i32) -> (i32, i32) {
    %c0_i32 = arith.constant 0 : i32
    %c0_i32_0 = arith.constant 0 : i32
    %c0_i32_1 = arith.constant 0 : i32
    return %c0_i32, %c0_i32_0 : i32, i32
  }
  func.func @transform_14(%arg0: i32) -> (i32, i32) {
    %c0_i32 = arith.constant 0 : i32
    %c0_i32_0 = arith.constant 0 : i32
    %c0_i32_1 = arith.constant 0 : i32
    return %c0_i32, %c0_i32_0 : i32, i32
  }
}

</mosaic_0001>

<bundles_post_ra>
// kernel: tile.9
= control target key start
LH: loop header
LB: loop body
LE: loop exit
PB: predicated region body
PF: predicated region fallthrough
CT: control target
= control target key end

     0   :  { %vm4_vm0 = vcmask 1047556   ;;  %s99_s14 = smov 112   ;;  %s100_s15 = smov 80   ;;  %vm6_vm1 = vcmask 130048   ;;  %vm16_vm2 = vcmask 1048448   ;;  %vm26_vm3 = vcmask 917248   ;;  %s196_s0 = inlined_call_operand.vmem [shape: f32[8,8,16], index: 0, kind: input, shape index: {}]   ;;  %s197_s1 = inlined_call_operand.vmem [shape: f32[8,128], index: 1, kind: output, shape index: {}]  }
   0x1   :  { %v78_v0 = vld [vmem:[%s196_s0 + $0x7] ss:$8 sm:$0xf]   ;;  %v82_v3 = vld [vmem:[%s196_s0 + $0x5] ss:$8 sm:$0xf]  }
   0x2   :  { %v79_v1 = vld [vmem:[%s196_s0 + $0x7] ss:$8 sm:$0xf0]   ;;  %v83_v4 = vld [vmem:[%s196_s0 + $0x5] ss:$8 sm:$0xf0]  }
   0x3   :  { %v13_v2 = vsel %vm4_vm0, %v79_v1, %v78_v0  ;;  %v33_v5 = vsel %vm4_vm0, %v83_v4, %v82_v3  ;;  %v80_v6 = vld [vmem:[%s196_s0 + $0x6] ss:$8 sm:$0xf]   ;;  %v84_v8 = vld [vmem:[%s196_s0 + $0x4] ss:$8 sm:$0xf]  }
   0x4   :  { %14 = vrot.lane.b32.xlu0 %v13_v2, %s99_s14  ;;  %34 = vrot.lane.b32.xlu1 %v33_v5, %s100_s15  ;;  %v81_v7 = vld [vmem:[%s196_s0 + $0x6] ss:$8 sm:$0xf0]   ;;  %v85_v9 = vld [vmem:[%s196_s0 + $0x4] ss:$8 sm:$0xf0]  }
   0x5   :  { %v86_v10 = vld [vmem:[%s196_s0 + $0x3] ss:$8 sm:$0xf]   ;;  %v23_v12 = vsel %vm4_vm0, %v81_v7, %v80_v6  ;;  %v43_v14 = vsel %vm4_vm0, %v85_v9, %v84_v8  ;;  %s101_s28 = smov 48   ;;  %s102_s29 = smov 96   ;;  %vm36_vm4 = vcmask 786048  }
   0x6   :  { %v87_v11 = vld [vmem:[%s196_s0 + $0x3] ss:$8 sm:$0xf0]   ;;  %v88_v15 = vld [vmem:[%s196_s0 + $0x2] ss:$8 sm:$0xf]  }
   0x7   :  { %v53_v13 = vsel %vm4_vm0, %v87_v11, %v86_v10  ;;  %v89_v16 = vld [vmem:[%s196_s0 + $0x2] ss:$8 sm:$0xf0]   ;;  %s103_s5 = smov 64   ;;  %s104_s10 = smov 32   ;;  %vm46_vm5 = vcmask 654848  }
   0x8   :  { %54 = vrot.lane.b32.xlu2 %v53_v13, %s101_s28  ;;  %v90_v17 = vld [vmem:[%s196_s0 + $0x1] ss:$8 sm:$0xf]   ;;  %v63_v19 = vsel %vm4_vm0, %v89_v16, %v88_v15  ;;  %s105_s11 = smov 16   ;;  %vm56_vm6 = vcmask 523648   ;;  %vm66_vm7 = vcmask 392448  }
   0x9   :  { %v91_v18 = vld [vmem:[%s196_s0 + $0x1] ss:$8 sm:$0xf0]   ;;  %v2_v21 = vld [vmem:[%s196_s0] ss:$8 sm:$0xf]  }
   0xa   :  { %v73_v20 = vsel %vm4_vm0, %v91_v18, %v90_v17  ;;  %v3_v22 = vld [vmem:[%s196_s0] ss:$8 sm:$0xf0]   ;;  %vm76_vm8 = vcmask 261248  }
   0xb   :  { %v5_v23 = vsel %vm4_vm0, %v3_v22, %v2_v21 }
   0xc   :  { %24 = vrot.lane.b32.xlu0 %v23_v12, %s102_s29  ;;  %44 = vrot.lane.b32.xlu1 %v43_v14, %s103_s5  ;;  %7 = vst.msk [vmem:[%s197_s1] sm:$0xff] %vm6_vm1, %v5_v23  }
  0x10   :  { %64 = vrot.lane.b32.xlu2 %v63_v19, %s104_s10 }
  0x14   :  { %74 = vrot.lane.b32.xlu0 %v73_v20, %s105_s11 }
  0x62   :  { %v55_v24 = vpop.permute.xlu2 %54  }
  0x6a   :  { %v65_v25 = vpop.permute.xlu2 %64  }
  0x76   :  { %v15_v26 = vpop.permute.xlu0 %14   ;;  %v35_v27 = vpop.permute.xlu1 %34  }
  0x77   :  { %17 = vst.msk [vmem:[%s197_s1] sm:$0xff] %vm16_vm2, %v15_v26  }
  0x7e   :  { %v25_v28 = vpop.permute.xlu0 %24   ;;  %v45_v29 = vpop.permute.xlu1 %44  }
  0x7f   :  { %27 = vst.msk [vmem:[%s197_s1] sm:$0xff] %vm26_vm3, %v25_v28  }
  0x80   :  { %37 = vst.msk [vmem:[%s197_s1] sm:$0xff] %vm36_vm4, %v35_v27  }
  0x81   :  { %47 = vst.msk [vmem:[%s197_s1] sm:$0xff] %vm46_vm5, %v45_v29  }
  0x82   :  { %57 = vst.msk [vmem:[%s197_s1] sm:$0xff] %vm56_vm6, %v55_v24  }
  0x83   :  { %67 = vst.msk [vmem:[%s197_s1] sm:$0xff] %vm66_vm7, %v65_v25  }
  0x86   :  { %v75_v30 = vpop.permute.xlu0 %74  }
  0x87   :  { %77 = vst.msk [vmem:[%s197_s1] sm:$0xff] %vm76_vm8, %v75_v30  }

// kernel: ekta_attn_seq_forward.1
= control target key start
LH: loop header
LB: loop body
LE: loop exit
PB: predicated region body
PF: predicated region fallthrough
CT: control target
= control target key end

     0   :  { %20 = vsyncpa [#allocation3], 0  ;;  %v63_v0 = vlaneseq  ;;  %s4043_s0 = inlined_call_operand.vmem [shape: f32[8,33], index: 0, kind: input, shape index: {}]   ;;  %s4044_s1 = inlined_call_operand.vmem [shape: f32[8,8], index: 1, kind: input, shape index: {}]   ;;  %s4045_s2 = inlined_call_operand.vmem [shape: f32[8,128], index: 2, kind: input, shape index: {}]   ;;  %s4046_s3 = inlined_call_operand.vmem [shape: f32[128,1], index: 3, kind: input, shape index: {}]   ;;  %s4047_s4 = inlined_call_operand.vmem [shape: f32[8,128], index: 4, kind: input, shape index: {}]   ;;  %s4048_s5 = inlined_call_operand.vmem [shape: f32[1,8], index: 5, kind: input, shape index: {}]   ;;  %s4049_s6 = inlined_call_operand.vmem [shape: f32[16,32], index: 6, kind: input, shape index: {}]   ;;  %s4050_s7 = inlined_call_operand.vmem [shape: f32[33,96], index: 7, kind: input, shape index: {}]   ;;  %s4051_s8 = inlined_call_operand.vmem [shape: f32[1,96], index: 8, kind: input, shape index: {}]   ;;  %s4052_s9 = inlined_call_operand.vmem [shape: f32[32,96], index: 9, kind: input, shape index: {}]   ;;  %s4053_s10 = inlined_call_operand.vmem [shape: f32[1,96], index: 10, kind: input, shape index: {}]   ;;  %s4054_s11 = inlined_call_operand.vmem [shape: f32[1,32], index: 11, kind: input, shape index: {}]   ;;  %s4055_s12 = inlined_call_operand.hbm [shape: f32[1,8], index: 12, kind: output, shape index: {0}]   ;;  %s4056_s13 = inlined_call_operand.hbm [shape: f32[16,32], index: 13, kind: output, shape index: {1}]   ;;  %s4057_s14 = inlined_call_operand.hbm [shape: f32[128,32], index: 14, kind: output, shape index: {2}]  }
   0x1   :  { %21 = vsyncpa [#allocation5], 0  ;;  %v389_v2 = vld [vmem:[%s4044_s1 + $0x1] sm:$0x1]  ;;  %vm84_vm0 = vcmask 57344   ;;  %v2888_v15 = vld [vmem:[%s4052_s9 + $0x18] sm:$0xff] }
   0x2   :  { %v2862_v1 = vand.u32 127, %v63_v0  ;;  %v2893_v16 = vld [vmem:[%s4052_s9 + $0x10] sm:$0xff]  ;;  %vm46_vm5 = vcmask 261120   ;;  %vm221_vm6 = vcmask 1040384   ;;  %284 = vmatpush.msra.mxu3 %v2888_v15  ;;  %v2776_v17 = vmov 0.0   ;;  %577 = vmatpush.msra.mxu2 %v2888_v15  ;;  %v2902_v18 = vld [vmem:[%s4052_s9 + $0x8] sm:$0xff] }
   0x3   :  { %47 = vst.msk [vmem:[#allocation6] sm:$0xff] %vm46_vm5, %v2776_v17  ;;  %v2909_v19 = vld [vmem:[%s4050_s7 + $0x20] sm:$0x1]  ;;  %v2914_v20 = vld [vmem:[%s4050_s7 + $0x18] sm:$0xff]  ;;  %v2931_v22 = vld [vmem:[%s4050_s7 + $0x10] sm:$0xff]  ;;  %vm217_vm7 = vcmask 269312  }
   0x4   :  { %vm390_vm1 = vcmp.lt.s32.totalorder %v2862_v1, 1  ;;  %v2873_v5 = vcvt.s32.f32 %v2862_v1  ;;  %48 = vst.msk [vmem:[#allocation6 + $0x8] sm:$0xff] %vm46_vm5, %v2776_v17  ;;  %285 = vmatpush.msra.mxu3 %v2893_v16  ;;  %2466 = vmatpush.msk.msra.mxu0 %vm221_vm6, %v2909_v19  ;;  %v2924_v21 = vld [vmem:[%s4052_s9] sm:$0xff]  ;;  %v2948_v24 = vld [vmem:[%s4050_s7 + $0x8] sm:$0xff]  ;;  %v2777_v33 = vmov 0   ;;  %s2778_s28 = smov 64  }
   0x5   :  { %v2868_v3 = vsel %vm390_vm1, %v389_v2, -1e+30  ;;  %49 = vst.msk [vmem:[#allocation6 + $0x10] sm:$0xff] %vm46_vm5, %v2776_v17  ;;  %578 = vmatpush.msra.mxu2 %v2893_v16  ;;  %v2938_v23 = vld [vmem:[%s4049_s6] sm:$0xff]  ;;  %v2984_v27 = vld [vmem:[%s4049_s6 + $0x8] sm:$0xff]  ;;  %2546 = vset.pattern.permute.xlu0 %v2777_v33  ;;  %vm678_vm11 = vcmp.lt.s32.totalorder %v2862_v1, 2 }
   0x6   :  { %v392_v4 = vsel %vm84_vm0, %v2868_v3, -inf  ;;  %50 = vst.msk [vmem:[#allocation6 + $0x18] sm:$0xff] %vm46_vm5, %v2776_v17  ;;  %286 = vmatpush.msra.mxu3 %v2902_v18  ;;  %237 = vmatpush.msra.mxu0 %v2914_v20  ;;  %v2962_v25 = vld [vmem:[%s4050_s7] sm:$0xff]  ;;  %v215_v35 = vld [vmem:[%s4046_s3 + $0x8] sm:$0xff]  ;;  %s2779_s17 = smov 96   ;;  %s2780_s18 = smov 32  }
   0x7   :  { %393 = vmax.xlane.f32.xlu0 %v392_v4  ;;  %51 = vst.msk [vmem:[#allocation6 + $0x20] sm:$0xff] %vm46_vm5, %v2776_v17  ;;  %579 = vmatpush.msra.mxu2 %v2902_v18  ;;  %v216_v26 = vld [vmem:[%s4043_s0] sm:$0x1]  ;;  %v677_v48 = vld [vmem:[%s4044_s1 + $0x2] sm:$0x1]  ;;  %s2417_s16 = sshll.u32 %s4055_s12, 4  ;;  %s2418_s16 = int_to_ptr.hbm [resolvable:$true] %s2417_s16 }
   0x8   :  { %52 = vst.msk [vmem:[#allocation6 + $0x28] sm:$0xff] %vm46_vm5, %v2776_v17  ;;  %287 = vmatpush.msra.mxu3 %v2924_v21  ;;  %238 = vmatpush.msra.mxu0 %v2931_v22  ;;  %v214_v34 = vld [vmem:[%s4046_s3] sm:$0xff]  ;;  %v3024_v50 = vsel %vm678_vm11, %v677_v48, -1e+30  ;;  %s2427_s20 = sshll.u32 %s4056_s13, 4  ;;  %s2784_s21 = smov [#allocation6]   ;;  %s2428_s20 = int_to_ptr.hbm [resolvable:$true] %s2427_s20 }
   0x9   :  { %53 = vst.msk [vmem:[#allocation6 + $0x30] sm:$0xff] %vm46_vm5, %v2776_v17  ;;  %2468 = vmatmul.msk.f32.vlgmr.msra.gmra.mxu3 %vm46_vm5, %v2938_v23  ;;  %580 = vmatpush.msra.mxu2 %v2924_v21  ;;  %v3008_v37 = vld [vmem:[%s4053_s10] ss:$0 sm:$0xff]  ;;  %v680_v52 = vsel %vm84_vm0, %v3024_v50, -inf  ;;  %s2438_s12 = sshll.u32 %s2784_s21, 4  ;;  %s2440_s22 = sshll.u32 %s4057_s14, 4  ;;  %s2439_s12 = int_to_ptr.vmem [resolvable:$true] %s2438_s12  ;;  %s2441_s22 = int_to_ptr.hbm [resolvable:$true] %s2440_s22 }
   0xa   :  { %54 = vst.msk [vmem:[#allocation6 + $0x38] sm:$0xff] %vm46_vm5, %v2776_v17  ;;  %239 = vmatpush.msra.mxu0 %v2948_v24  ;;  %2547 = vset.pattern.permute.xlu1 %v2777_v33  ;;  %v3031_v54 = vld [vmem:[%s4051_s8] ss:$0 sm:$0xff]  ;;  %s2786_s6 = smov 8  }
   0xb   :  { %55 = vst.msk [vmem:[#allocation6 + $0x40] sm:$0xff] %vm46_vm5, %v2776_v17  ;;  %2548 = vset.pattern.permute.xlu2 %v2777_v33 }
   0xc   :  { %56 = vst.msk [vmem:[#allocation6 + $0x48] sm:$0xff] %vm46_vm5, %v2776_v17  ;;  %240 = vmatpush.msra.mxu0 %v2962_v25 }
   0xd   :  { %57 = vst.msk [vmem:[#allocation6 + $0x50] sm:$0xff] %vm46_vm5, %v2776_v17  ;;  %2467 = vmatmul.msk.f32.vlgmr.msra.gmra.mxu0 %vm217_vm7, %v216_v26 }
   0xe   :  { %58 = vst.msk [vmem:[#allocation6 + $0x58] sm:$0xff] %vm46_vm5, %v2776_v17 }
   0xf   :  { %59 = vst.msk [vmem:[#allocation6 + $0x60] sm:$0xff] %vm46_vm5, %v2776_v17 }
  0x10   :  { %60 = vst.msk [vmem:[#allocation6 + $0x68] sm:$0xff] %vm46_vm5, %v2776_v17 }
  0x11   :  { %61 = vst.msk [vmem:[#allocation6 + $0x70] sm:$0xff] %vm46_vm5, %v2776_v17  ;;  %2469 = vmatmul.msk.f32.gmra.mxu3 %vm46_vm5, %v2984_v27 }
  0x12   :  { %62 = vst.msk [vmem:[#allocation6 + $0x78] sm:$0xff] %vm46_vm5, %v2776_v17 }
  0x7a   :  { %v394_v6 = vpop.xlane.xlu0 %393 }
  0x7b   :  { %vm395_vm2 = vcmp.eq.f32.partialorder %v2868_v3, %v394_v6 }
  0x7c   :  { %v396_v7 = vsel %vm395_vm2, %v2873_v5, 8.0 }
  0x7d   :  { %v397_v8 = vsel %vm84_vm0, %v396_v7, inf }
  0x7e   :  { %398 = vmin.xlane.f32.xlu0 %v397_v8 }
  0x8a   :  { %v242_v49 = vpop.f32.mrf.mxu0 }
  0x8b   :  { %v255_v51 = vperm.slane %v242_v49, 0 }
  0x8c   :  { %v289_v36 = vpop.f32.mrf.mxu3 }
  0x8d   :  { %v290_v47 = vadd.f32 %v3008_v37, %v289_v36 }
  0x92   :  { %247 = vperm.xlu0 %2546, %v214_v34  }
  0x94   :  { %v292_v39 = vpop.f32.mrf.mxu3 }
  0x95   :  { %v293_v40 = vadd.f32 %v3008_v37, %v292_v39 }
  0xf1   :  { %v399_v9 = vpop.xlane.xlu0 %398 }
  0xf2   :  { %vm400_vm3 = vcmp.eq.f32.partialorder %v2873_v5, %v399_v9 }
  0xf3   :  { %v401_v10 = vsel %vm400_vm3, -1e+30, %v2868_v3  ;;  %v402_v29 = vsel %vm400_vm3, 1.0, %v2776_v17 }
  0xf4   :  { %v403_v11 = vsel %vm84_vm0, %v401_v10, -inf }
  0xf5   :  { %404 = vmax.xlane.f32.xlu1 %v403_v11 }
 0x104   :  { %v248_v53 = vpop.permute.xlu0 %247 }
 0x105   :  { %v256_v55 = vmul.f32 %v255_v51, %v248_v53 }
 0x107   :  { %v3034_v57 = vadd.f32 %v3031_v54, %v256_v55 }
 0x109   :  { %v295_v59 = vadd.f32 %v290_v47, %v3034_v57 }
 0x10b   :  { %v2470_v61 = vmul.f32 -1.442695, %v295_v59 }
 0x10d   :  { %2551 = vpow2.f32 %v2470_v61 }
 0x113   :  { %v2552_v0 = vpop.eup %2551 }
 0x114   :  { %v303_v2 = vadd.f32 1.0, %v2552_v0 }
 0x116   :  { %vm310_vm12 = vweird.f32 %v303_v2  ;;  %v316_v26 = vand.u32 2147483648, %v303_v2 }
 0x118   :  { %v317_v33 = vor.u32 1.1754944e-38, %v316_v26 }
 0x168   :  { %v405_v12 = vpop.xlane.xlu1 %404 }
 0x169   :  { %vm406_vm4 = vcmp.eq.f32.partialorder %v401_v10, %v405_v12 }
 0x16a   :  { %v407_v13 = vsel %vm406_vm4, %v2873_v5, 8.0 }
 0x16b   :  { %v408_v14 = vsel %vm84_vm0, %v407_v13, inf }
 0x16c   :  { %409 = vmin.xlane.f32.xlu1 %v408_v14 }
 0x185   :  { %252 = vperm.xlu1 %2547, %v215_v35  }
 0x18d   :  { %339 = vrot.lane.b32.xlu1 %v293_v40, %s2778_s28 }
 0x1df   :  { %v410_v28 = vpop.xlane.xlu1 %409 }
 0x1e0   :  { %vm411_vm8 = vcmp.eq.f32.partialorder %v2873_v5, %v410_v28 }
 0x1e1   :  { %v412_v30 = vsel %vm411_vm8, -1e+30, %v401_v10  ;;  %v413_v31 = vsel %vm411_vm8, 1.0, %v402_v29  ;;  %v314_v29 = vand.u32 2147483647, %v303_v2 }
 0x1e2   :  { %v414_v32 = vsel %vm84_vm0, %v412_v30, -inf }
 0x1e3   :  { %415 = vmax.xlane.f32.xlu2 %v414_v32  ;;  %vm315_vm3 = vcmp.eq.f32.partialorder %v314_v29, 8.507059e+37  ;;  %v2781_v29 = vmov -inf  }
 0x1f7   :  { %v253_v56 = vpop.permute.xlu1 %252 }
 0x1f8   :  { %v257_v58 = vmul.f32 %v255_v51, %v253_v56 }
 0x1fa   :  { %v3038_v60 = vadd.f32 %v3031_v54, %v257_v58 }
 0x1fc   :  { %v296_v62 = vadd.f32 %v293_v40, %v3038_v60 }
 0x1fe   :  { %v2471_v63 = vmul.f32 -1.442695, %v296_v62 }
 0x200   :  { %2553 = vpow2.f32 %v2471_v63 }
 0x201   :  { %2555 = vrcp.f32 %v303_v2 }
 0x206   :  { %v2554_v4 = vpop.eup %2553 }
 0x207   :  { %v304_v6 = vadd.f32 1.0, %v2554_v4  ;;  %v2556_v7 = vpop.eup %2555 }
 0x208   :  { %v306_v8 = vmul.f32 %v2556_v7, %v303_v2  ;;  %vm311_vm13 = vweird.f32 %v2556_v7 }
 0x209   :  { %2557 = vrcp.f32 %v304_v6  ;;  %vm312_vm15 = vmor %vm310_vm12, %vm311_vm13  ;;  %vm325_vm1 = vweird.f32 %v304_v6  ;;  %v331_v35 = vand.u32 2147483648, %v304_v6 }
 0x20a   :  { %v307_v10 = vsub.f32 1.0, %v306_v8 }
 0x20c   :  { %v308_v12 = vmul.f32 %v2556_v7, %v307_v10 }
 0x20e   :  { %v309_v28 = vadd.f32 %v2556_v7, %v308_v12 }
 0x20f   :  { %v2558_v9 = vpop.eup %2557 }
 0x210   :  { %v321_v11 = vmul.f32 %v2558_v9, %v304_v6  ;;  %vm326_vm2 = vweird.f32 %v2558_v9  ;;  %v313_v34 = vsel %vm312_vm15, %v2556_v7, %v309_v28 }
 0x211   :  { %vm327_vm4 = vmor %vm325_vm1, %vm326_vm2  ;;  %v318_v40 = vsel %vm315_vm3, %v317_v33, %v313_v34  ;;  %v3085_v33 = vld [vmem:[#allocation6 + $0x70] sm:$0xff]  ;;  %v3089_v34 = vld [vmem:[#allocation6 + $0x68] sm:$0xff] }
 0x212   :  { %v322_v13 = vsub.f32 1.0, %v321_v11  ;;  %v357_v4 = vsub.f32 1.0, %v318_v40 }
 0x256   :  { %v416_v38 = vpop.xlane.xlu2 %415 }
 0x257   :  { %vm417_vm9 = vcmp.eq.f32.partialorder %v412_v30, %v416_v38  ;;  %v329_v38 = vand.u32 2147483647, %v304_v6 }
 0x258   :  { %v418_v41 = vsel %vm417_vm9, %v2873_v5, 8.0 }
 0x259   :  { %v419_v42 = vsel %vm84_vm0, %v418_v41, inf  ;;  %vm330_vm8 = vcmp.eq.f32.partialorder %v329_v38, 8.507059e+37  ;;  %v3100_v38 = vld [vmem:[#allocation6 + $0x58] sm:$0xff] }
 0x25a   :  { %420 = vmin.xlane.f32.xlu2 %v419_v42  ;;  %v332_v42 = vor.u32 1.1754944e-38, %v331_v35  ;;  %v3093_v35 = vld [vmem:[#allocation6 + $0x60] sm:$0xff] }
 0x2cd   :  { %v421_v43 = vpop.xlane.xlu2 %420 }
 0x2ce   :  { %vm422_vm10 = vcmp.eq.f32.partialorder %v2873_v5, %v421_v43 }
 0x2cf   :  { %v423_v44 = vsel %vm422_vm10, -1e+30, %v412_v30  ;;  %v3015_v45 = vsel %vm422_vm10, 1.0, %v413_v31  ;;  %v323_v31 = vmul.f32 %v2558_v9, %v322_v13 }
 0x2d0   :  { %v425_v46 = vsel %vm84_vm0, %v423_v44, -inf }
 0x2d1   :  { %426 = vmax.xlane.f32.xlu2 %v425_v46  ;;  %v324_v36 = vadd.f32 %v2558_v9, %v323_v31 }
 0x2d3   :  { %v328_v43 = vsel %vm327_vm4, %v2558_v9, %v324_v36  ;;  %v2473_v36 = vld [vmem:[%s4046_s3 + $0x10] sm:$0xff] }
 0x2d4   :  { %v333_v46 = vsel %vm330_vm8, %v332_v42, %v328_v43  ;;  %v3113_v43 = vld [vmem:[#allocation6 + $0x48] sm:$0xff] }
 0x2d5   :  { %v358_v12 = vsub.f32 1.0, %v333_v46 }
 0x2e9   :  { %337 = vrot.lane.b32.xlu2 %v290_v47, %s2778_s28 }
 0x312   :  { %681 = vmax.xlane.f32.xlu2 %v680_v52 }
 0x344   :  { %v427_v14 = vpop.xlane.xlu2 %426 }
 0x345   :  { %vm428_vm14 = vcmp.eq.f32.partialorder %v423_v44, %v427_v14  ;;  %v340_v44 = vpop.permute.xlu1 %339 }
 0x346   :  { %v429_v30 = vsel %vm428_vm14, %v2873_v5, 8.0  ;;  %v344_v47 = vmul.f32 %v340_v44, %v333_v46  ;;  %v3117_v44 = vld [vmem:[#allocation6 + $0x40] sm:$0xff]  ;;  %vm144_vm14 = vcmask 64512  }
 0x347   :  { %v430_v32 = vsel %vm84_vm0, %v429_v30, inf  ;;  %v85_v30 = vsel %vm84_vm0, -1e+30, %v2781_v29 }
 0x348   :  { %431 = vmin.xlane.f32.xlu1 %v430_v32  ;;  %v3083_v32 = vld [vmem:[#allocation6 + $0x78] sm:$0xff] }
 0x349   :  { %492 = vmatpush.msrb.mxu3 %v3083_v32  ;;  %780 = vmatpush.msrb.mxu2 %v3083_v32 }
 0x34b   :  { %493 = vmatpush.msrb.mxu3 %v3085_v33  ;;  %781 = vmatpush.msrb.mxu2 %v3085_v33 }
 0x34c   :  { %v338_v39 = vpop.permute.xlu2 %337 }
 0x34d   :  { %v343_v41 = vmul.f32 %v338_v39, %v318_v40  ;;  %494 = vmatpush.msrb.mxu3 %v3089_v34  ;;  %782 = vmatpush.msrb.mxu2 %v3089_v34  ;;  %v3104_v39 = vld [vmem:[#allocation6 + $0x50] sm:$0xff] }
 0x34f   :  { %347 = vrot.lane.b32.xlu0 %v343_v41, %s2778_s28  ;;  %495 = vmatpush.msrb.mxu3 %v3093_v35 }
 0x350   :  { %783 = vmatpush.msrb.mxu2 %v3093_v35 }
 0x351   :  { %496 = vmatpush.msrb.mxu3 %v3100_v38 }
 0x352   :  { %784 = vmatpush.msrb.mxu2 %v3100_v38 }
 0x353   :  { %497 = vmatpush.msrb.mxu3 %v3104_v39 }
 0x354   :  { %785 = vmatpush.msrb.mxu2 %v3104_v39 }
 0x355   :  { %498 = vmatpush.msrb.mxu3 %v3113_v43 }
 0x356   :  { %786 = vmatpush.msrb.mxu2 %v3113_v43 }
 0x357   :  { %349 = vrot.lane.b32.xlu0 %v344_v47, %s2778_s28  ;;  %499 = vmatpush.msrb.mxu3 %v3117_v44  ;;  %v3125_v47 = vld [vmem:[#allocation6 + $0x30] sm:$0xff] }
 0x358   :  { %787 = vmatpush.msrb.mxu2 %v3117_v44 }
 0x385   :  { %v682_v48 = vpop.xlane.xlu2 %681 }
 0x386   :  { %vm683_vm9 = vcmp.eq.f32.partialorder %v3024_v50, %v682_v48  ;;  %v481_v48 = vld [vmem:[#allocation6 + $0x28] sm:$0xff] }
 0x387   :  { %v684_v49 = vsel %vm683_vm9, %v2873_v5, 8.0 }
 0x388   :  { %v685_v51 = vsel %vm84_vm0, %v684_v49, inf  ;;  %v480_v49 = vld [vmem:[#allocation6 + $0x20] sm:$0xff] }
 0x389   :  { %686 = vmin.xlane.f32.xlu0 %v685_v51  ;;  %v479_v51 = vld [vmem:[#allocation6 + $0x18] sm:$0xff] }
 0x3bb   :  { %v432_v52 = vpop.xlane.xlu1 %431 }
 0x3bc   :  { %vm433_vm10 = vcmp.eq.f32.partialorder %v2873_v5, %v432_v52  ;;  %v3132_v52 = vld [vmem:[%s4047_s4] sm:$0xff] }
 0x3bd   :  { %v434_v53 = vsel %vm433_vm10, 1.0, %v3015_v45  ;;  %469 = vmatpush.msrb.mxu0 %v3132_v52  ;;  %163 = vmatpush.msra.mxu1 %v3132_v52  ;;  %vm966_vm10 = vcmp.lt.s32.totalorder %v2862_v1, 3 }
 0x3be   :  { %vm435_vm11 = vcmp.gt.f32.partialorder %v434_v53, 0.0  ;;  %v478_v53 = vld [vmem:[#allocation6 + $0x10] sm:$0xff] }
 0x3bf   :  { %v436_v55 = vsel %vm435_vm11, %v2868_v3, -1e+30  ;;  %2475 = vmatpush.msk.msra.mxu0 %vm221_vm6, %v2909_v19  ;;  %186 = vmatpush.msrb.mxu1 %v3083_v32 }
 0x3c0   :  { %v437_v56 = vsel %vm84_vm0, %v436_v55, -inf }
 0x3c1   :  { %438 = vmax.xlane.f32.xlu2 %v437_v56  ;;  %v348_v58 = vpop.permute.xlu0 %347  ;;  %538 = vmatpush.msra.mxu0 %v2914_v20 }
 0x3c2   :  { %v353_v59 = vadd.f32 %v348_v58, %v3034_v57  ;;  %187 = vmatpush.msrb.mxu1 %v3085_v33 }
 0x3c3   :  { %539 = vmatpush.msra.mxu0 %v2931_v22 }
 0x3c4   :  { %2559 = vtanh.f32 %v353_v59  ;;  %188 = vmatpush.msrb.mxu1 %v3089_v34  ;;  %v171_v59 = vld [vmem:[#allocation6 + $0x8] sm:$0xff] }
 0x3c5   :  { %540 = vmatpush.msra.mxu0 %v2948_v24 }
 0x3c6   :  { %189 = vmatpush.msrb.mxu1 %v3093_v35 }
 0x3c7   :  { %541 = vmatpush.msra.mxu0 %v2962_v25 }
 0x3c8   :  { %190 = vmatpush.msrb.mxu1 %v3100_v38 }
 0x3c9   :  { %v350_v61 = vpop.permute.xlu0 %349 }
 0x3ca   :  { %v2560_v62 = vpop.eup %2559  ;;  %v354_v63 = vadd.f32 %v350_v61, %v3038_v60  ;;  %191 = vmatpush.msrb.mxu1 %v3104_v39 }
 0x3cb   :  { %361 = vrot.lane.b32.xlu1 %v2560_v62, %s2779_s17 }
 0x3cc   :  { %2561 = vtanh.f32 %v354_v63  ;;  %192 = vmatpush.msrb.mxu1 %v3113_v43 }
 0x3ce   :  { %193 = vmatpush.msrb.mxu1 %v3117_v44 }
 0x3d2   :  { %v2562_v0 = vpop.eup %2561 }
 0x3d3   :  { %371 = vrot.lane.b32.xlu1 %v2984_v27, %s2780_s18  ;;  %363 = vrot.lane.b32.xlu0 %v2562_v0, %s2779_s17 }
 0x3d9   :  { %369 = vrot.lane.b32.xlu2 %v2938_v23, %s2780_s18 }
 0x3fc   :  { %v3058_v3 = vpop.xlane.xlu0 %686 }
 0x3fd   :  { %vm688_vm12 = vcmp.eq.f32.partialorder %v2873_v5, %v3058_v3 }
 0x3fe   :  { %v3066_v45 = vsel %vm688_vm12, -1e+30, %v3024_v50 }
 0x3ff   :  { %v691_v57 = vsel %vm84_vm0, %v3066_v45, -inf }
 0x402   :  { %692 = vmax.xlane.f32.xlu2 %v691_v57 }
 0x434   :  { %v439_v27 = vpop.xlane.xlu2 %438 }
 0x435   :  { %v440_v60 = vsub.f32 %v436_v55, %v439_v27  ;;  %v170_v55 = vld [vmem:[#allocation6] sm:$0xff] }
 0x437   :  { %v441_v2 = vmul.f32 1.442695, %v440_v60 }
 0x439   :  { %2563 = vpow2.f32 %v441_v2 }
 0x43c   :  { %v370_v23 = vpop.permute.xlu2 %369 }
 0x43d   :  { %v375_v6 = vmul.f32 %v370_v23, %v318_v40  ;;  %v362_v7 = vpop.permute.xlu1 %361 }
 0x43e   :  { %v367_v8 = vmul.f32 %v362_v7, %v357_v4  ;;  %v522_v7 = vld [vmem:[%s4043_s0 + $0x1] sm:$0x1] }
 0x43f   :  { %v3070_v9 = vpop.eup %2563 }
 0x440   :  { %v3072_v10 = vadd.f32 %v375_v6, %v367_v8  ;;  %v443_v11 = vsel %vm84_vm0, %v3070_v9, 0.0 }
 0x441   :  { %444 = vadd.xlane.f32.xlu1 %v443_v11 }
 0x442   :  { %381 = vrot.lane.b32.xlu0 %v3072_v10, %s2779_s17 }
 0x445   :  { %v372_v13 = vpop.permute.xlu1 %371  ;;  %v364_v14 = vpop.permute.xlu0 %363 }
 0x446   :  { %v376_v26 = vmul.f32 %v372_v13, %v333_v46  ;;  %v368_v28 = vmul.f32 %v364_v14, %v358_v12  ;;  %v3121_v46 = vld [vmem:[#allocation6 + $0x38] sm:$0xff] }
 0x447   :  { %500 = vmatpush.msrb.mxu3 %v3121_v46  ;;  %788 = vmatpush.msrb.mxu2 %v3121_v46 }
 0x448   :  { %v3079_v31 = vadd.f32 %v376_v26, %v368_v28  ;;  %194 = vmatpush.msrb.mxu1 %v3121_v46  ;;  %v474_v26 = vld [vmem:[%s4045_s2 + $0x1] sm:$0x1] }
 0x449   :  { %131 = vmax.xlane.f32.xlu1 %v85_v30  ;;  %501 = vmatpush.msrb.mxu3 %v3125_v47 }
 0x44a   :  { %383 = vrot.lane.b32.xlu0 %v3079_v31, %s2779_s17  ;;  %789 = vmatpush.msrb.mxu2 %v3125_v47 }
 0x44b   :  { %502 = vmatpush.msrb.mxu3 %v481_v48  ;;  %195 = vmatpush.msrb.mxu1 %v3125_v47 }
 0x44c   :  { %790 = vmatpush.msrb.mxu2 %v481_v48 }
 0x44d   :  { %503 = vmatpush.msrb.mxu3 %v480_v49  ;;  %196 = vmatpush.msrb.mxu1 %v481_v48 }
 0x44e   :  { %791 = vmatpush.msrb.mxu2 %v480_v49 }
 0x44f   :  { %504 = vmatpush.msrb.mxu3 %v479_v51  ;;  %197 = vmatpush.msrb.mxu1 %v480_v49 }
 0x451   :  { %505 = vmatpush.msrb.mxu3 %v478_v53  ;;  %198 = vmatpush.msrb.mxu1 %v479_v51 }
 0x453   :  { %199 = vmatpush.msrb.mxu1 %v478_v53 }
 0x455   :  { %200 = vmatpush.msrb.mxu1 %v171_v59 }
 0x457   :  { %201 = vmatpush.msrb.mxu1 %v170_v55 }
 0x462   :  { %548 = vperm.xlu1 %2547, %v2473_v36  }
 0x475   :  { %v693_v40 = vpop.xlane.xlu2 %692 }
 0x476   :  { %vm694_vm13 = vcmp.eq.f32.partialorder %v3066_v45, %v693_v40 }
 0x477   :  { %v695_v41 = vsel %vm694_vm13, %v2873_v5, 8.0 }
 0x478   :  { %v696_v42 = vsel %vm84_vm0, %v695_v41, inf }
 0x479   :  { %697 = vmin.xlane.f32.xlu0 %v696_v42 }
 0x4b4   :  { %v445_v56 = vpop.xlane.xlu1 %444  ;;  %v382_v58 = vpop.permute.xlu0 %381 }
 0x4b5   :  { %2565 = vrcp.f32 %v445_v56  ;;  %387 = vst.msk [vmem:[#allocation6] sm:$0xff] %vm46_vm5, %v382_v58  ;;  %2477 = vmatmul.msk.f32.vlgmr.msra.gmra.mxu2 %vm46_vm5, %v382_v58 }
 0x4bb   :  { %v2566_v61 = vpop.eup %2565 }
 0x4bc   :  { %v447_v62 = vmul.f32 %v2566_v61, %v445_v56  ;;  %v384_v63 = vpop.permute.xlu0 %383  ;;  %v132_v57 = vpop.xlane.xlu1 %131  ;;  %v3162_v6 = vld [vmem:[#allocation6] sm:$0xff] }
 0x4bd   :  { %388 = vst.msk [vmem:[#allocation6 + $0x8] sm:$0xff] %vm46_vm5, %v384_v63  ;;  %2478 = vmatmul.msk.f32.gmra.mxu2 %vm46_vm5, %v384_v63  ;;  %v133_v27 = vsub.f32 -1e+30, %v132_v57 }
 0x4be   :  { %v448_v0 = vsub.f32 2.0, %v447_v62 }
 0x4bf   :  { %v134_v23 = vmul.f32 1.442695, %v133_v27 }
 0x4c0   :  { %v449_v60 = vmul.f32 %v2566_v61, %v448_v0 }
 0x4c1   :  { %2567 = vpow2.f32 %v134_v23 }
 0x4c2   :  { %v450_v2 = vmul.f32 %v3070_v9, %v449_v60 }
 0x4c4   :  { %2472 = vmatmul.msk.f32.vlgmr.msrb.gmra.mxu0 %vm144_vm14, %v450_v2  ;;  %v3158_v4 = vld [vmem:[#allocation6 + $0x8] sm:$0xff] }
 0x4c5   :  { %506 = vmatpush.msrb.mxu3 %v3158_v4  ;;  %757 = vmatpush.msrb.mxu0 %v3132_v52 }
 0x4c7   :  { %507 = vmatpush.msrb.mxu3 %v3162_v6  ;;  %v3173_v8 = vpop.eup %2567 }
 0x4c8   :  { %v136_v9 = vsel %vm84_vm0, %v3173_v8, 0.0 }
 0x4c9   :  { %2493 = vmatpush.msk.msra.mxu3 %vm221_vm6, %v2909_v19  ;;  %137 = vadd.xlane.f32.xlu0 %v136_v9 }
 0x4cb   :  { %1114 = vmatpush.msra.mxu3 %v2914_v20 }
 0x4cc   :  { %2476 = vmatmul.msk.f32.vlgmr.msra.gmra.mxu0 %vm217_vm7, %v522_v7 }
 0x4cd   :  { %1115 = vmatpush.msra.mxu3 %v2931_v22  ;;  %2484 = vmatpush.msk.msra.mxu0 %vm221_vm6, %v2909_v19  ;;  %v690_v19 = vsel %vm688_vm12, 1.0, %v2776_v17 }
 0x4cf   :  { %1116 = vmatpush.msra.mxu3 %v2948_v24  ;;  %826 = vmatpush.msra.mxu0 %v2914_v20 }
 0x4d1   :  { %1117 = vmatpush.msra.mxu3 %v2962_v25  ;;  %827 = vmatpush.msra.mxu0 %v2931_v22 }
 0x4d3   :  { %828 = vmatpush.msra.mxu0 %v2948_v24 }
 0x4d4   :  { %v549_v48 = vpop.permute.xlu1 %548 }
 0x4d5   :  { %829 = vmatpush.msra.mxu0 %v2962_v25 }
 0x4ec   :  { %v698_v11 = vpop.xlane.xlu0 %697 }
 0x4ed   :  { %vm699_vm15 = vcmp.eq.f32.partialorder %v2873_v5, %v698_v11 }
 0x4ee   :  { %v700_v20 = vsel %vm699_vm15, -1e+30, %v3066_v45  ;;  %v701_v12 = vsel %vm699_vm15, 1.0, %v690_v19 }
 0x4ef   :  { %v702_v13 = vsel %vm84_vm0, %v700_v20, -inf }
 0x4f0   :  { %703 = vmax.xlane.f32.xlu2 %v702_v13 }
 0x538   :  { %v582_v14 = vpop.f32.mrf.mxu2 }
 0x539   :  { %v583_v22 = vadd.f32 %v3008_v37, %v582_v14 }
 0x53b   :  { %630 = vrot.lane.b32.xlu1 %v583_v22, %s2778_s28 }
 0x53c   :  { %v138_v60 = vpop.xlane.xlu0 %137 }
 0x540   :  { %v585_v28 = vpop.f32.mrf.mxu2 }
 0x541   :  { %v3198_v3 = vadd.f32 %v3008_v37, %v585_v28  ;;  %v471_v29 = vpop.f32.mrf.mxu0 }
 0x542   :  { %v475_v30 = vmul.f32 %v474_v26, %v471_v29 }
 0x543   :  { %632 = vrot.lane.b32.xlu0 %v3198_v3, %s2778_s28 }
 0x544   :  { %508 = vmatmul.f32.vlgmr.msrb.gmra.mxu3 %v475_v30 }
 0x549   :  { %v3204_v41 = vpop.f32.mrf.mxu0 }
 0x54a   :  { %v556_v42 = vperm.slane %v3204_v41, 0 }
 0x54c   :  { %v557_v49 = vmul.f32 %v556_v42, %v549_v48 }
 0x54e   :  { %v3210_v51 = vadd.f32 %v3031_v54, %v557_v49 }
 0x550   :  { %v588_v53 = vadd.f32 %v583_v22, %v3210_v51 }
 0x552   :  { %v2479_v55 = vmul.f32 -1.442695, %v588_v53 }
 0x554   :  { %2569 = vpow2.f32 %v2479_v55 }
 0x55a   :  { %v2570_v56 = vpop.eup %2569 }
 0x55b   :  { %v596_v58 = vadd.f32 1.0, %v2570_v56 }
 0x55d   :  { %2571 = vrcp.f32 %v596_v58  ;;  %v609_v57 = vand.u32 2147483648, %v596_v58  ;;  %vm603_vm3 = vweird.f32 %v596_v58  ;;  %v607_v27 = vand.u32 2147483647, %v596_v58 }
 0x55e   :  { %2573 = vrcp.f32 %v138_v60 }
 0x55f   :  { %v610_v23 = vor.u32 1.1754944e-38, %v609_v57  ;;  %vm608_vm8 = vcmp.eq.f32.partialorder %v607_v27, 8.507059e+37 }
 0x563   :  { %v704_v45 = vpop.xlane.xlu2 %703  ;;  %v2572_v59 = vpop.eup %2571 }
 0x564   :  { %vm705_vm1 = vcmp.eq.f32.partialorder %v700_v20, %v704_v45  ;;  %v599_v61 = vmul.f32 %v2572_v59, %v596_v58  ;;  %vm604_vm2 = vweird.f32 %v2572_v59  ;;  %v2574_v19 = vpop.eup %2573 }
 0x565   :  { %v706_v36 = vsel %vm705_vm1, %v2873_v5, 8.0  ;;  %vm605_vm4 = vmor %vm603_vm3, %vm604_vm2  ;;  %v140_v13 = vmul.f32 %v2574_v19, %v138_v60 }
 0x566   :  { %v707_v40 = vsel %vm84_vm0, %v706_v36, inf  ;;  %v600_v62 = vsub.f32 1.0, %v599_v61 }
 0x567   :  { %708 = vmin.xlane.f32.xlu2 %v707_v40  ;;  %v141_v14 = vsub.f32 2.0, %v140_v13 }
 0x568   :  { %v601_v63 = vmul.f32 %v2572_v59, %v600_v62 }
 0x569   :  { %v142_v22 = vmul.f32 %v2574_v19, %v141_v14 }
 0x56a   :  { %v602_v0 = vadd.f32 %v2572_v59, %v601_v63 }
 0x56b   :  { %v143_v26 = vmul.f32 %v3173_v8, %v142_v22  ;;  %v2474_v8 = vld [vmem:[%s4046_s3 + $0x18] sm:$0xff] }
 0x56c   :  { %v606_v2 = vsel %vm605_vm4, %v2572_v59, %v602_v0 }
 0x56d   :  { %v3213_v9 = vsel %vm608_vm8, %v610_v23, %v606_v2  ;;  %2465 = vmatmul.msk.f32.vlgmr.msra.gmra.mxu1 %vm144_vm14, %v143_v26 }
 0x56e   :  { %865 = vmatpush.msra.mxu1 %v2888_v15  ;;  %v965_v15 = vld [vmem:[%s4044_s1 + $0x3] sm:$0x1]  ;;  %v662_v13 = vmul.f32 %v3213_v9, %v3072_v10 }
 0x570   :  { %866 = vmatpush.msra.mxu1 %v2893_v16  ;;  %v3234_v16 = vsel %vm966_vm10, %v965_v15, -1e+30 }
 0x572   :  { %867 = vmatpush.msra.mxu1 %v2902_v18  ;;  %v968_v18 = vsel %vm84_vm0, %v3234_v16, -inf }
 0x573   :  { %969 = vmax.xlane.f32.xlu1 %v968_v18 }
 0x574   :  { %868 = vmatpush.msra.mxu1 %v2924_v21 }
 0x5ad   :  { %v631_v7 = vpop.permute.xlu1 %630 }
 0x5ae   :  { %v636_v11 = vmul.f32 %v631_v7, %v3213_v9 }
 0x5b0   :  { %640 = vrot.lane.b32.xlu0 %v636_v11, %s2778_s28  ;;  %v650_v11 = vsub.f32 1.0, %v3213_v9 }
 0x5b5   :  { %v633_v53 = vpop.permute.xlu0 %632 }
 0x5da   :  { %v709_v28 = vpop.xlane.xlu2 %708 }
 0x5db   :  { %vm710_vm9 = vcmp.eq.f32.partialorder %v2873_v5, %v709_v28 }
 0x5dc   :  { %v711_v29 = vsel %vm710_vm9, -1e+30, %v700_v20  ;;  %v3224_v30 = vsel %vm710_vm9, 1.0, %v701_v12  ;;  %v168_v12 = vld [vmem:[%s4045_s2] sm:$0x1] }
 0x5dd   :  { %v713_v45 = vsel %vm84_vm0, %v711_v29, -inf }
 0x5de   :  { %714 = vmax.xlane.f32.xlu2 %v713_v45 }
 0x5e6   :  { %v970_v0 = vpop.xlane.xlu1 %969 }
 0x5e7   :  { %vm971_vm2 = vcmp.eq.f32.partialorder %v3234_v16, %v970_v0  ;;  %v762_v0 = vld [vmem:[%s4045_s2 + $0x2] sm:$0x1] }
 0x5e8   :  { %v972_v57 = vsel %vm971_vm2, %v2873_v5, 8.0 }
 0x5e9   :  { %v973_v27 = vsel %vm84_vm0, %v972_v57, inf }
 0x5ea   :  { %v165_v20 = vpop.f32.mrf.mxu1 }
 0x5eb   :  { %v169_v36 = vmul.f32 %v168_v12, %v165_v20 }
 0x5ed   :  { %202 = vmatmul.f32.vlgmr.msrb.gmra.mxu1 %v169_v36 }
 0x5ee   :  { %1068 = vmatpush.msrb.mxu1 %v3083_v32 }
 0x5f0   :  { %1069 = vmatpush.msrb.mxu1 %v3085_v33 }
 0x5f2   :  { %1070 = vmatpush.msrb.mxu1 %v3089_v34 }
 0x5f4   :  { %1071 = vmatpush.msrb.mxu1 %v3093_v35 }
 0x5f6   :  { %553 = vperm.xlu2 %2548, %v2474_v8   ;;  %1072 = vmatpush.msrb.mxu1 %v3100_v38 }
 0x5f8   :  { %1073 = vmatpush.msrb.mxu1 %v3104_v39 }
 0x5fa   :  { %1074 = vmatpush.msrb.mxu1 %v3113_v43 }
 0x5fc   :  { %1075 = vmatpush.msrb.mxu1 %v3117_v44 }
 0x5fe   :  { %1076 = vmatpush.msrb.mxu1 %v3121_v46 }
 0x600   :  { %1077 = vmatpush.msrb.mxu1 %v3125_v47 }
 0x622   :  { %v641_v58 = vpop.permute.xlu0 %640 }
 0x623   :  { %v646_v35 = vadd.f32 %v641_v58, %v3210_v51 }
 0x651   :  { %v715_v40 = vpop.xlane.xlu2 %714 }
 0x652   :  { %vm716_vm11 = vcmp.eq.f32.partialorder %v711_v29, %v715_v40 }
 0x653   :  { %v717_v48 = vsel %vm716_vm11, %v2873_v5, 8.0 }
 0x654   :  { %v718_v49 = vsel %vm84_vm0, %v717_v48, inf }
 0x655   :  { %719 = vmin.xlane.f32.xlu2 %v718_v49 }
 0x659   :  { %v554_v55 = vpop.permute.xlu2 %553 }
 0x65a   :  { %v558_v56 = vmul.f32 %v556_v42, %v554_v55 }
 0x65c   :  { %v560_v32 = vadd.f32 %v3031_v54, %v558_v56 }
 0x65e   :  { %v589_v33 = vadd.f32 %v3198_v3, %v560_v32 }
 0x660   :  { %v2480_v34 = vmul.f32 -1.442695, %v589_v33 }
 0x662   :  { %2575 = vpow2.f32 %v2480_v34 }
 0x663   :  { %2577 = vtanh.f32 %v646_v35 }
 0x668   :  { %v2576_v38 = vpop.eup %2575 }
 0x669   :  { %v597_v39 = vadd.f32 1.0, %v2576_v38  ;;  %v2578_v41 = vpop.eup %2577 }
 0x66b   :  { %2579 = vrcp.f32 %v597_v39  ;;  %v624_v59 = vand.u32 2147483648, %v597_v39  ;;  %v622_v61 = vand.u32 2147483647, %v597_v39  ;;  %vm618_vm13 = vweird.f32 %v597_v39 }
 0x66d   :  { %654 = vrot.lane.b32.xlu2 %v2578_v41, %s2779_s17  ;;  %v625_v51 = vor.u32 1.1754944e-38, %v624_v59  ;;  %vm623_vm1 = vcmp.eq.f32.partialorder %v622_v61, 8.507059e+37 }
 0x671   :  { %v2580_v43 = vpop.eup %2579 }
 0x672   :  { %v614_v3 = vmul.f32 %v2580_v43, %v597_v39  ;;  %vm619_vm12 = vweird.f32 %v2580_v43 }
 0x673   :  { %vm620_vm15 = vmor %vm618_vm13, %vm619_vm12  ;;  %vm1254_vm13 = vcmp.lt.s32.totalorder %v2862_v1, 4 }
 0x674   :  { %v615_v42 = vsub.f32 1.0, %v614_v3 }
 0x676   :  { %v616_v44 = vmul.f32 %v2580_v43, %v615_v42  ;;  %v3297_v42 = vpop.f32.mrf.mxu1 }
 0x678   :  { %v617_v46 = vadd.f32 %v2580_v43, %v616_v44 }
 0x67a   :  { %v621_v62 = vsel %vm620_vm15, %v2580_v43, %v617_v46 }
 0x67b   :  { %v626_v47 = vsel %vm623_vm1, %v625_v51, %v621_v62  ;;  %v810_v62 = vld [vmem:[%s4043_s0 + $0x2] sm:$0x1] }
 0x67c   :  { %v637_v63 = vmul.f32 %v633_v53, %v626_v47  ;;  %v651_v48 = vsub.f32 1.0, %v626_v47  ;;  %v663_v53 = vmul.f32 %v626_v47, %v3079_v31  ;;  %v3319_v47 = vld [vmem:[%s4052_s9 + $0x18] sm:$0xff] }
 0x67e   :  { %642 = vrot.lane.b32.xlu0 %v637_v63, %s2778_s28  ;;  %v3325_v63 = vld [vmem:[%s4052_s9 + $0x10] sm:$0xff] }
 0x6a8   :  { %974 = vmin.xlane.f32.xlu0 %v973_v27 }
 0x6c8   :  { %v720_v60 = vpop.xlane.xlu2 %719 }
 0x6c9   :  { %vm721_vm3 = vcmp.eq.f32.partialorder %v2873_v5, %v720_v60  ;;  %v3341_v60 = vld [vmem:[%s4050_s7 + $0x20] sm:$0x1] }
 0x6ca   :  { %v722_v2 = vsel %vm721_vm3, 1.0, %v3224_v30 }
 0x6cb   :  { %vm723_vm4 = vcmp.gt.f32.partialorder %v722_v2, 0.0  ;;  %v3348_v2 = vld [vmem:[%s4050_s7 + $0x18] sm:$0xff] }
 0x6cc   :  { %v724_v23 = vsel %vm723_vm4, %v3024_v50, -1e+30 }
 0x6cd   :  { %v725_v7 = vsel %vm84_vm0, %v724_v23, -inf }
 0x6ce   :  { %726 = vmax.xlane.f32.xlu1 %v725_v7 }
 0x6d0   :  { %v655_v19 = vpop.permute.xlu2 %654 }
 0x6d1   :  { %v660_v14 = vmul.f32 %v655_v19, %v650_v11  ;;  %v2482_v19 = vld [vmem:[%s4046_s3 + $0x20] sm:$0xff] }
 0x6d3   :  { %v3270_v22 = vadd.f32 %v662_v13, %v660_v14 }
 0x6d5   :  { %668 = vrot.lane.b32.xlu0 %v3270_v22, %s2779_s17 }
 0x6f0   :  { %v643_v26 = vpop.permute.xlu0 %642 }
 0x6f1   :  { %v647_v30 = vadd.f32 %v643_v26, %v560_v32 }
 0x6f3   :  { %2581 = vtanh.f32 %v647_v30 }
 0x6f9   :  { %v2582_v10 = vpop.eup %2581 }
 0x71b   :  { %v975_v28 = vpop.xlane.xlu0 %974 }
 0x71c   :  { %vm976_vm8 = vcmp.eq.f32.partialorder %v2873_v5, %v975_v28 }
 0x71d   :  { %v977_v50 = vsel %vm976_vm8, -1e+30, %v3234_v16  ;;  %v978_v31 = vsel %vm976_vm8, 1.0, %v2776_v17 }
 0x71e   :  { %v979_v29 = vsel %vm84_vm0, %v977_v50, -inf }
 0x71f   :  { %980 = vmax.xlane.f32.xlu1 %v979_v29 }
 0x738   :  { %656 = vrot.lane.b32.xlu1 %v2582_v10, %s2779_s17 }
 0x741   :  { %v727_v9 = vpop.xlane.xlu1 %726 }
 0x742   :  { %v728_v45 = vsub.f32 %v724_v23, %v727_v9 }
 0x744   :  { %v729_v8 = vmul.f32 1.442695, %v728_v45  ;;  %v1253_v45 = vld [vmem:[%s4044_s1 + $0x4] sm:$0x1] }
 0x746   :  { %2583 = vpow2.f32 %v729_v8  ;;  %v3378_v8 = vsel %vm1254_vm13, %v1253_v45, -1e+30 }
 0x747   :  { %v669_v15 = vpop.permute.xlu0 %668 }
 0x748   :  { %675 = vst.msk [vmem:[#allocation6 + $0x10] sm:$0xff] %vm46_vm5, %v669_v15  ;;  %2486 = vmatmul.msk.f32.vlgmr.msra.gmra.mxu1 %vm46_vm5, %v669_v15 }
 0x74c   :  { %v2584_v18 = vpop.eup %2583 }
 0x74d   :  { %v731_v20 = vsel %vm84_vm0, %v2584_v18, 0.0 }
 0x74e   :  { %732 = vadd.xlane.f32.xlu2 %v731_v20 }
 0x74f   :  { %v3306_v51 = vld [vmem:[#allocation6 + $0x10] sm:$0xff] }
 0x792   :  { %v981_v12 = vpop.xlane.xlu1 %980 }
 0x793   :  { %vm982_vm9 = vcmp.eq.f32.partialorder %v977_v50, %v981_v12 }
 0x794   :  { %v983_v36 = vsel %vm982_vm9, %v2873_v5, 8.0 }
 0x795   :  { %v984_v40 = vsel %vm84_vm0, %v983_v36, inf  ;;  %v2483_v36 = vld [vmem:[%s4046_s3 + $0x28] sm:$0xff] }
 0x796   :  { %985 = vmin.xlane.f32.xlu1 %v984_v40 }
 0x7aa   :  { %v657_v49 = vpop.permute.xlu1 %656 }
 0x7ab   :  { %v661_v55 = vmul.f32 %v657_v49, %v651_v48 }
 0x7ad   :  { %v3286_v56 = vadd.f32 %v663_v53, %v661_v55 }
 0x7af   :  { %670 = vrot.lane.b32.xlu0 %v3286_v56, %s2779_s17 }
 0x7c1   :  { %v733_v32 = vpop.xlane.xlu2 %732 }
 0x7c2   :  { %2585 = vrcp.f32 %v733_v32 }
 0x7c5   :  { %v870_v59 = vpop.f32.mrf.mxu1 }
 0x7c6   :  { %v871_v44 = vadd.f32 %v3008_v37, %v870_v59 }
 0x7c8   :  { %v2586_v33 = vpop.eup %2585 }
 0x7c9   :  { %v735_v58 = vmul.f32 %v2586_v33, %v733_v32 }
 0x7cb   :  { %v736_v34 = vsub.f32 2.0, %v735_v58 }
 0x7cd   :  { %v737_v35 = vmul.f32 %v2586_v33, %v736_v34 }
 0x7cf   :  { %v738_v38 = vmul.f32 %v2584_v18, %v737_v35  ;;  %v1256_v18 = vsel %vm84_vm0, %v3378_v8, -inf }
 0x7d1   :  { %2481 = vmatmul.msk.f32.vlgmr.msrb.gmra.mxu0 %vm144_vm14, %v738_v38 }
 0x7d2   :  { %1045 = vmatpush.msrb.mxu0 %v3132_v52 }
 0x7d9   :  { %2485 = vmatmul.msk.f32.vlgmr.msra.gmra.mxu0 %vm217_vm7, %v810_v62 }
 0x7da   :  { %1153 = vmatpush.msra.mxu0 %v3319_v47 }
 0x7dc   :  { %1154 = vmatpush.msra.mxu0 %v3325_v63 }
 0x809   :  { %v986_v39 = vpop.xlane.xlu1 %985 }
 0x80a   :  { %vm987_vm10 = vcmp.eq.f32.partialorder %v2873_v5, %v986_v39 }
 0x80b   :  { %v988_v41 = vsel %vm987_vm10, -1e+30, %v977_v50  ;;  %v989_v43 = vsel %vm987_vm10, 1.0, %v978_v31 }
 0x80c   :  { %v990_v3 = vsel %vm84_vm0, %v988_v41, -inf }
 0x80d   :  { %991 = vmax.xlane.f32.xlu0 %v990_v3 }
 0x821   :  { %v671_v61 = vpop.permute.xlu0 %670  ;;  %918 = vrot.lane.b32.xlu0 %v871_v44, %s2778_s28 }
 0x822   :  { %676 = vst.msk [vmem:[#allocation6 + $0x18] sm:$0xff] %vm46_vm5, %v671_v61  ;;  %2487 = vmatmul.msk.f32.gmra.mxu1 %vm46_vm5, %v671_v61 }
 0x829   :  { %v3303_v46 = vld [vmem:[#allocation6 + $0x18] sm:$0xff] }
 0x82a   :  { %792 = vmatpush.msrb.mxu2 %v3303_v46 }
 0x82c   :  { %793 = vmatpush.msrb.mxu2 %v3306_v51 }
 0x82e   :  { %794 = vmatpush.msrb.mxu2 %v3158_v4 }
 0x830   :  { %795 = vmatpush.msrb.mxu2 %v3162_v6 }
 0x832   :  { %1333 = vmatpush.msra.mxu2 %v3132_v52  ;;  %v3331_v52 = vld [vmem:[%s4052_s9 + $0x8] sm:$0xff] }
 0x833   :  { %1155 = vmatpush.msra.mxu0 %v3331_v52 }
 0x835   :  { %1156 = vmatpush.msra.mxu0 %v2924_v21  ;;  %v3354_v21 = vld [vmem:[%s4050_s7 + $0x10] sm:$0xff] }
 0x84e   :  { %v759_v57 = vpop.f32.mrf.mxu0 }
 0x84f   :  { %v763_v27 = vmul.f32 %v762_v0, %v759_v57 }
 0x851   :  { %796 = vmatmul.f32.vlgmr.msrb.gmra.mxu2 %v763_v27 }
 0x852   :  { %2502 = vmatpush.msk.msrb.mxu2 %vm221_vm6, %v3341_v60 }
 0x854   :  { %1402 = vmatpush.msrb.mxu2 %v3348_v2 }
 0x856   :  { %1403 = vmatpush.msrb.mxu2 %v3354_v21  ;;  %v831_v28 = vpop.f32.mrf.mxu0 }
 0x857   :  { %v844_v29 = vperm.slane %v831_v28, 0 }
 0x858   :  { %1404 = vmatpush.msrb.mxu2 %v2948_v24 }
 0x85a   :  { %1405 = vmatpush.msrb.mxu2 %v2962_v25 }
 0x880   :  { %v992_v23 = vpop.xlane.xlu0 %991 }
 0x881   :  { %vm993_vm11 = vcmp.eq.f32.partialorder %v988_v41, %v992_v23 }
 0x882   :  { %v994_v7 = vsel %vm993_vm11, %v2873_v5, 8.0 }
 0x883   :  { %v995_v11 = vsel %vm84_vm0, %v994_v7, inf }
 0x884   :  { %996 = vmin.xlane.f32.xlu2 %v995_v11 }
 0x893   :  { %v919_v35 = vpop.permute.xlu0 %918 }
 0x89c   :  { %836 = vperm.xlu2 %2548, %v2482_v19  }
 0x89f   :  { %v873_v13 = vpop.f32.mrf.mxu1 }
 0x8a0   :  { %v874_v14 = vadd.f32 %v3008_v37, %v873_v13 }
 0x8a4   :  { %920 = vrot.lane.b32.xlu2 %v874_v14, %s2778_s28 }
 0x8cd   :  { %1257 = vmax.xlane.f32.xlu2 %v1256_v18 }
 0x8f7   :  { %v997_v24 = vpop.xlane.xlu2 %996 }
 0x8f8   :  { %vm998_vm12 = vcmp.eq.f32.partialorder %v2873_v5, %v997_v24 }
 0x8f9   :  { %v3367_v25 = vsel %vm998_vm12, 1.0, %v989_v43  ;;  %v999_v26 = vsel %vm998_vm12, -1e+30, %v988_v41 }
 0x8fa   :  { %v1001_v50 = vsel %vm84_vm0, %v999_v26, -inf }
 0x8fb   :  { %1002 = vmax.xlane.f32.xlu1 %v1001_v50 }
 0x8ff   :  { %v837_v30 = vpop.permute.xlu2 %836 }
 0x900   :  { %v845_v10 = vmul.f32 %v844_v29, %v837_v30 }
 0x902   :  { %v3371_v9 = vadd.f32 %v3031_v54, %v845_v10 }
 0x904   :  { %v876_v37 = vadd.f32 %v871_v44, %v3371_v9 }
 0x906   :  { %v2488_v15 = vmul.f32 -1.442695, %v876_v37 }
 0x908   :  { %2587 = vpow2.f32 %v2488_v15 }
 0x90e   :  { %v2588_v20 = vpop.eup %2587 }
 0x90f   :  { %v884_v12 = vadd.f32 1.0, %v2588_v20 }
 0x911   :  { %2589 = vrcp.f32 %v884_v12  ;;  %v897_v53 = vand.u32 2147483648, %v884_v12  ;;  %v895_v32 = vand.u32 2147483647, %v884_v12  ;;  %vm891_vm1 = vweird.f32 %v884_v12 }
 0x913   :  { %v898_v58 = vor.u32 1.1754944e-38, %v897_v53  ;;  %vm896_vm3 = vcmp.eq.f32.partialorder %v895_v32, 8.507059e+37 }
 0x914   :  { %841 = vperm.xlu1 %2547, %v2483_v36  }
 0x917   :  { %v2590_v40 = vpop.eup %2589 }
 0x918   :  { %v887_v48 = vmul.f32 %v2590_v40, %v884_v12  ;;  %vm892_vm15 = vweird.f32 %v2590_v40 }
 0x919   :  { %vm893_vm2 = vmor %vm891_vm1, %vm892_vm15 }
 0x91a   :  { %v888_v49 = vsub.f32 1.0, %v887_v48 }
 0x91c   :  { %v889_v55 = vmul.f32 %v2590_v40, %v888_v49  ;;  %v1098_v49 = vld [vmem:[%s4043_s0 + $0x3] sm:$0x1] }
 0x91d   :  { %2494 = vmatmul.msk.f32.vlgmr.msra.gmra.mxu3 %vm217_vm7, %v1098_v49 }
 0x91e   :  { %v890_v33 = vadd.f32 %v2590_v40, %v889_v55 }
 0x920   :  { %v894_v34 = vsel %vm893_vm2, %v2590_v40, %v890_v33 }
 0x921   :  { %v3385_v38 = vsel %vm896_vm3, %v898_v58, %v894_v34 }
 0x922   :  { %v924_v39 = vmul.f32 %v919_v35, %v3385_v38  ;;  %v938_v58 = vsub.f32 1.0, %v3385_v38  ;;  %v950_v35 = vmul.f32 %v3385_v38, %v3270_v22 }
 0x924   :  { %928 = vrot.lane.b32.xlu0 %v924_v39, %s2778_s28 }
 0x96e   :  { %v1003_v31 = vpop.xlane.xlu1 %1002 }
 0x96f   :  { %vm1004_vm4 = vcmp.eq.f32.partialorder %v999_v26, %v1003_v31 }
 0x970   :  { %v1005_v41 = vsel %vm1004_vm4, %v2873_v5, 8.0 }
 0x971   :  { %v1006_v43 = vsel %vm84_vm0, %v1005_v41, inf }
 0x972   :  { %1007 = vmin.xlane.f32.xlu1 %v1006_v43 }
 0x986   :  { %v842_v3 = vpop.permute.xlu1 %841 }
 0x987   :  { %v846_v59 = vmul.f32 %v844_v29, %v842_v3 }
 0x989   :  { %v848_v44 = vadd.f32 %v3031_v54, %v846_v59  ;;  %v921_v54 = vpop.permute.xlu2 %920 }
 0x98b   :  { %v877_v61 = vadd.f32 %v874_v14, %v848_v44 }
 0x98d   :  { %v2489_v62 = vmul.f32 -1.442695, %v877_v61 }
 0x98f   :  { %2591 = vpow2.f32 %v2489_v62 }
 0x991   :  { %v1258_v29 = vpop.xlane.xlu2 %1257 }
 0x992   :  { %vm1259_vm12 = vcmp.eq.f32.partialorder %v3378_v8, %v1258_v29 }
 0x993   :  { %v1260_v30 = vsel %vm1259_vm12, %v2873_v5, 8.0 }
 0x994   :  { %v1261_v10 = vsel %vm84_vm0, %v1260_v30, inf }
 0x995   :  { %v2592_v0 = vpop.eup %2591 }
 0x996   :  { %v885_v57 = vadd.f32 1.0, %v2592_v0  ;;  %v929_v20 = vpop.permute.xlu0 %928 }
 0x997   :  { %v934_v12 = vadd.f32 %v929_v20, %v3371_v9 }
 0x998   :  { %2593 = vrcp.f32 %v885_v57  ;;  %v912_v11 = vand.u32 2147483648, %v885_v57  ;;  %v910_v13 = vand.u32 2147483647, %v885_v57  ;;  %vm906_vm9 = vweird.f32 %v885_v57 }
 0x999   :  { %2595 = vtanh.f32 %v934_v12 }
 0x99a   :  { %v913_v26 = vor.u32 1.1754944e-38, %v912_v11  ;;  %vm911_vm11 = vcmp.eq.f32.partialorder %v910_v13, 8.507059e+37 }
 0x99e   :  { %v2594_v27 = vpop.eup %2593 }
 0x99f   :  { %v902_v23 = vmul.f32 %v2594_v27, %v885_v57  ;;  %vm907_vm8 = vweird.f32 %v2594_v27  ;;  %v2596_v36 = vpop.eup %2595 }
 0x9a0   :  { %vm908_vm10 = vmor %vm906_vm9, %vm907_vm8  ;;  %vm1542_vm8 = vcmp.lt.s32.totalorder %v2862_v1, 5 }
 0x9a1   :  { %v903_v7 = vsub.f32 1.0, %v902_v23  ;;  %v2491_v23 = vld [vmem:[%s4046_s3 + $0x30] sm:$0xff] }
 0x9a3   :  { %v904_v19 = vmul.f32 %v2594_v27, %v903_v7 }
 0x9a5   :  { %v905_v24 = vadd.f32 %v2594_v27, %v904_v19 }
 0x9a7   :  { %v909_v28 = vsel %vm908_vm10, %v2594_v27, %v905_v24 }
 0x9a8   :  { %v914_v14 = vsel %vm911_vm11, %v913_v26, %v909_v28  ;;  %v3441_v26 = vld [vmem:[%s4052_s9] sm:$0xff] }
 0x9a9   :  { %v925_v50 = vmul.f32 %v921_v54, %v914_v14  ;;  %v939_v22 = vsub.f32 1.0, %v914_v14  ;;  %v951_v62 = vmul.f32 %v914_v14, %v3286_v56  ;;  %v2492_v56 = vld [vmem:[%s4046_s3 + $0x38] sm:$0xff] }
 0x9ab   :  { %930 = vrot.lane.b32.xlu0 %v925_v50, %s2778_s28 }
 0x9d5   :  { %1262 = vmin.xlane.f32.xlu0 %v1261_v10 }
 0x9e5   :  { %v1008_v37 = vpop.xlane.xlu1 %1007 }
 0x9e6   :  { %vm1009_vm13 = vcmp.eq.f32.partialorder %v2873_v5, %v1008_v37 }
 0x9e7   :  { %v1010_v45 = vsel %vm1009_vm13, 1.0, %v3367_v25 }
 0x9e8   :  { %vm1011_vm15 = vcmp.gt.f32.partialorder %v1010_v45, 0.0  ;;  %v3469_v45 = vld [vmem:[%s4050_s7 + $0x8] sm:$0xff] }
 0x9e9   :  { %v1012_v15 = vsel %vm1011_vm15, %v3234_v16, -1e+30 }
 0x9ea   :  { %v1013_v18 = vsel %vm84_vm0, %v1012_v15, -inf }
 0x9eb   :  { %1014 = vmax.xlane.f32.xlu2 %v1013_v18 }
 0xa03   :  { %942 = vrot.lane.b32.xlu2 %v2596_v36, %s2779_s17 }
 0xa1d   :  { %v931_v40 = vpop.permute.xlu0 %930 }
 0xa1e   :  { %v935_v9 = vadd.f32 %v931_v40, %v848_v44 }
 0xa20   :  { %2597 = vtanh.f32 %v935_v9 }
 0xa26   :  { %v2598_v33 = vpop.eup %2597 }
 0xa48   :  { %v1263_v48 = vpop.xlane.xlu0 %1262 }
 0xa49   :  { %vm1264_vm1 = vcmp.eq.f32.partialorder %v2873_v5, %v1263_v48 }
 0xa4a   :  { %v1265_v25 = vsel %vm1264_vm1, -1e+30, %v3378_v8  ;;  %v1266_v14 = vsel %vm1264_vm1, 1.0, %v2776_v17 }
 0xa4b   :  { %v1267_v16 = vsel %vm84_vm0, %v1265_v25, -inf }
 0xa4c   :  { %1268 = vmax.xlane.f32.xlu1 %v1267_v16 }
 0xa5e   :  { %v1015_v53 = vpop.xlane.xlu2 %1014 }
 0xa5f   :  { %v1016_v55 = vsub.f32 %v1012_v15, %v1015_v53 }
 0xa61   :  { %v1017_v32 = vmul.f32 1.442695, %v1016_v55 }
 0xa63   :  { %2599 = vpow2.f32 %v1017_v32 }
 0xa65   :  { %944 = vrot.lane.b32.xlu1 %v2598_v33, %s2779_s17 }
 0xa66   :  { %v943_v34 = vpop.permute.xlu2 %942 }
 0xa67   :  { %v948_v39 = vmul.f32 %v943_v34, %v938_v58 }
 0xa69   :  { %v2600_v31 = vpop.eup %2599  ;;  %v3415_v41 = vadd.f32 %v950_v35, %v948_v39 }
 0xa6a   :  { %v1019_v43 = vsel %vm84_vm0, %v2600_v31, 0.0 }
 0xa6b   :  { %1020 = vadd.xlane.f32.xlu0 %v1019_v43  ;;  %956 = vrot.lane.b32.xlu2 %v3415_v41, %s2779_s17  ;;  %v3515_v43 = vpop.f32.mrf.mxu3 }
 0xabf   :  { %v1269_v3 = vpop.xlane.xlu1 %1268 }
 0xac0   :  { %vm1270_vm2 = vcmp.eq.f32.partialorder %v1265_v25, %v1269_v3  ;;  %v1119_v3 = vpop.f32.mrf.mxu3 }
 0xac1   :  { %v1271_v59 = vsel %vm1270_vm2, %v2873_v5, 8.0 }
 0xac2   :  { %v1272_v44 = vsel %vm84_vm0, %v1271_v59, inf  ;;  %v1132_v59 = vperm.slane %v1119_v3, 0 }
 0xac3   :  { %1273 = vmin.xlane.f32.xlu0 %v1272_v44 }
 0xac5   :  { %v957_v61 = vpop.permute.xlu2 %956 }
 0xac6   :  { %963 = vst.msk [vmem:[#allocation6 + $0x20] sm:$0xff] %vm46_vm5, %v957_v61 }
 0xacd   :  { %v3455_v37 = vld [vmem:[#allocation6 + $0x20] sm:$0xff] }
 0xad7   :  { %v945_v38 = vpop.permute.xlu1 %944 }
 0xad8   :  { %v949_v0 = vmul.f32 %v945_v38, %v939_v22 }
 0xada   :  { %v3424_v57 = vadd.f32 %v951_v62, %v949_v0 }
 0xadc   :  { %958 = vrot.lane.b32.xlu2 %v3424_v57, %s2779_s17 }
 0xade   :  { %v1021_v27 = vpop.xlane.xlu0 %1020 }
 0xadf   :  { %2601 = vrcp.f32 %v1021_v27 }
 0xae4   :  { %1124 = vperm.xlu2 %2548, %v2491_v23  }
 0xae5   :  { %v2602_v7 = vpop.eup %2601 }
 0xae6   :  { %v1023_v11 = vmul.f32 %v2602_v7, %v1021_v27 }
 0xae8   :  { %v1024_v19 = vsub.f32 2.0, %v1023_v11 }
 0xaea   :  { %v1025_v13 = vmul.f32 %v2602_v7, %v1024_v19 }
 0xaec   :  { %v1026_v24 = vmul.f32 %v2600_v31, %v1025_v13  ;;  %1129 = vperm.xlu2 %2548, %v2492_v56  }
 0xaee   :  { %2490 = vmatmul.msk.f32.vlgmr.msrb.gmra.mxu0 %vm144_vm14, %v1026_v24 }
 0xaef   :  { %1441 = vmatpush.msrb.mxu0 %v3319_v47 }
 0xaf1   :  { %1442 = vmatpush.msrb.mxu0 %v3325_v63 }
 0xaf3   :  { %1443 = vmatpush.msrb.mxu0 %v3331_v52 }
 0xaf5   :  { %1444 = vmatpush.msrb.mxu0 %v3441_v26 }
 0xaf6   :  { %2495 = vmatmul.msk.f32.vlgmr.msra.gmra.mxu0 %vm46_vm5, %v957_v61  ;;  %v3520_v61 = vld [vmem:[%s4051_s8] ss:$0 sm:$0xff] }
 0xb36   :  { %v959_v28 = vpop.permute.xlu2 %958  ;;  %v1274_v54 = vpop.xlane.xlu0 %1273 }
 0xb37   :  { %964 = vst.msk [vmem:[#allocation6 + $0x28] sm:$0xff] %vm46_vm5, %v959_v28  ;;  %vm1275_vm3 = vcmp.eq.f32.partialorder %v2873_v5, %v1274_v54  ;;  %2496 = vmatmul.msk.f32.gmra.mxu0 %vm46_vm5, %v959_v28 }
 0xb38   :  { %v1276_v50 = vsel %vm1275_vm3, -1e+30, %v1265_v25  ;;  %v1277_v29 = vsel %vm1275_vm3, 1.0, %v1266_v14 }
 0xb39   :  { %v1278_v30 = vsel %vm84_vm0, %v1276_v50, -inf }
 0xb3a   :  { %1279 = vmax.xlane.f32.xlu1 %v1278_v30 }
 0xb3e   :  { %v3452_v10 = vld [vmem:[#allocation6 + $0x28] sm:$0xff]  ;;  %v1125_v32 = vpop.permute.xlu2 %1124 }
 0xb3f   :  { %1078 = vmatpush.msrb.mxu1 %v3452_v10  ;;  %v1133_v44 = vmul.f32 %v1132_v59, %v1125_v32 }
 0xb41   :  { %1079 = vmatpush.msrb.mxu1 %v3455_v37  ;;  %v3523_v22 = vadd.f32 %v3520_v61, %v1133_v44 }
 0xb43   :  { %1080 = vmatpush.msrb.mxu1 %v3303_v46 }
 0xb45   :  { %1081 = vmatpush.msrb.mxu1 %v3306_v51 }
 0xb46   :  { %v1130_v58 = vpop.permute.xlu2 %1129 }
 0xb47   :  { %1082 = vmatpush.msrb.mxu1 %v3158_v4  ;;  %v3475_v4 = vld [vmem:[%s4050_s7] sm:$0xff]  ;;  %v1134_v62 = vmul.f32 %v1132_v59, %v1130_v58 }
 0xb49   :  { %1083 = vmatpush.msrb.mxu1 %v3162_v6  ;;  %v1050_v6 = vld [vmem:[%s4045_s2 + $0x3] sm:$0x1]  ;;  %v3527_v27 = vadd.f32 %v3520_v61, %v1134_v62 }
 0xb4b   :  { %2511 = vmatpush.msk.msra.mxu1 %vm221_vm6, %v3341_v60 }
 0xb4d   :  { %1690 = vmatpush.msra.mxu1 %v3348_v2 }
 0xb4f   :  { %1691 = vmatpush.msra.mxu1 %v3354_v21 }
 0xb51   :  { %1692 = vmatpush.msra.mxu1 %v3469_v45 }
 0xb53   :  { %1693 = vmatpush.msra.mxu1 %v3475_v4 }
 0xb6b   :  { %v1047_v15 = vpop.f32.mrf.mxu0 }
 0xb6c   :  { %v1051_v18 = vmul.f32 %v1050_v6, %v1047_v15 }
 0xb6e   :  { %1084 = vmatmul.f32.vlgmr.msrb.gmra.mxu1 %v1051_v18 }
 0xb6f   :  { %2520 = vmatpush.msk.msrb.mxu1 %vm221_vm6, %v3341_v60  ;;  %v3492_v60 = vld [vmem:[%s4053_s10] ss:$0 sm:$0xff] }
 0xb71   :  { %1978 = vmatpush.msrb.mxu1 %v3348_v2 }
 0xb73   :  { %1979 = vmatpush.msrb.mxu1 %v3354_v21  ;;  %v1158_v20 = vpop.f32.mrf.mxu0  ;;  %v1541_v21 = vld [vmem:[%s4044_s1 + $0x5] sm:$0x1] }
 0xb74   :  { %v3500_v25 = vsel %vm1542_vm8, %v1541_v21, -1e+30  ;;  %v1159_v33 = vadd.f32 %v3492_v60, %v1158_v20 }
 0xb75   :  { %1980 = vmatpush.msrb.mxu1 %v3469_v45  ;;  %v1544_v16 = vsel %vm84_vm0, %v3500_v25, -inf }
 0xb76   :  { %v1164_v38 = vadd.f32 %v1159_v33, %v3523_v22 }
 0xb77   :  { %1981 = vmatpush.msrb.mxu1 %v3475_v4 }
 0xb78   :  { %v2497_v0 = vmul.f32 -1.442695, %v1164_v38 }
 0xb7a   :  { %2603 = vpow2.f32 %v2497_v0 }
 0xb80   :  { %v2604_v11 = vpop.eup %2603 }
 0xb81   :  { %v1172_v19 = vadd.f32 1.0, %v2604_v11 }
 0xb83   :  { %vm1179_vm13 = vweird.f32 %v1172_v19 }
 0xbad   :  { %v1280_v12 = vpop.xlane.xlu1 %1279 }
 0xbae   :  { %vm1281_vm4 = vcmp.eq.f32.partialorder %v1276_v50, %v1280_v12  ;;  %v1185_v12 = vand.u32 2147483648, %v1172_v19 }
 0xbaf   :  { %v1282_v36 = vsel %vm1281_vm4, %v2873_v5, 8.0 }
 0xbb0   :  { %v1283_v40 = vsel %vm84_vm0, %v1282_v36, inf  ;;  %v1183_v36 = vand.u32 2147483647, %v1172_v19 }
 0xbb1   :  { %1284 = vmin.xlane.f32.xlu0 %v1283_v40 }
 0xbb2   :  { %vm1184_vm1 = vcmp.eq.f32.partialorder %v1183_v36, 8.507059e+37  ;;  %v3569_v36 = vld [vmem:[#allocation6 + $0x78] sm:$0xff] }
 0xbb3   :  { %1356 = vmatpush.msrb.mxu3 %v3569_v36  ;;  %1644 = vmatpush.msra.mxu0 %v3569_v36 }
 0xbb4   :  { %v1161_v48 = vpop.f32.mrf.mxu0 }
 0xbb5   :  { %v1162_v2 = vadd.f32 %v3492_v60, %v1161_v48 }
 0xbb7   :  { %1208 = vrot.lane.b32.xlu2 %v1162_v2, %s2778_s28  ;;  %v1165_v23 = vadd.f32 %v1162_v2, %v3527_v27  ;;  %v1186_v2 = vor.u32 1.1754944e-38, %v1185_v12 }
 0xbb9   :  { %v2498_v7 = vmul.f32 -1.442695, %v1165_v23 }
 0xbbb   :  { %2605 = vpow2.f32 %v2498_v7 }
 0xbbc   :  { %2607 = vrcp.f32 %v1172_v19 }
 0xbc1   :  { %v2606_v56 = vpop.eup %2605 }
 0xbc2   :  { %v1173_v13 = vadd.f32 1.0, %v2606_v56  ;;  %v2608_v24 = vpop.eup %2607 }
 0xbc3   :  { %v1175_v54 = vmul.f32 %v2608_v24, %v1172_v19  ;;  %vm1180_vm12 = vweird.f32 %v2608_v24 }
 0xbc4   :  { %2609 = vrcp.f32 %v1173_v13  ;;  %vm1181_vm15 = vmor %vm1179_vm13, %vm1180_vm12  ;;  %vm1194_vm3 = vweird.f32 %v1173_v13  ;;  %v1198_v32 = vand.u32 2147483647, %v1173_v13 }
 0xbc6   :  { %vm1199_vm8 = vcmp.eq.f32.partialorder %v1198_v32, 8.507059e+37 }
 0xbca   :  { %v2610_v30 = vpop.eup %2609 }
 0xbcb   :  { %v1190_v6 = vmul.f32 %v2610_v30, %v1173_v13  ;;  %vm1195_vm2 = vweird.f32 %v2610_v30 }
 0xbcc   :  { %vm1196_vm4 = vmor %vm1194_vm3, %vm1195_vm2 }
 0xbcd   :  { %v1191_v18 = vsub.f32 1.0, %v1190_v6 }
 0xbcf   :  { %v1192_v40 = vmul.f32 %v2610_v30, %v1191_v18 }
 0xbe0   :  { %1545 = vmax.xlane.f32.xlu2 %v1544_v16 }
 0xc11   :  { %v3510_v34 = vpop.permute.xlu2 %1208 }
 0xc24   :  { %v1285_v49 = vpop.xlane.xlu0 %1284 }
 0xc25   :  { %vm1286_vm9 = vcmp.eq.f32.partialorder %v2873_v5, %v1285_v49  ;;  %v1193_v49 = vadd.f32 %v2610_v30, %v1192_v40  ;;  %v3577_v40 = vld [vmem:[#allocation6 + $0x68] sm:$0xff] }
 0xc26   :  { %v3505_v9 = vsel %vm1286_vm9, 1.0, %v1277_v29  ;;  %v1287_v53 = vsel %vm1286_vm9, -1e+30, %v1276_v50  ;;  %v1176_v29 = vsub.f32 1.0, %v1175_v54 }
 0xc27   :  { %v1289_v55 = vsel %vm84_vm0, %v1287_v53, -inf }
 0xc28   :  { %1290 = vmax.xlane.f32.xlu0 %v1289_v55  ;;  %v1177_v15 = vmul.f32 %v2608_v24, %v1176_v29  ;;  %v1200_v55 = vand.u32 2147483648, %v1173_v13 }
 0xc2a   :  { %v1178_v20 = vadd.f32 %v2608_v24, %v1177_v15  ;;  %v1201_v58 = vor.u32 1.1754944e-38, %v1200_v55 }
 0xc2c   :  { %v1182_v48 = vsel %vm1181_vm15, %v2608_v24, %v1178_v20 }
 0xc2d   :  { %v1187_v21 = vsel %vm1184_vm1, %v1186_v2, %v1182_v48  ;;  %v3580_v48 = vld [vmem:[#allocation6 + $0x60] sm:$0xff] }
 0xc3c   :  { %1206 = vrot.lane.b32.xlu0 %v1159_v33, %s2778_s28  ;;  %v1197_v33 = vsel %vm1196_vm4, %v2610_v30, %v1193_v49  ;;  %v1349_v49 = vld [vmem:[#allocation6 + $0x48] sm:$0xff] }
 0xc53   :  { %v1546_v35 = vpop.xlane.xlu2 %1545 }
 0xc54   :  { %vm1547_vm10 = vcmp.eq.f32.partialorder %v3500_v25, %v1546_v35  ;;  %v1202_v35 = vsel %vm1199_vm8, %v1201_v58, %v1197_v33 }
 0xc55   :  { %v1548_v39 = vsel %vm1547_vm10, %v2873_v5, 8.0  ;;  %v1227_v30 = vsub.f32 1.0, %v1202_v35  ;;  %v1239_v15 = vmul.f32 %v1202_v35, %v3424_v57  ;;  %v3573_v57 = vld [vmem:[#allocation6 + $0x70] sm:$0xff] }
 0xc56   :  { %v1549_v31 = vsel %vm84_vm0, %v1548_v39, inf  ;;  %v1213_v39 = vmul.f32 %v3510_v34, %v1202_v35  ;;  %1357 = vmatpush.msrb.mxu3 %v3573_v57  ;;  %1645 = vmatpush.msra.mxu0 %v3573_v57 }
 0xc57   :  { %1550 = vmin.xlane.f32.xlu2 %v1549_v31 }
 0xc58   :  { %1358 = vmatpush.msrb.mxu3 %v3577_v40  ;;  %1646 = vmatpush.msra.mxu0 %v3577_v40 }
 0xc5a   :  { %1359 = vmatpush.msrb.mxu3 %v3580_v48  ;;  %1647 = vmatpush.msra.mxu0 %v3580_v48 }
 0xc9b   :  { %v1291_v28 = vpop.xlane.xlu0 %1290 }
 0xc9c   :  { %vm1292_vm11 = vcmp.eq.f32.partialorder %v1287_v53, %v1291_v28 }
 0xc9d   :  { %v1293_v14 = vsel %vm1292_vm11, %v2873_v5, 8.0 }
 0xc9e   :  { %v1294_v50 = vsel %vm84_vm0, %v1293_v14, inf }
 0xc9f   :  { %1295 = vmin.xlane.f32.xlu0 %v1294_v50 }
 0xcae   :  { %v1207_v16 = vpop.permute.xlu0 %1206 }
 0xcaf   :  { %v1212_v53 = vmul.f32 %v1207_v16, %v1187_v21  ;;  %v1350_v16 = vld [vmem:[#allocation6 + $0x50] sm:$0xff] }
 0xcb1   :  { %1216 = vrot.lane.b32.xlu1 %v1212_v53, %s2778_s28  ;;  %v1348_v53 = vld [vmem:[#allocation6 + $0x40] sm:$0xff] }
 0xcb9   :  { %1218 = vrot.lane.b32.xlu1 %v1213_v39, %s2778_s28 }
 0xcca   :  { %v3535_v31 = vpop.xlane.xlu2 %1550 }
 0xccb   :  { %vm1552_vm9 = vcmp.eq.f32.partialorder %v2873_v5, %v3535_v31  ;;  %v3616_v31 = vld [vmem:[#allocation6] sm:$0xff] }
 0xccc   :  { %v3543_v3 = vsel %vm1552_vm9, -1e+30, %v3500_v25 }
 0xccd   :  { %v1555_v59 = vsel %vm84_vm0, %v3543_v3, -inf }
 0xcce   :  { %1556 = vmax.xlane.f32.xlu0 %v1555_v59  ;;  %v3591_v59 = vld [vmem:[%s4047_s4] sm:$0xff] }
 0xd12   :  { %v1296_v44 = vpop.xlane.xlu0 %1295 }
 0xd13   :  { %vm1297_vm10 = vcmp.eq.f32.partialorder %v2873_v5, %v1296_v44 }
 0xd14   :  { %v1298_v34 = vsel %vm1297_vm10, 1.0, %v3505_v9  ;;  %v1226_v9 = vsub.f32 1.0, %v1187_v21 }
 0xd15   :  { %vm1299_vm11 = vcmp.gt.f32.partialorder %v1298_v34, 0.0 }
 0xd16   :  { %v1300_v38 = vsel %vm1299_vm11, %v3378_v8, -1e+30  ;;  %v1238_v8 = vmul.f32 %v1187_v21, %v3415_v41  ;;  %v1351_v21 = vld [vmem:[#allocation6 + $0x58] sm:$0xff] }
 0xd17   :  { %v1301_v62 = vsel %vm84_vm0, %v1300_v38, -inf  ;;  %1360 = vmatpush.msrb.mxu3 %v1351_v21  ;;  %1648 = vmatpush.msra.mxu0 %v1351_v21 }
 0xd18   :  { %1302 = vmax.xlane.f32.xlu1 %v1301_v62 }
 0xd19   :  { %1361 = vmatpush.msrb.mxu3 %v1350_v16  ;;  %1649 = vmatpush.msra.mxu0 %v1350_v16 }
 0xd1b   :  { %1362 = vmatpush.msrb.mxu3 %v1349_v49 }
 0xd1d   :  { %1363 = vmatpush.msrb.mxu3 %v1348_v53 }
 0xd23   :  { %v1217_v0 = vpop.permute.xlu1 %1216 }
 0xd24   :  { %v1222_v23 = vadd.f32 %v1217_v0, %v3523_v22  ;;  %v1554_v0 = vsel %vm1552_vm9, 1.0, %v2776_v17 }
 0xd26   :  { %2611 = vtanh.f32 %v1222_v23 }
 0xd2b   :  { %v1219_v7 = vpop.permute.xlu1 %1218 }
 0xd2c   :  { %v2612_v11 = vpop.eup %2611  ;;  %v1223_v19 = vadd.f32 %v1219_v7, %v3527_v27 }
 0xd2d   :  { %1230 = vrot.lane.b32.xlu2 %v2612_v11, %s2779_s17 }
 0xd2e   :  { %2613 = vtanh.f32 %v1223_v19  ;;  %v3613_v19 = vld [vmem:[#allocation6 + $0x8] sm:$0xff] }
 0xd34   :  { %v2614_v56 = vpop.eup %2613 }
 0xd35   :  { %1232 = vrot.lane.b32.xlu0 %v2614_v56, %s2779_s17 }
 0xd41   :  { %v1557_v29 = vpop.xlane.xlu0 %1556 }
 0xd42   :  { %vm1558_vm12 = vcmp.eq.f32.partialorder %v3543_v3, %v1557_v29 }
 0xd43   :  { %v1559_v20 = vsel %vm1558_vm12, %v2873_v5, 8.0 }
 0xd44   :  { %v1560_v12 = vsel %vm84_vm0, %v1559_v20, inf }
 0xd87   :  { %v1231_v13 = vpop.permute.xlu2 %1230 }
 0xd88   :  { %v1236_v24 = vmul.f32 %v1231_v13, %v1226_v9 }
 0xd8a   :  { %v3556_v28 = vadd.f32 %v1238_v8, %v1236_v24 }
 0xd8b   :  { %v1303_v54 = vpop.xlane.xlu1 %1302 }
 0xd8c   :  { %v1304_v22 = vsub.f32 %v1300_v38, %v1303_v54  ;;  %1244 = vrot.lane.b32.xlu0 %v3556_v28, %s2779_s17 }
 0xd8e   :  { %v1305_v14 = vmul.f32 1.442695, %v1304_v22 }
 0xd90   :  { %2615 = vpow2.f32 %v1305_v14 }
 0xd96   :  { %v2616_v27 = vpop.eup %2615 }
 0xd97   :  { %v1307_v50 = vsel %vm84_vm0, %v2616_v27, 0.0 }
 0xd98   :  { %1308 = vadd.xlane.f32.xlu2 %v1307_v50 }
 0xda7   :  { %v1233_v6 = vpop.permute.xlu0 %1232 }
 0xda8   :  { %v1237_v41 = vmul.f32 %v1233_v6, %v1227_v30 }
 0xdaa   :  { %v3562_v18 = vadd.f32 %v1239_v15, %v1237_v41 }
 0xdac   :  { %1246 = vrot.lane.b32.xlu1 %v3562_v18, %s2779_s17 }
 0xdb6   :  { %1561 = vmin.xlane.f32.xlu0 %v1560_v12 }
 0xdfe   :  { %v1245_v2 = vpop.permute.xlu0 %1244 }
 0xdff   :  { %1251 = vst.msk [vmem:[#allocation6 + $0x30] sm:$0xff] %vm46_vm5, %v1245_v2  ;;  %2504 = vmatmul.msk.f32.vlgmr.msrb.gmra.mxu0 %vm46_vm5, %v1245_v2 }
 0xe06   :  { %v3599_v38 = vld [vmem:[#allocation6 + $0x30] sm:$0xff] }
 0xe0b   :  { %v1309_v55 = vpop.xlane.xlu2 %1308 }
 0xe0c   :  { %2617 = vrcp.f32 %v1309_v55 }
 0xe12   :  { %v2618_v32 = vpop.eup %2617 }
 0xe13   :  { %v1311_v33 = vmul.f32 %v2618_v32, %v1309_v55 }
 0xe15   :  { %v1312_v58 = vsub.f32 2.0, %v1311_v33 }
 0xe17   :  { %v1313_v35 = vmul.f32 %v2618_v32, %v1312_v58 }
 0xe19   :  { %v1314_v39 = vmul.f32 %v2616_v27, %v1313_v35 }
 0xe1b   :  { %2499 = vmatmul.msk.f32.vlgmr.msra.gmra.mxu2 %vm144_vm14, %v1314_v39 }
 0xe1c   :  { %1621 = vmatpush.msra.mxu2 %v3591_v59 }
 0xe1e   :  { %v1247_v44 = vpop.permute.xlu1 %1246 }
 0xe1f   :  { %1252 = vst.msk [vmem:[#allocation6 + $0x38] sm:$0xff] %vm46_vm5, %v1247_v44  ;;  %2505 = vmatmul.msk.f32.gmra.mxu0 %vm46_vm5, %v1247_v44 }
 0xe26   :  { %v3596_v34 = vld [vmem:[#allocation6 + $0x38] sm:$0xff] }
 0xe27   :  { %1364 = vmatpush.msrb.mxu3 %v3596_v34 }
 0xe29   :  { %1365 = vmatpush.msrb.mxu3 %v3599_v38  ;;  %v1562_v62 = vpop.xlane.xlu0 %1561 }
 0xe2a   :  { %vm1563_vm13 = vcmp.eq.f32.partialorder %v2873_v5, %v1562_v62 }
 0xe2b   :  { %v1564_v23 = vsel %vm1563_vm13, -1e+30, %v3543_v3  ;;  %v1565_v7 = vsel %vm1563_vm13, 1.0, %v1554_v0  ;;  %1366 = vmatpush.msrb.mxu3 %v3452_v10  ;;  %v1386_v3 = vld [vmem:[%s4043_s0 + $0x4] sm:$0x1] }
 0xe2c   :  { %v1566_v11 = vsel %vm84_vm0, %v1564_v23, -inf  ;;  %2503 = vmatmul.msk.f32.vlgmr.msrb.gmra.mxu2 %vm217_vm7, %v1386_v3 }
 0xe2d   :  { %1367 = vmatpush.msrb.mxu3 %v3455_v37  ;;  %1567 = vmax.xlane.f32.xlu1 %v1566_v11 }
 0xe2e   :  { %1729 = vmatpush.msrb.mxu2 %v3319_v47 }
 0xe2f   :  { %1368 = vmatpush.msrb.mxu3 %v3303_v46  ;;  %v3628_v46 = vpop.f32.mrf.mxu2 }
 0xe30   :  { %1730 = vmatpush.msrb.mxu2 %v3325_v63  ;;  %v2500_v63 = vld [vmem:[%s4046_s3 + $0x40] sm:$0xff] }
 0xe31   :  { %1369 = vmatpush.msrb.mxu3 %v3306_v51  ;;  %v1338_v51 = vld [vmem:[%s4045_s2 + $0x4] sm:$0x1] }
 0xe32   :  { %1731 = vmatpush.msrb.mxu2 %v3331_v52 }
 0xe33   :  { %1370 = vmatpush.msrb.mxu3 %v3613_v19 }
 0xe34   :  { %1732 = vmatpush.msrb.mxu2 %v3441_v26 }
 0xe35   :  { %1371 = vmatpush.msrb.mxu3 %v3616_v31 }
 0xe37   :  { %1909 = vmatpush.msra.mxu3 %v3591_v59 }
 0xe7c   :  { %v1446_v52 = vpop.f32.mrf.mxu0 }
 0xe7d   :  { %v1447_v24 = vadd.f32 %v3492_v60, %v1446_v52 }
 0xe9c   :  { %v1449_v54 = vpop.f32.mrf.mxu0 }
 0xe9d   :  { %v1450_v22 = vadd.f32 %v3492_v60, %v1449_v54 }
 0xe9e   :  { %v1335_v56 = vpop.f32.mrf.mxu2 }
 0xe9f   :  { %v1339_v9 = vmul.f32 %v1338_v51, %v1335_v56 }
 0xea0   :  { %v1568_v13 = vpop.xlane.xlu1 %1567 }
 0xea1   :  { %vm1569_vm15 = vcmp.eq.f32.partialorder %v1564_v23, %v1568_v13  ;;  %1372 = vmatmul.f32.vlgmr.msrb.gmra.mxu3 %v1339_v9 }
 0xea2   :  { %v1570_v8 = vsel %vm1569_vm15, %v2873_v5, 8.0  ;;  %1932 = vmatpush.msrb.mxu3 %v3569_v36 }
 0xea3   :  { %v1571_v47 = vsel %vm84_vm0, %v1570_v8, inf }
 0xea4   :  { %1572 = vmin.xlane.f32.xlu2 %v1571_v47  ;;  %1933 = vmatpush.msrb.mxu3 %v3573_v57  ;;  %v2501_v57 = vld [vmem:[%s4046_s3 + $0x48] sm:$0xff] }
 0xea6   :  { %1934 = vmatpush.msrb.mxu3 %v3577_v40 }
 0xea8   :  { %1935 = vmatpush.msrb.mxu3 %v3580_v48 }
 0xeaf   :  { %v1407_v29 = vpop.f32.mrf.mxu2 }
 0xeb0   :  { %v1420_v6 = vperm.slane %v1407_v29, 0 }
 0xebc   :  { %1412 = vperm.xlu2 %2548, %v2500_v63  }
 0xec4   :  { %1494 = vrot.lane.b32.xlu2 %v1447_v24, %s2778_s28 }
 0xecc   :  { %1496 = vrot.lane.b32.xlu2 %v1450_v22, %s2778_s28 }
 0xf17   :  { %v1573_v14 = vpop.xlane.xlu2 %1572 }
 0xf18   :  { %vm1574_vm1 = vcmp.eq.f32.partialorder %v2873_v5, %v1573_v14 }
 0xf19   :  { %v3647_v27 = vsel %vm1574_vm1, 1.0, %v1565_v7  ;;  %v1575_v50 = vsel %vm1574_vm1, -1e+30, %v1564_v23 }
 0xf1a   :  { %v1577_v30 = vsel %vm84_vm0, %v1575_v50, -inf }
 0xf1b   :  { %1578 = vmax.xlane.f32.xlu0 %v1577_v30 }
 0xf1f   :  { %v1413_v15 = vpop.permute.xlu2 %1412 }
 0xf20   :  { %v1421_v41 = vmul.f32 %v1420_v6, %v1413_v15 }
 0xf22   :  { %v1423_v20 = vadd.f32 %v3520_v61, %v1421_v41 }
 0xf24   :  { %v1452_v12 = vadd.f32 %v1447_v24, %v1423_v20 }
 0xf26   :  { %v2506_v36 = vmul.f32 -1.442695, %v1452_v12 }
 0xf27   :  { %v1495_v39 = vpop.permute.xlu2 %1494 }
 0xf28   :  { %2619 = vpow2.f32 %v2506_v36 }
 0xf2e   :  { %v2620_v40 = vpop.eup %2619 }
 0xf2f   :  { %v1460_v48 = vadd.f32 1.0, %v2620_v40  ;;  %1417 = vperm.xlu0 %2546, %v2501_v57   ;;  %v1497_v15 = vpop.permute.xlu2 %1496 }
 0xf31   :  { %2621 = vrcp.f32 %v1460_v48  ;;  %v1473_v49 = vand.u32 2147483648, %v1460_v48  ;;  %v1471_v55 = vand.u32 2147483647, %v1460_v48  ;;  %vm1467_vm3 = vweird.f32 %v1460_v48 }
 0xf33   :  { %v1474_v33 = vor.u32 1.1754944e-38, %v1473_v49  ;;  %vm1472_vm8 = vcmp.eq.f32.partialorder %v1471_v55, 8.507059e+37 }
 0xf37   :  { %v2622_v2 = vpop.eup %2621 }
 0xf38   :  { %v1463_v21 = vmul.f32 %v2622_v2, %v1460_v48  ;;  %vm1468_vm2 = vweird.f32 %v2622_v2  ;;  %v1674_v48 = vld [vmem:[%s4043_s0 + $0x5] sm:$0x1] }
 0xf39   :  { %vm1469_vm4 = vmor %vm1467_vm3, %vm1468_vm2  ;;  %2512 = vmatmul.msk.f32.vlgmr.msra.gmra.mxu1 %vm217_vm7, %v1674_v48  ;;  %vm2118_vm2 = vcmp.lt.s32.totalorder %v2862_v1, 7 }
 0xf3a   :  { %v1464_v16 = vsub.f32 1.0, %v1463_v21  ;;  %2197 = vmatpush.msra.mxu1 %v3591_v59  ;;  %v2510_v59 = vld [vmem:[%s4046_s3 + $0x58] sm:$0xff] }
 0xf3c   :  { %v1465_v53 = vmul.f32 %v2622_v2, %v1464_v16 }
 0xf3e   :  { %v1466_v32 = vadd.f32 %v2622_v2, %v1465_v53 }
 0xf40   :  { %v1470_v58 = vsel %vm1469_vm4, %v2622_v2, %v1466_v32 }
 0xf41   :  { %v1475_v35 = vsel %vm1472_vm8, %v1474_v33, %v1470_v58 }
 0xf42   :  { %v1500_v44 = vmul.f32 %v1495_v39, %v1475_v35 }
 0xf44   :  { %1504 = vrot.lane.b32.xlu0 %v1500_v44, %s2778_s28 }
 0xf8e   :  { %v1579_v62 = vpop.xlane.xlu0 %1578 }
 0xf8f   :  { %vm1580_vm9 = vcmp.eq.f32.partialorder %v1575_v50, %v1579_v62 }
 0xf90   :  { %v1581_v0 = vsel %vm1580_vm9, %v2873_v5, 8.0 }
 0xf91   :  { %v1582_v23 = vsel %vm84_vm0, %v1581_v0, inf }
 0xf92   :  { %1583 = vmin.xlane.f32.xlu1 %v1582_v23 }
 0xfa1   :  { %v1418_v7 = vpop.permute.xlu0 %1417 }
 0xfa2   :  { %v1422_v11 = vmul.f32 %v1420_v6, %v1418_v7  ;;  %v2509_v7 = vld [vmem:[%s4046_s3 + $0x50] sm:$0xff] }
 0xfa4   :  { %v1424_v3 = vadd.f32 %v3520_v61, %v1422_v11 }
 0xfa6   :  { %v1453_v51 = vadd.f32 %v1450_v22, %v1424_v3 }
 0xfa8   :  { %v2507_v56 = vmul.f32 -1.442695, %v1453_v51 }
 0xfaa   :  { %2623 = vpow2.f32 %v2507_v56  ;;  %v3699_v56 = vld [vmem:[#allocation6 + $0x18] sm:$0xff] }
 0xfb0   :  { %v2624_v9 = vpop.eup %2623 }
 0xfb1   :  { %v1461_v13 = vadd.f32 1.0, %v2624_v9  ;;  %v3702_v9 = vld [vmem:[#allocation6 + $0x10] sm:$0xff] }
 0xfb3   :  { %2625 = vrcp.f32 %v1461_v13  ;;  %v1488_v54 = vand.u32 2147483648, %v1461_v13  ;;  %v1486_v50 = vand.u32 2147483647, %v1461_v13  ;;  %vm1482_vm11 = vweird.f32 %v1461_v13 }
 0xfb5   :  { %v1489_v22 = vor.u32 1.1754944e-38, %v1488_v54  ;;  %vm1487_vm13 = vcmp.eq.f32.partialorder %v1486_v50, 8.507059e+37  ;;  %v3729_v50 = vld [vmem:[%s4052_s9 + $0x10] sm:$0xff] }
 0xfb6   :  { %v1505_v8 = vpop.permute.xlu0 %1504 }
 0xfb7   :  { %v1510_v47 = vadd.f32 %v1505_v8, %v1423_v20  ;;  %v2693_v8 = vld [vmem:[%s4050_s7 + $0x10] sm:$0xff] }
 0xfb9   :  { %v2626_v63 = vpop.eup %2625  ;;  %2627 = vtanh.f32 %v1510_v47 }
 0xfba   :  { %v1478_v52 = vmul.f32 %v2626_v63, %v1461_v13  ;;  %vm1483_vm10 = vweird.f32 %v2626_v63 }
 0xfbb   :  { %vm1484_vm12 = vmor %vm1482_vm11, %vm1483_vm10 }
 0xfbc   :  { %v1479_v24 = vsub.f32 1.0, %v1478_v52 }
 0xfbe   :  { %v1480_v14 = vmul.f32 %v2626_v63, %v1479_v24 }
 0xfbf   :  { %v2628_v29 = vpop.eup %2627 }
 0xfc0   :  { %1518 = vrot.lane.b32.xlu0 %v2628_v29, %s2779_s17  ;;  %v1481_v30 = vadd.f32 %v2626_v63, %v1480_v14  ;;  %v3723_v14 = vld [vmem:[%s4052_s9 + $0x18] sm:$0xff] }
 0xfc2   :  { %v1485_v6 = vsel %vm1484_vm12, %v2626_v63, %v1481_v30 }
 0xfc3   :  { %v1490_v41 = vsel %vm1487_vm13, %v1489_v22, %v1485_v6 }
 0xfc4   :  { %v1501_v20 = vmul.f32 %v1497_v15, %v1490_v41  ;;  %v1515_v39 = vsub.f32 1.0, %v1490_v41  ;;  %v1527_v62 = vmul.f32 %v1490_v41, %v3562_v18 }
 0xfc6   :  { %1506 = vrot.lane.b32.xlu2 %v1501_v20, %s2778_s28 }
0x1005   :  { %v1584_v12 = vpop.xlane.xlu1 %1583 }
0x1006   :  { %vm1585_vm15 = vcmp.eq.f32.partialorder %v2873_v5, %v1584_v12 }
0x1007   :  { %v1586_v36 = vsel %vm1585_vm15, 1.0, %v3647_v27  ;;  %v1514_v27 = vsub.f32 1.0, %v1475_v35 }
0x1008   :  { %vm1587_vm1 = vcmp.gt.f32.partialorder %v1586_v36, 0.0  ;;  %v1829_v36 = vld [vmem:[%s4044_s1 + $0x6] sm:$0x1] }
0x1009   :  { %v1588_v57 = vsel %vm1587_vm1, %v3500_v25, -1e+30  ;;  %v1526_v25 = vmul.f32 %v1475_v35, %v3556_v28 }
0x100a   :  { %v1589_v40 = vsel %vm84_vm0, %v1588_v57, -inf }
0x100b   :  { %1590 = vmax.xlane.f32.xlu1 %v1589_v40 }
0x1020   :  { %v1507_v2 = vpop.permute.xlu2 %1506 }
0x1021   :  { %v1511_v21 = vadd.f32 %v1507_v2, %v1424_v3 }
0x1023   :  { %2629 = vtanh.f32 %v1511_v21 }
0x1029   :  { %v2630_v16 = vpop.eup %2629 }
0x102a   :  { %1520 = vrot.lane.b32.xlu2 %v2630_v16, %s2779_s17  ;;  %v2117_v16 = vld [vmem:[%s4044_s1 + $0x7] sm:$0x1] }
0x1032   :  { %v1519_v49 = vpop.permute.xlu0 %1518 }
0x1033   :  { %v1524_v53 = vmul.f32 %v1519_v49, %v1514_v27  ;;  %v3766_v27 = vsel %vm2118_vm2, %v2117_v16, -1e+30 }
0x1035   :  { %v3671_v55 = vadd.f32 %v1526_v25, %v1524_v53  ;;  %v2120_v25 = vsel %vm84_vm0, %v3766_v27, -inf }
0x1037   :  { %1532 = vrot.lane.b32.xlu0 %v3671_v55, %s2779_s17 }
0x103f   :  { %1705 = vperm.xlu0 %2546, %v2510_v59  }
0x107e   :  { %v1591_v32 = vpop.xlane.xlu1 %1590 }
0x107f   :  { %v1592_v33 = vsub.f32 %v1588_v57, %v1591_v32 }
0x1081   :  { %v1593_v58 = vmul.f32 1.442695, %v1592_v33 }
0x1083   :  { %2631 = vpow2.f32 %v1593_v58 }
0x1084   :  { %v1521_v44 = vpop.permute.xlu2 %1520 }
0x1085   :  { %v1525_v28 = vmul.f32 %v1521_v44, %v1515_v39 }
0x1087   :  { %v3679_v35 = vadd.f32 %v1527_v62, %v1525_v28 }
0x1089   :  { %v2632_v0 = vpop.eup %2631  ;;  %1534 = vrot.lane.b32.xlu2 %v3679_v35, %s2779_s17 }
0x108a   :  { %v1595_v23 = vsel %vm84_vm0, %v2632_v0, 0.0 }
0x108b   :  { %1596 = vadd.xlane.f32.xlu1 %v1595_v23 }
0x10a4   :  { %1700 = vperm.xlu1 %2547, %v2509_v7  }
0x10a9   :  { %v1533_v11 = vpop.permute.xlu0 %1532 }
0x10aa   :  { %1539 = vst.msk [vmem:[#allocation6 + $0x40] sm:$0xff] %vm46_vm5, %v1533_v11 }
0x10b1   :  { %v3692_v51 = vld [vmem:[#allocation6 + $0x40] sm:$0xff]  ;;  %v1706_v32 = vpop.permute.xlu0 %1705 }
0x10e3   :  { %v1535_v3 = vpop.permute.xlu2 %1534 }
0x10e4   :  { %1540 = vst.msk [vmem:[#allocation6 + $0x48] sm:$0xff] %vm46_vm5, %v1535_v3 }
0x10eb   :  { %v3689_v18 = vld [vmem:[#allocation6 + $0x48] sm:$0xff] }
0x10ec   :  { %1650 = vmatpush.msra.mxu0 %v3689_v18 }
0x10ee   :  { %1651 = vmatpush.msra.mxu0 %v3692_v51 }
0x10f0   :  { %1652 = vmatpush.msra.mxu0 %v3596_v34 }
0x10f2   :  { %1653 = vmatpush.msra.mxu0 %v3599_v38 }
0x10f4   :  { %1654 = vmatpush.msra.mxu0 %v3452_v10  ;;  %v2691_v10 = vld [vmem:[%s4050_s7 + $0x20] sm:$0x1] }
0x10f6   :  { %1655 = vmatpush.msra.mxu0 %v3455_v37  ;;  %v2692_v37 = vld [vmem:[%s4050_s7 + $0x18] sm:$0xff] }
0x10f8   :  { %1656 = vmatpush.msra.mxu0 %v3699_v56 }
0x10fa   :  { %1657 = vmatpush.msra.mxu0 %v3702_v9 }
0x10fc   :  { %1658 = vmatpush.msra.mxu0 %v3613_v19 }
0x10fe   :  { %v1597_v13 = vpop.xlane.xlu1 %1596  ;;  %1659 = vmatpush.msra.mxu0 %v3616_v31 }
0x10ff   :  { %2633 = vrcp.f32 %v1597_v13 }
0x1100   :  { %2529 = vmatpush.msk.msrb.mxu0 %vm221_vm6, %v2691_v10  ;;  %vm1830_vm6 = vcmp.lt.s32.totalorder %v2862_v1, 6 }
0x1101   :  { %v3754_v48 = vsel %vm1830_vm6, %v1829_v36, -1e+30 }
0x1102   :  { %2266 = vmatpush.msrb.mxu0 %v2692_v37  ;;  %v1832_v2 = vsel %vm84_vm0, %v3754_v48, -inf }
0x1104   :  { %2267 = vmatpush.msrb.mxu0 %v2693_v8 }
0x1105   :  { %v2634_v47 = vpop.eup %2633 }
0x1106   :  { %2268 = vmatpush.msrb.mxu0 %v3469_v45  ;;  %v1599_v63 = vmul.f32 %v2634_v47, %v1597_v13  ;;  %v3735_v45 = vld [vmem:[%s4052_s9 + $0x8] sm:$0xff] }
0x1108   :  { %2269 = vmatpush.msrb.mxu0 %v3475_v4  ;;  %v1600_v52 = vsub.f32 2.0, %v1599_v63  ;;  %v1626_v4 = vld [vmem:[%s4045_s2 + $0x5] sm:$0x1] }
0x110a   :  { %v1601_v24 = vmul.f32 %v2634_v47, %v1600_v52 }
0x110c   :  { %v1602_v54 = vmul.f32 %v2632_v0, %v1601_v24 }
0x110e   :  { %2508 = vmatmul.msk.f32.vlgmr.msra.gmra.mxu2 %vm144_vm14, %v1602_v54 }
0x110f   :  { %2017 = vmatpush.msra.mxu2 %v3723_v14 }
0x1111   :  { %2018 = vmatpush.msra.mxu2 %v3729_v50 }
0x1113   :  { %2019 = vmatpush.msra.mxu2 %v3735_v45 }
0x1115   :  { %2020 = vmatpush.msra.mxu2 %v3441_v26  ;;  %v3748_v26 = vpop.f32.mrf.mxu1 }
0x1116   :  { %2513 = vmatmul.msk.f32.vlgmr.msrb.gmra.mxu2 %vm46_vm5, %v1533_v11  ;;  %v1701_v12 = vpop.permute.xlu1 %1700 }
0x111d   :  { %v1695_v20 = vpop.f32.mrf.mxu1 }
0x111e   :  { %2514 = vmatmul.msk.f32.gmra.mxu2 %vm46_vm5, %v1535_v3  ;;  %v1708_v57 = vperm.slane %v1695_v20, 0 }
0x1120   :  { %v1709_v40 = vmul.f32 %v1708_v57, %v1701_v12  ;;  %v1710_v33 = vmul.f32 %v1708_v57, %v1706_v32 }
0x1122   :  { %v1712_v39 = vadd.f32 %v3520_v61, %v1710_v33 }
0x1191   :  { %v1623_v29 = vpop.f32.mrf.mxu2 }
0x1192   :  { %v1627_v30 = vmul.f32 %v1626_v4, %v1623_v29 }
0x1194   :  { %1660 = vmatmul.f32.vlgmr.msra.gmra.mxu0 %v1627_v30 }
0x1199   :  { %v1734_v22 = vpop.f32.mrf.mxu2 }
0x119a   :  { %v1735_v6 = vadd.f32 %v3492_v60, %v1734_v22 }
0x119c   :  { %1782 = vrot.lane.b32.xlu2 %v1735_v6, %s2778_s28 }
0x11a1   :  { %v1737_v15 = vpop.f32.mrf.mxu2 }
0x11a2   :  { %v1738_v41 = vadd.f32 %v3492_v60, %v1737_v15  ;;  %v3759_v60 = vadd.f32 %v3520_v61, %v1709_v40 }
0x11a4   :  { %1784 = vrot.lane.b32.xlu0 %v1738_v41, %s2778_s28  ;;  %v1740_v21 = vadd.f32 %v1735_v6, %v3759_v60  ;;  %v1741_v62 = vadd.f32 %v1738_v41, %v1712_v39 }
0x11a6   :  { %v2515_v49 = vmul.f32 -1.442695, %v1740_v21  ;;  %v2516_v0 = vmul.f32 -1.442695, %v1741_v62 }
0x11a8   :  { %2635 = vpow2.f32 %v2515_v49 }
0x11ae   :  { %v2636_v53 = vpop.eup %2635 }
0x11af   :  { %v1748_v59 = vadd.f32 1.0, %v2636_v53 }
0x11b1   :  { %2637 = vrcp.f32 %v1748_v59  ;;  %v1761_v11 = vand.u32 2147483648, %v1748_v59  ;;  %vm1755_vm4 = vweird.f32 %v1748_v59  ;;  %v1759_v3 = vand.u32 2147483647, %v1748_v59 }
0x11b2   :  { %2639 = vpow2.f32 %v2516_v0 }
0x11b3   :  { %v1762_v37 = vor.u32 1.1754944e-38, %v1761_v11  ;;  %vm1760_vm9 = vcmp.eq.f32.partialorder %v1759_v3, 8.507059e+37 }
0x11b7   :  { %v2638_v58 = vpop.eup %2637 }
0x11b8   :  { %v1751_v44 = vmul.f32 %v2638_v58, %v1748_v59  ;;  %vm1756_vm3 = vweird.f32 %v2638_v58  ;;  %v2640_v13 = vpop.eup %2639 }
0x11b9   :  { %vm1757_vm8 = vmor %vm1755_vm4, %vm1756_vm3  ;;  %v1749_v8 = vadd.f32 1.0, %v2640_v13 }
0x11ba   :  { %v1752_v28 = vsub.f32 1.0, %v1751_v44 }
0x11bb   :  { %2641 = vrcp.f32 %v1749_v8  ;;  %v1776_v30 = vand.u32 2147483648, %v1749_v8  ;;  %vm1770_vm11 = vweird.f32 %v1749_v8  ;;  %v1774_v22 = vand.u32 2147483647, %v1749_v8 }
0x11bc   :  { %v1753_v23 = vmul.f32 %v2638_v58, %v1752_v28 }
0x11bd   :  { %v1777_v15 = vor.u32 1.1754944e-38, %v1776_v30  ;;  %vm1775_vm13 = vcmp.eq.f32.partialorder %v1774_v22, 8.507059e+37  ;;  %v3849_v22 = vld [vmem:[#allocation6 + $0x28] sm:$0xff] }
0x11be   :  { %v1754_v7 = vadd.f32 %v2638_v58, %v1753_v23 }
0x11c0   :  { %v1758_v10 = vsel %vm1757_vm8, %v2638_v58, %v1754_v7 }
0x11c1   :  { %v1763_v47 = vsel %vm1760_vm9, %v1762_v37, %v1758_v10  ;;  %v2642_v52 = vpop.eup %2641 }
0x11c2   :  { %v1766_v24 = vmul.f32 %v2642_v52, %v1749_v8  ;;  %vm1771_vm10 = vweird.f32 %v2642_v52  ;;  %v1802_v0 = vsub.f32 1.0, %v1763_v47  ;;  %v1814_v7 = vmul.f32 %v1763_v47, %v3671_v55  ;;  %v1962_v55 = vld [vmem:[%s4043_s0 + $0x6] sm:$0x1] }
0x11c3   :  { %vm1772_vm12 = vmor %vm1770_vm11, %vm1771_vm10  ;;  %2521 = vmatmul.msk.f32.vlgmr.msrb.gmra.mxu1 %vm217_vm7, %v1962_v55 }
0x11c4   :  { %v1767_v54 = vsub.f32 1.0, %v1766_v24  ;;  %2305 = vmatpush.msrb.mxu1 %v3723_v14 }
0x11c5   :  { %1833 = vmax.xlane.f32.xlu2 %v1832_v2 }
0x11c6   :  { %v1768_v4 = vmul.f32 %v2642_v52, %v1767_v54  ;;  %2306 = vmatpush.msrb.mxu1 %v3729_v50  ;;  %v2519_v54 = vld [vmem:[%s4046_s3 + $0x68] sm:$0xff] }
0x11c8   :  { %v1769_v29 = vadd.f32 %v2642_v52, %v1768_v4  ;;  %2307 = vmatpush.msrb.mxu1 %v3735_v45 }
0x11ca   :  { %v1773_v6 = vsel %vm1772_vm12, %v2642_v52, %v1769_v29 }
0x11cb   :  { %v1778_v20 = vsel %vm1775_vm13, %v1777_v15, %v1773_v6  ;;  %v3852_v6 = vld [vmem:[#allocation6 + $0x20] sm:$0xff] }
0x11cc   :  { %v1803_v13 = vsub.f32 1.0, %v1778_v20  ;;  %v1815_v37 = vmul.f32 %v1778_v20, %v3679_v35  ;;  %v2697_v35 = vld [vmem:[%s4052_s9] sm:$0xff] }
0x11cd   :  { %2308 = vmatpush.msrb.mxu1 %v2697_v35 }
0x11ce   :  { %2121 = vmax.xlane.f32.xlu0 %v2120_v25 }
0x11f6   :  { %v1783_v63 = vpop.permute.xlu2 %1782 }
0x11f7   :  { %v1788_v61 = vmul.f32 %v1783_v63, %v1763_v47 }
0x11f9   :  { %1792 = vrot.lane.b32.xlu1 %v1788_v61, %s2778_s28 }
0x1216   :  { %v1785_v41 = vpop.permute.xlu0 %1784 }
0x1217   :  { %v1789_v12 = vmul.f32 %v1785_v41, %v1778_v20 }
0x1219   :  { %1794 = vrot.lane.b32.xlu1 %v1789_v12, %s2778_s28 }
0x1238   :  { %v1834_v36 = vpop.xlane.xlu2 %1833 }
0x1239   :  { %vm1835_vm15 = vcmp.eq.f32.partialorder %v3754_v48, %v1834_v36 }
0x123a   :  { %v1836_v57 = vsel %vm1835_vm15, %v2873_v5, 8.0 }
0x123b   :  { %v1837_v40 = vsel %vm84_vm0, %v1836_v57, inf }
0x1241   :  { %v2122_v2 = vpop.xlane.xlu0 %2121 }
0x1242   :  { %vm2123_vm1 = vcmp.eq.f32.partialorder %v3766_v27, %v2122_v2 }
0x1243   :  { %1838 = vmin.xlane.f32.xlu1 %v1837_v40  ;;  %v2124_v21 = vsel %vm2123_vm1, %v2873_v5, 8.0 }
0x1244   :  { %v2125_v16 = vsel %vm84_vm0, %v2124_v21, inf }
0x1245   :  { %2126 = vmin.xlane.f32.xlu2 %v2125_v16 }
0x126b   :  { %v1793_v49 = vpop.permute.xlu1 %1792 }
0x126c   :  { %v1798_v25 = vadd.f32 %v1793_v49, %v3759_v60 }
0x126e   :  { %2643 = vtanh.f32 %v1798_v25 }
0x1274   :  { %v2644_v53 = vpop.eup %2643 }
0x1275   :  { %1806 = vrot.lane.b32.xlu0 %v2644_v53, %s2779_s17  ;;  %v2518_v53 = vld [vmem:[%s4046_s3 + $0x60] sm:$0xff] }
0x128b   :  { %v1795_v59 = vpop.permute.xlu1 %1794 }
0x128c   :  { %v1799_v32 = vadd.f32 %v1795_v59, %v1712_v39 }
0x128e   :  { %2645 = vtanh.f32 %v1799_v32  ;;  %v3883_v32 = vld [vmem:[%s4053_s10] ss:$0 sm:$0xff] }
0x1294   :  { %v2646_v33 = vpop.eup %2645 }
0x1295   :  { %1808 = vrot.lane.b32.xlu2 %v2646_v33, %s2779_s17 }
0x12b6   :  { %v3782_v58 = vpop.xlane.xlu1 %1838 }
0x12b7   :  { %vm1840_vm6 = vcmp.eq.f32.partialorder %v2873_v5, %v3782_v58 }
0x12b8   :  { %v3790_v60 = vsel %vm1840_vm6, -1e+30, %v3754_v48  ;;  %v3792_v44 = vpop.xlane.xlu2 %2126 }
0x12b9   :  { %vm2128_vm2 = vcmp.eq.f32.partialorder %v2873_v5, %v3792_v44  ;;  %v1843_v39 = vsel %vm84_vm0, %v3790_v60, -inf }
0x12ba   :  { %v3802_v62 = vsel %vm2128_vm2, -1e+30, %v3766_v27  ;;  %1844 = vmax.xlane.f32.xlu0 %v1843_v39  ;;  %v2130_v12 = vsel %vm2128_vm2, 1.0, %v2776_v17 }
0x12bb   :  { %v2131_v28 = vsel %vm84_vm0, %v3802_v62, -inf }
0x12bc   :  { %2132 = vmax.xlane.f32.xlu1 %v2131_v28 }
0x12e7   :  { %v1807_v23 = vpop.permute.xlu0 %1806 }
0x12e8   :  { %v1812_v11 = vmul.f32 %v1807_v23, %v1802_v0 }
0x12ea   :  { %v3807_v3 = vadd.f32 %v1814_v7, %v1812_v11  ;;  %v1983_v11 = vpop.f32.mrf.mxu1 }
0x12ec   :  { %1820 = vrot.lane.b32.xlu2 %v3807_v3, %s2779_s17 }
0x12ef   :  { %v1809_v10 = vpop.permute.xlu2 %1808 }
0x12f0   :  { %v1813_v8 = vmul.f32 %v1809_v10, %v1803_v13  ;;  %v1996_v10 = vperm.slane %v1983_v11, 0 }
0x12f2   :  { %v3812_v63 = vadd.f32 %v1815_v37, %v1813_v8  ;;  %v3900_v8 = vld [vmem:[%s4051_s8] ss:$0 sm:$0xff]  ;;  %s2785_s8 = smov 128  }
0x12f4   :  { %1822 = vrot.lane.b32.xlu1 %v3812_v63, %s2779_s17 }
0x132d   :  { %v1845_v47 = vpop.xlane.xlu0 %1844 }
0x132e   :  { %vm1846_vm3 = vcmp.eq.f32.partialorder %v3790_v60, %v1845_v47 }
0x132f   :  { %v2133_v61 = vpop.xlane.xlu1 %2132  ;;  %v1847_v52 = vsel %vm1846_vm3, %v2873_v5, 8.0 }
0x1330   :  { %vm2134_vm4 = vcmp.eq.f32.partialorder %v3802_v62, %v2133_v61  ;;  %v1848_v24 = vsel %vm84_vm0, %v1847_v52, inf }
0x1331   :  { %1849 = vmin.xlane.f32.xlu2 %v1848_v24  ;;  %v2135_v14 = vsel %vm2134_vm4, %v2873_v5, 8.0 }
0x1332   :  { %v2136_v50 = vsel %vm84_vm0, %v2135_v14, inf }
0x1333   :  { %2137 = vmin.xlane.f32.xlu1 %v2136_v50 }
0x1346   :  { %v1821_v45 = vpop.permute.xlu2 %1820 }
0x1347   :  { %1827 = vst.msk [vmem:[#allocation6 + $0x50] sm:$0xff] %vm46_vm5, %v1821_v45  ;;  %2522 = vmatmul.msk.f32.vlgmr.msra.gmra.mxu2 %vm46_vm5, %v1821_v45 }
0x134c   :  { %1993 = vperm.xlu1 %2547, %v2519_v54  }
0x134e   :  { %v3842_v30 = vld [vmem:[#allocation6 + $0x50] sm:$0xff] }
0x1366   :  { %v1823_v4 = vpop.permute.xlu1 %1822 }
0x1367   :  { %1828 = vst.msk [vmem:[#allocation6 + $0x58] sm:$0xff] %vm46_vm5, %v1823_v4  ;;  %2523 = vmatmul.msk.f32.gmra.mxu2 %vm46_vm5, %v1823_v4 }
0x136e   :  { %v3839_v29 = vld [vmem:[#allocation6 + $0x58] sm:$0xff] }
0x136f   :  { %1936 = vmatpush.msrb.mxu3 %v3839_v29 }
0x1371   :  { %1937 = vmatpush.msrb.mxu3 %v3842_v30 }
0x1373   :  { %1938 = vmatpush.msrb.mxu3 %v3689_v18 }
0x1375   :  { %1939 = vmatpush.msrb.mxu3 %v3692_v51 }
0x1377   :  { %1940 = vmatpush.msrb.mxu3 %v3596_v34  ;;  %v1842_v34 = vsel %vm1840_vm6, 1.0, %v2776_v17 }
0x1379   :  { %1941 = vmatpush.msrb.mxu3 %v3599_v38 }
0x137b   :  { %1942 = vmatpush.msrb.mxu3 %v3849_v22 }
0x137d   :  { %1943 = vmatpush.msrb.mxu3 %v3852_v6 }
0x137f   :  { %1944 = vmatpush.msrb.mxu3 %v3699_v56 }
0x1381   :  { %1945 = vmatpush.msrb.mxu3 %v3702_v9 }
0x1383   :  { %1946 = vmatpush.msrb.mxu3 %v3613_v19 }
0x1385   :  { %1947 = vmatpush.msrb.mxu3 %v3616_v31 }
0x13a4   :  { %v1850_v15 = vpop.xlane.xlu2 %1849 }
0x13a5   :  { %vm1851_vm8 = vcmp.eq.f32.partialorder %v2873_v5, %v1850_v15 }
0x13a6   :  { %v1852_v38 = vsel %vm1851_vm8, -1e+30, %v3790_v60  ;;  %v1853_v41 = vsel %vm1851_vm8, 1.0, %v1842_v34  ;;  %v2138_v20 = vpop.xlane.xlu1 %2137 }
0x13a7   :  { %vm2139_vm9 = vcmp.eq.f32.partialorder %v2873_v5, %v2138_v20  ;;  %v1854_v19 = vsel %vm84_vm0, %v1852_v38, -inf }
0x13a8   :  { %v2141_v31 = vsel %vm2139_vm9, 1.0, %v2130_v12  ;;  %1855 = vmax.xlane.f32.xlu0 %v1854_v19  ;;  %v2140_v36 = vsel %vm2139_vm9, -1e+30, %v3802_v62 }
0x13a9   :  { %v2142_v57 = vsel %vm84_vm0, %v2140_v36, -inf }
0x13b0   :  { %2143 = vmax.xlane.f32.xlu0 %v2142_v57 }
0x13be   :  { %v1994_v35 = vpop.permute.xlu1 %1993 }
0x13bf   :  { %v1998_v61 = vmul.f32 %v1996_v10, %v1994_v35 }
0x13c1   :  { %v3907_v24 = vadd.f32 %v3900_v8, %v1998_v61 }
0x13ca   :  { %v2022_v25 = vpop.f32.mrf.mxu2 }
0x13cb   :  { %v2023_v7 = vadd.f32 %v3883_v32, %v2022_v25 }
0x13ea   :  { %v2025_v59 = vpop.f32.mrf.mxu2 }
0x13eb   :  { %v2026_v33 = vadd.f32 %v3883_v32, %v2025_v59 }
0x13ed   :  { %v2029_v14 = vadd.f32 %v2026_v33, %v3907_v24 }
0x13ef   :  { %v2525_v50 = vmul.f32 -1.442695, %v2029_v14 }
0x141b   :  { %v1856_v40 = vpop.xlane.xlu0 %1855 }
0x141c   :  { %vm1857_vm10 = vcmp.eq.f32.partialorder %v1852_v38, %v1856_v40 }
0x141d   :  { %v1858_v2 = vsel %vm1857_vm10, %v2873_v5, 8.0 }
0x141e   :  { %v1859_v21 = vsel %vm84_vm0, %v1858_v2, inf }
0x141f   :  { %1860 = vmin.xlane.f32.xlu2 %v1859_v21 }
0x1423   :  { %v2144_v16 = vpop.xlane.xlu0 %2143 }
0x1424   :  { %vm2145_vm11 = vcmp.eq.f32.partialorder %v2140_v36, %v2144_v16 }
0x1425   :  { %v2146_v17 = vsel %vm2145_vm11, %v2873_v5, 8.0 }
0x1426   :  { %v2147_v49 = vsel %vm84_vm0, %v2146_v17, inf }
0x1427   :  { %2148 = vmin.xlane.f32.xlu0 %v2147_v49 }
0x1437   :  { %1988 = vperm.xlu2 %2548, %v2518_v53  }
0x143f   :  { %2072 = vrot.lane.b32.xlu2 %v2026_v33, %s2778_s28 }
0x1492   :  { %v1861_v58 = vpop.xlane.xlu2 %1860 }
0x1493   :  { %vm1862_vm12 = vcmp.eq.f32.partialorder %v2873_v5, %v1861_v58 }
0x1494   :  { %v3888_v60 = vsel %vm1862_vm12, 1.0, %v1853_v41  ;;  %v1863_v44 = vsel %vm1862_vm12, -1e+30, %v1852_v38 }
0x1495   :  { %v1865_v39 = vsel %vm84_vm0, %v1863_v44, -inf }
0x1496   :  { %1866 = vmax.xlane.f32.xlu0 %v1865_v39 }
0x149a   :  { %v2149_v62 = vpop.xlane.xlu0 %2148  ;;  %v1989_v13 = vpop.permute.xlu2 %1988 }
0x149b   :  { %vm2150_vm13 = vcmp.eq.f32.partialorder %v2873_v5, %v2149_v62  ;;  %v1997_v37 = vmul.f32 %v1996_v10, %v1989_v13 }
0x149c   :  { %v3892_v28 = vsel %vm2150_vm13, 1.0, %v2141_v31  ;;  %v2151_v0 = vsel %vm2150_vm13, -1e+30, %v2140_v36 }
0x149d   :  { %v2153_v23 = vsel %vm84_vm0, %v2151_v0, -inf  ;;  %v3903_v55 = vadd.f32 %v3900_v8, %v1997_v37 }
0x149e   :  { %2154 = vmax.xlane.f32.xlu0 %v2153_v23 }
0x149f   :  { %v2028_v47 = vadd.f32 %v2023_v7, %v3903_v55 }
0x14a1   :  { %v2524_v52 = vmul.f32 -1.442695, %v2028_v47 }
0x14a2   :  { %v2073_v13 = vpop.permute.xlu2 %2072 }
0x14a3   :  { %2647 = vpow2.f32 %v2524_v52 }
0x14a4   :  { %2649 = vpow2.f32 %v2525_v50 }
0x14a9   :  { %v2648_v45 = vpop.eup %2647 }
0x14aa   :  { %v2036_v54 = vadd.f32 1.0, %v2648_v45  ;;  %v2650_v4 = vpop.eup %2649  ;;  %v2250_v45 = vld [vmem:[%s4043_s0 + $0x7] sm:$0x1] }
0x14ab   :  { %v2037_v38 = vadd.f32 1.0, %v2650_v4  ;;  %2530 = vmatmul.msk.f32.vlgmr.msrb.gmra.mxu0 %vm217_vm7, %v2250_v45  ;;  %v2211_v45 = vld [vmem:[#allocation6 + $0x38] sm:$0xff] }
0x14ac   :  { %2651 = vrcp.f32 %v2036_v54  ;;  %v2049_v49 = vand.u32 2147483648, %v2036_v54  ;;  %vm2043_vm2 = vweird.f32 %v2036_v54  ;;  %v2047_v25 = vand.u32 2147483647, %v2036_v54 }
0x14ad   :  { %2653 = vrcp.f32 %v2037_v38  ;;  %vm2058_vm9 = vweird.f32 %v2037_v38  ;;  %v2062_v23 = vand.u32 2147483647, %v2037_v38 }
0x14ae   :  { %v2050_v33 = vor.u32 1.1754944e-38, %v2049_v49  ;;  %vm2048_vm4 = vcmp.eq.f32.partialorder %v2047_v25, 8.507059e+37 }
0x14af   :  { %vm2063_vm11 = vcmp.eq.f32.partialorder %v2062_v23, 8.507059e+37 }
0x14b2   :  { %2070 = vrot.lane.b32.xlu0 %v2023_v7, %s2778_s28  ;;  %v2652_v20 = vpop.eup %2651 }
0x14b3   :  { %v2039_v19 = vmul.f32 %v2652_v20, %v2036_v54  ;;  %v2654_v40 = vpop.eup %2653  ;;  %vm2044_vm6 = vweird.f32 %v2652_v20 }
0x14b4   :  { %v2054_v2 = vmul.f32 %v2654_v40, %v2037_v38  ;;  %vm2045_vm3 = vmor %vm2043_vm2, %vm2044_vm6  ;;  %vm2059_vm8 = vweird.f32 %v2654_v40 }
0x14b5   :  { %v2040_v57 = vsub.f32 1.0, %v2039_v19  ;;  %vm2060_vm10 = vmor %vm2058_vm9, %vm2059_vm8 }
0x14b6   :  { %v2055_v16 = vsub.f32 1.0, %v2054_v2 }
0x14b7   :  { %v2041_v21 = vmul.f32 %v2652_v20, %v2040_v57 }
0x14b8   :  { %v2056_v53 = vmul.f32 %v2654_v40, %v2055_v16 }
0x14b9   :  { %v2042_v17 = vadd.f32 %v2652_v20, %v2041_v21 }
0x14ba   :  { %v2057_v39 = vadd.f32 %v2654_v40, %v2056_v53 }
0x14bb   :  { %v2046_v59 = vsel %vm2045_vm3, %v2652_v20, %v2042_v17  ;;  %v2527_v17 = vld [vmem:[%s4046_s3 + $0x70] sm:$0xff] }
0x14bc   :  { %v3914_v58 = vsel %vm2048_vm4, %v2050_v33, %v2046_v59  ;;  %v2061_v7 = vsel %vm2060_vm10, %v2654_v40, %v2057_v39  ;;  %v2528_v59 = vld [vmem:[%s4046_s3 + $0x78] sm:$0xff]  ;;  %v2218_v39 = vld [vmem:[#allocation6 + $0x70] sm:$0xff]  ;;  %vm207_vm10 = vcmask 253952  }
0x14bd   :  { %v2090_v25 = vsub.f32 1.0, %v3914_v58 }
0x1509   :  { %v1867_v15 = vpop.xlane.xlu0 %1866 }
0x150a   :  { %vm1868_vm15 = vcmp.eq.f32.partialorder %v1863_v44, %v1867_v15 }
0x150b   :  { %v1869_v34 = vsel %vm1868_vm15, %v2873_v5, 8.0 }
0x150c   :  { %v1870_v41 = vsel %vm84_vm0, %v1869_v34, inf }
0x150d   :  { %1871 = vmin.xlane.f32.xlu2 %v1870_v41 }
0x1511   :  { %v2155_v12 = vpop.xlane.xlu0 %2154 }
0x1512   :  { %vm2156_vm1 = vcmp.eq.f32.partialorder %v2151_v0, %v2155_v12  ;;  %v2064_v0 = vand.u32 2147483648, %v2037_v38 }
0x1513   :  { %v2157_v31 = vsel %vm2156_vm1, %v2873_v5, 8.0 }
0x1514   :  { %v2158_v36 = vsel %vm84_vm0, %v2157_v31, inf  ;;  %v2065_v11 = vor.u32 1.1754944e-38, %v2064_v0 }
0x1515   :  { %2159 = vmin.xlane.f32.xlu0 %v2158_v36 }
0x1516   :  { %v2066_v10 = vsel %vm2063_vm11, %v2065_v11, %v2061_v7  ;;  %vm516_vm11 = vcmp.eq.s32.totalorder %v2862_v1, 1 }
0x1517   :  { %v2077_v37 = vmul.f32 %v2073_v13, %v2066_v10  ;;  %v2091_v36 = vsub.f32 1.0, %v2066_v10  ;;  %v2103_v57 = vmul.f32 %v2066_v10, %v3812_v63  ;;  %v2102_v63 = vmul.f32 %v3914_v58, %v3807_v3 }
0x1524   :  { %v2071_v44 = vpop.permute.xlu0 %2070 }
0x1525   :  { %v2076_v62 = vmul.f32 %v2071_v44, %v3914_v58  ;;  %v2219_v44 = vld [vmem:[#allocation6 + $0x78] sm:$0xff] }
0x1526   :  { %2220 = vmatpush.msrb.mxu2 %v2219_v44 }
0x1527   :  { %2080 = vrot.lane.b32.xlu1 %v2076_v62, %s2778_s28 }
0x1528   :  { %2221 = vmatpush.msrb.mxu2 %v2218_v39 }
0x152f   :  { %2082 = vrot.lane.b32.xlu1 %v2077_v37, %s2778_s28 }
0x1580   :  { %v1872_v35 = vpop.xlane.xlu2 %1871 }
0x1581   :  { %vm1873_vm12 = vcmp.eq.f32.partialorder %v2873_v5, %v1872_v35 }
0x1582   :  { %v1874_v47 = vsel %vm1873_vm12, 1.0, %v3888_v60  ;;  %vm211_vm12 = vcmp.eq.s32.totalorder %v2862_v1, 0 }
0x1583   :  { %vm1875_vm13 = vcmp.gt.f32.partialorder %v1874_v47, 0.0 }
0x1584   :  { %v1876_v61 = vsel %vm1875_vm13, %v3754_v48, -1e+30  ;;  %vm804_vm13 = vcmp.eq.s32.totalorder %v2862_v1, 2 }
0x1585   :  { %v1877_v52 = vsel %vm84_vm0, %v1876_v61, -inf }
0x1586   :  { %1878 = vmax.xlane.f32.xlu1 %v1877_v52 }
0x1588   :  { %v2160_v14 = vpop.xlane.xlu0 %2159 }
0x1589   :  { %vm2161_vm15 = vcmp.eq.f32.partialorder %v2873_v5, %v2160_v14 }
0x158a   :  { %v2162_v50 = vsel %vm2161_vm15, 1.0, %v3892_v28  ;;  %vm1092_vm15 = vcmp.eq.s32.totalorder %v2862_v1, 3 }
0x158b   :  { %vm2163_vm1 = vcmp.gt.f32.partialorder %v2162_v50, 0.0 }
0x158c   :  { %v2164_v54 = vsel %vm2163_vm1, %v3766_v27, -1e+30  ;;  %vm1380_vm1 = vcmp.eq.s32.totalorder %v2862_v1, 4 }
0x158d   :  { %v2165_v60 = vsel %vm84_vm0, %v2164_v54, -inf }
0x158e   :  { %2166 = vmax.xlane.f32.xlu2 %v2165_v60 }
0x1599   :  { %v2081_v48 = vpop.permute.xlu1 %2080 }
0x159a   :  { %v2086_v4 = vadd.f32 %v2081_v48, %v3903_v55 }
0x159c   :  { %2655 = vtanh.f32 %v2086_v4 }
0x15a1   :  { %v2083_v15 = vpop.permute.xlu1 %2082 }
0x15a2   :  { %v2656_v5 = vpop.eup %2655  ;;  %v2087_v28 = vadd.f32 %v2083_v15, %v3907_v24 }
0x15a3   :  { %2094 = vrot.lane.b32.xlu0 %v2656_v5, %s2779_s17 }
0x15a4   :  { %2657 = vtanh.f32 %v2087_v28  ;;  %v3981_v28 = vpop.f32.mrf.mxu0 }
0x15aa   :  { %v2658_v34 = vpop.eup %2657 }
0x15ab   :  { %2096 = vrot.lane.b32.xlu2 %v2658_v34, %s2779_s17 }
0x15f9   :  { %v1879_v27 = vpop.xlane.xlu1 %1878 }
0x15fa   :  { %v1880_v38 = vsub.f32 %v1876_v61, %v1879_v27  ;;  %v2271_v27 = vpop.f32.mrf.mxu0 }
0x15fc   :  { %v1881_v41 = vmul.f32 1.442695, %v1880_v38 }
0x15fe   :  { %2659 = vpow2.f32 %v1881_v41  ;;  %v2284_v41 = vperm.slane %v2271_v27, 0 }
0x1601   :  { %v2167_v20 = vpop.xlane.xlu2 %2166 }
0x1602   :  { %v2168_v12 = vsub.f32 %v2164_v54, %v2167_v20  ;;  %v2210_v54 = vld [vmem:[#allocation6 + $0x30] sm:$0xff] }
0x1604   :  { %v2660_v19 = vpop.eup %2659  ;;  %v2169_v31 = vmul.f32 1.442695, %v2168_v12 }
0x1605   :  { %v1883_v55 = vsel %vm84_vm0, %v2660_v19, 0.0 }
0x1606   :  { %2661 = vpow2.f32 %v2169_v31  ;;  %1884 = vadd.xlane.f32.xlu1 %v1883_v55 }
0x1609   :  { %v2097_v24 = vpop.permute.xlu2 %2096 }
0x160a   :  { %v2101_v40 = vmul.f32 %v2097_v24, %v2091_v36 }
0x160c   :  { %v2662_v2 = vpop.eup %2661  ;;  %v3937_v21 = vadd.f32 %v2103_v57, %v2101_v40 }
0x160d   :  { %v2171_v16 = vsel %vm84_vm0, %v2662_v2, 0.0 }
0x160e   :  { %2172 = vadd.xlane.f32.xlu0 %v2171_v16  ;;  %2110 = vrot.lane.b32.xlu2 %v3937_v21, %s2779_s17 }
0x1615   :  { %v2095_v49 = vpop.permute.xlu0 %2094 }
0x1616   :  { %2276 = vperm.xlu2 %2548, %v2527_v17   ;;  %v2100_v53 = vmul.f32 %v2095_v49, %v2090_v25 }
0x1618   :  { %v3951_v33 = vadd.f32 %v2102_v63, %v2100_v53 }
0x161e   :  { %2281 = vperm.xlu2 %2548, %v2528_v59  }
0x161f   :  { %2108 = vrot.lane.b32.xlu1 %v3951_v33, %s2779_s17 }
0x1668   :  { %v2111_v62 = vpop.permute.xlu2 %2110 }
0x1669   :  { %2116 = vst.msk [vmem:[#allocation6 + $0x68] sm:$0xff] %vm46_vm5, %v2111_v62 }
0x1670   :  { %v2217_v0 = vld [vmem:[#allocation6 + $0x68] sm:$0xff]  ;;  %v2277_v34 = vpop.permute.xlu2 %2276 }
0x1671   :  { %2222 = vmatpush.msrb.mxu2 %v2217_v0  ;;  %v2285_v55 = vmul.f32 %v2284_v41, %v2277_v34 }
0x1678   :  { %v2282_v38 = vpop.permute.xlu2 %2281 }
0x1679   :  { %v1885_v3 = vpop.xlane.xlu1 %1884  ;;  %v2286_v20 = vmul.f32 %v2284_v41, %v2282_v38 }
0x167a   :  { %2663 = vrcp.f32 %v1885_v3 }
0x167b   :  { %v3984_v12 = vadd.f32 %v3900_v8, %v2286_v20 }
0x1680   :  { %v2664_v58 = vpop.eup %2663 }
0x1681   :  { %v1887_v23 = vmul.f32 %v2664_v58, %v1885_v3  ;;  %v2173_v7 = vpop.xlane.xlu0 %2172 }
0x1682   :  { %2665 = vrcp.f32 %v2173_v7 }
0x1683   :  { %v1888_v11 = vsub.f32 2.0, %v1887_v23 }
0x1685   :  { %v1889_v13 = vmul.f32 %v2664_v58, %v1888_v11 }
0x1687   :  { %v1890_v10 = vmul.f32 %v2660_v19, %v1889_v13 }
0x1688   :  { %v2666_v37 = vpop.eup %2665 }
0x1689   :  { %v2175_v35 = vmul.f32 %v2666_v37, %v2173_v7  ;;  %2517 = vmatmul.msk.f32.vlgmr.msra.gmra.mxu3 %vm144_vm14, %v1890_v10 }
0x168b   :  { %v2176_v47 = vsub.f32 2.0, %v2175_v35 }
0x168d   :  { %v2177_v61 = vmul.f32 %v2666_v37, %v2176_v47 }
0x168f   :  { %v2178_v52 = vmul.f32 %v2662_v2, %v2177_v61 }
0x1691   :  { %v2109_v14 = vpop.permute.xlu1 %2108  ;;  %2526 = vmatmul.msk.f32.vlgmr.msra.gmra.mxu1 %vm144_vm14, %v2178_v52 }
0x1692   :  { %2115 = vst.msk [vmem:[#allocation6 + $0x60] sm:$0xff] %vm46_vm5, %v2109_v14 }
0x1699   :  { %2531 = vmatmul.msk.f32.vlgmr.msrb.gmra.mxu1 %vm46_vm5, %v2109_v14  ;;  %v2216_v50 = vld [vmem:[#allocation6 + $0x60] sm:$0xff] }
0x169a   :  { %2223 = vmatpush.msrb.mxu2 %v2216_v50  ;;  %v77_v50 = vld [vmem:[%s4054_s11] sm:$0x1] }
0x169b   :  { %v800_v27 = vmul.f32 %v3628_v46, %v77_v50 }
0x169c   :  { %2224 = vmatpush.msrb.mxu2 %v3839_v29  ;;  %v2205_v29 = vld [vmem:[#allocation6 + $0x8] sm:$0xff] }
0x169d   :  { %v801_v38 = vsel %vm207_vm10, %v800_v27, 0.0 }
0x169e   :  { %2225 = vmatpush.msrb.mxu2 %v3842_v30  ;;  %v2204_v30 = vld [vmem:[#allocation6] sm:$0xff] }
0x16a0   :  { %2226 = vmatpush.msrb.mxu2 %v3689_v18  ;;  %v3969_v18 = vpop.f32.mrf.mxu3 }
0x16a1   :  { %2532 = vmatmul.msk.f32.gmra.mxu1 %vm46_vm5, %v2111_v62 }
0x16a2   :  { %2227 = vmatpush.msrb.mxu2 %v3692_v51  ;;  %v1914_v51 = vld [vmem:[%s4045_s2 + $0x6] sm:$0x1] }
0x16a4   :  { %2228 = vmatpush.msrb.mxu2 %v2211_v45  ;;  %v206_v45 = vmul.f32 %v3297_v42, %v77_v50 }
0x16a6   :  { %2229 = vmatpush.msrb.mxu2 %v2210_v54  ;;  %v208_v54 = vsel %vm207_vm10, %v206_v45, 0.0 }
0x16a8   :  { %2230 = vmatpush.msrb.mxu2 %v3849_v22  ;;  %v2202_v22 = vld [vmem:[%s4045_s2 + $0x7] sm:$0x1] }
0x16aa   :  { %2231 = vmatpush.msrb.mxu2 %v3852_v6 }
0x16ac   :  { %2232 = vmatpush.msrb.mxu2 %v3699_v56 }
0x16ae   :  { %2233 = vmatpush.msrb.mxu2 %v3702_v9 }
0x16b0   :  { %2234 = vmatpush.msrb.mxu2 %v2205_v29  ;;  %v1088_v29 = vmul.f32 %v3748_v26, %v77_v50 }
0x16b2   :  { %2235 = vmatpush.msrb.mxu2 %v2204_v30  ;;  %v1089_v30 = vsel %vm207_vm10, %v1088_v29, 0.0 }
0x170c   :  { %v1911_v60 = vpop.f32.mrf.mxu3 }
0x170d   :  { %v1915_v6 = vmul.f32 %v1914_v51, %v1911_v60  ;;  %v1376_v51 = vmul.f32 %v3969_v18, %v77_v50  ;;  %v512_v60 = vmul.f32 %v3515_v43, %v77_v50 }
0x170e   :  { %v2199_v48 = vpop.f32.mrf.mxu1 }
0x170f   :  { %v2203_v56 = vmul.f32 %v2202_v22, %v2199_v48  ;;  %1948 = vmatmul.f32.vlgmr.msrb.gmra.mxu3 %v1915_v6  ;;  %v1377_v22 = vsel %vm207_vm10, %v1376_v51, 0.0  ;;  %v513_v48 = vsel %vm207_vm10, %v512_v60, 0.0 }
0x1711   :  { %2236 = vmatmul.f32.vlgmr.msrb.gmra.mxu2 %v2203_v56 }
0x1716   :  { %v2310_v9 = vpop.f32.mrf.mxu1 }
0x1717   :  { %v2311_v4 = vadd.f32 %v3883_v32, %v2310_v9 }
0x1719   :  { %2358 = vrot.lane.b32.xlu1 %v2311_v4, %s2778_s28 }
0x171e   :  { %v2313_v15 = vpop.f32.mrf.mxu1 }
0x171f   :  { %v2314_v5 = vadd.f32 %v3883_v32, %v2313_v15  ;;  %v3988_v32 = vadd.f32 %v3900_v8, %v2285_v55  ;;  %v1664_v15 = vmul.f32 %v3981_v28, %v77_v50 }
0x1721   :  { %2360 = vrot.lane.b32.xlu2 %v2314_v5, %s2778_s28  ;;  %v2317_v19 = vadd.f32 %v2314_v5, %v3984_v12  ;;  %v2316_v24 = vadd.f32 %v2311_v4, %v3988_v32  ;;  %v1665_v34 = vsel %vm207_vm10, %v1664_v15, 0.0 }
0x1723   :  { %v2534_v31 = vmul.f32 -1.442695, %v2317_v19  ;;  %v2533_v40 = vmul.f32 -1.442695, %v2316_v24 }
0x1725   :  { %2667 = vpow2.f32 %v2534_v31 }
0x172b   :  { %v2668_v36 = vpop.eup %2667 }
0x172c   :  { %v2325_v57 = vadd.f32 1.0, %v2668_v36 }
0x172e   :  { %2669 = vrcp.f32 %v2325_v57  ;;  %v2352_v44 = vand.u32 2147483648, %v2325_v57  ;;  %vm2346_vm14 = vweird.f32 %v2325_v57  ;;  %v2350_v8 = vand.u32 2147483647, %v2325_v57 }
0x172f   :  { %2671 = vpow2.f32 %v2533_v40 }
0x1730   :  { %v2353_v0 = vor.u32 1.1754944e-38, %v2352_v44  ;;  %vm2351_vm2 = vcmp.eq.f32.partialorder %v2350_v8, 8.507059e+37 }
0x1734   :  { %v2670_v2 = vpop.eup %2669 }
0x1735   :  { %v2672_v16 = vpop.eup %2671  ;;  %v2342_v17 = vmul.f32 %v2670_v2, %v2325_v57  ;;  %vm2347_vm7 = vweird.f32 %v2670_v2 }
0x1736   :  { %v2324_v49 = vadd.f32 1.0, %v2672_v16  ;;  %vm2348_vm6 = vmor %vm2346_vm14, %vm2347_vm7  ;;  %vm1668_vm7 = vcmp.eq.s32.totalorder %v2862_v1, 5  ;;  %vm1956_vm14 = vcmp.eq.s32.totalorder %v2862_v1, 6 }
0x1737   :  { %v2343_v25 = vsub.f32 1.0, %v2342_v17 }
0x1738   :  { %2673 = vrcp.f32 %v2324_v49  ;;  %v2337_v10 = vand.u32 2147483648, %v2324_v49  ;;  %vm2331_vm4 = vweird.f32 %v2324_v49  ;;  %v2335_v37 = vand.u32 2147483647, %v2324_v49 }
0x1739   :  { %v2344_v53 = vmul.f32 %v2670_v2, %v2343_v25 }
0x173a   :  { %v2338_v47 = vor.u32 1.1754944e-38, %v2337_v10  ;;  %vm2336_vm9 = vcmp.eq.f32.partialorder %v2335_v37, 8.507059e+37  ;;  %v2407_v10 = vld [vmem:[%s4048_s5] sm:$0x1]  ;;  %s2783_s5 = smov [#allocation4]  }
0x173b   :  { %v2345_v63 = vadd.f32 %v2670_v2, %v2344_v53  ;;  %s2425_s9 = sshll.u32 %s2783_s5, 4  ;;  %s2426_s9 = int_to_ptr.vmem [resolvable:$true] %s2425_s9 }
0x173d   :  { %v2349_v39 = vsel %vm2348_vm6, %v2670_v2, %v2345_v63  ;;  %vm2244_vm6 = vcmp.eq.s32.totalorder %v2862_v1, 7 }
0x173e   :  { %v2674_v59 = vpop.eup %2673  ;;  %v2354_v58 = vsel %vm2351_vm2, %v2353_v0, %v2349_v39 }
0x173f   :  { %v2327_v62 = vmul.f32 %v2674_v59, %v2324_v49  ;;  %vm2332_vm3 = vweird.f32 %v2674_v59  ;;  %v2379_v31 = vsub.f32 1.0, %v2354_v58  ;;  %v2391_v28 = vmul.f32 %v2354_v58, %v3937_v21 }
0x1740   :  { %vm2333_vm8 = vmor %vm2331_vm4, %vm2332_vm3 }
0x1741   :  { %v2328_v7 = vsub.f32 1.0, %v2327_v62 }
0x1743   :  { %v2329_v11 = vmul.f32 %v2674_v59, %v2328_v7 }
0x1745   :  { %v2330_v13 = vadd.f32 %v2674_v59, %v2329_v11 }
0x1747   :  { %v2334_v35 = vsel %vm2333_vm8, %v2674_v59, %v2330_v13 }
0x1748   :  { %v2339_v52 = vsel %vm2336_vm9, %v2338_v47, %v2334_v35 }
0x1749   :  { %v2378_v24 = vsub.f32 1.0, %v2339_v52  ;;  %v2390_v46 = vmul.f32 %v2339_v52, %v3951_v33 }
0x177b   :  { %v2361_v3 = vpop.permute.xlu2 %2360 }
0x177c   :  { %v2365_v23 = vmul.f32 %v2361_v3, %v2354_v58 }
0x177e   :  { %2370 = vrot.lane.b32.xlu2 %v2365_v23, %s2778_s28 }
0x178b   :  { %v2359_v61 = vpop.permute.xlu1 %2358 }
0x178c   :  { %v2364_v14 = vmul.f32 %v2359_v61, %v2339_v52 }
0x178e   :  { %2368 = vrot.lane.b32.xlu1 %v2364_v14, %s2778_s28 }
0x1792   :  { %v1949_v6 = vpop.f32.mrf.mxu3 }
0x1793   :  { %v1952_v42 = vmul.f32 %v1949_v6, %v77_v50 }
0x1794   :  { %v2237_v41 = vpop.f32.mrf.mxu2 }
0x1795   :  { %v1953_v56 = vsel %vm207_vm10, %v1952_v42, 0.0  ;;  %v2240_v20 = vmul.f32 %v2237_v41, %v77_v50 }
0x17a7   :  { %209 = vadd.xlane.f32.xlu2 %v208_v54 }
0x17af   :  { %1090 = vadd.xlane.f32.xlu2 %v1089_v30 }
0x17b7   :  { %1378 = vadd.xlane.f32.xlu2 %v1377_v22 }
0x17b8   :  { %514 = vadd.xlane.f32.xlu1 %v513_v48 }
0x17bf   :  { %1954 = vadd.xlane.f32.xlu2 %v1953_v56 }
0x17d8   :  { %v2371_v9 = vpop.permute.xlu2 %2370 }
0x17d9   :  { %v2375_v26 = vadd.f32 %v2371_v9, %v3984_v12  ;;  %v2241_v12 = vsel %vm207_vm10, %v2240_v20, 0.0 }
0x17db   :  { %2675 = vtanh.f32 %v2375_v26 }
0x17e1   :  { %v2676_v4 = vpop.eup %2675 }
0x17e2   :  { %2384 = vrot.lane.b32.xlu1 %v2676_v4, %s2779_s17 }
0x1800   :  { %v2369_v18 = vpop.permute.xlu1 %2368 }
0x1801   :  { %v2374_v43 = vadd.f32 %v2369_v18, %v3988_v32 }
0x1803   :  { %2677 = vtanh.f32 %v2374_v43 }
0x1809   :  { %v2678_v5 = vpop.eup %2677 }
0x180a   :  { %2382 = vrot.lane.b32.xlu0 %v2678_v5, %s2779_s17 }
0x180c   :  { %1666 = vadd.xlane.f32.xlu1 %v1665_v34 }
0x181a   :  { %v210_v16 = vpop.xlane.xlu2 %209 }
0x181b   :  { %v212_v25 = vsel %vm211_vm12, %v210_v16, 0.0 }
0x1822   :  { %v1091_v17 = vpop.xlane.xlu2 %1090 }
0x1823   :  { %v1093_v44 = vsel %vm1092_vm15, %v1091_v17, 0.0 }
0x182a   :  { %v1379_v49 = vpop.xlane.xlu2 %1378 }
0x182b   :  { %v515_v19 = vpop.xlane.xlu1 %514  ;;  %v1381_v0 = vsel %vm1380_vm1, %v1379_v49, 0.0 }
0x182c   :  { %v517_v21 = vsel %vm516_vm11, %v515_v19, 0.0 }
0x182d   :  { %v518_v53 = vadd.f32 %v517_v21, %v212_v25 }
0x1832   :  { %v1955_v8 = vpop.xlane.xlu2 %1954 }
0x1833   :  { %v1957_v11 = vsel %vm1956_vm14, %v1955_v8, 0.0 }
0x1834   :  { %802 = vadd.xlane.f32.xlu0 %v801_v38 }
0x183c   :  { %2242 = vadd.xlane.f32.xlu0 %v2241_v12 }
0x1854   :  { %v2385_v55 = vpop.permute.xlu1 %2384 }
0x1855   :  { %v2389_v36 = vmul.f32 %v2385_v55, %v2379_v31 }
0x1857   :  { %v2393_v32 = vadd.f32 %v2391_v28, %v2389_v36 }
0x1859   :  { %2398 = vrot.lane.b32.xlu2 %v2393_v32, %s2779_s17 }
0x187c   :  { %v2383_v57 = vpop.permute.xlu0 %2382 }
0x187d   :  { %v2388_v40 = vmul.f32 %v2383_v57, %v2378_v24 }
0x187f   :  { %v2392_v2 = vadd.f32 %v2390_v46, %v2388_v40  ;;  %v1667_v39 = vpop.xlane.xlu1 %1666 }
0x1880   :  { %v1669_v58 = vsel %vm1668_vm7, %v1667_v39, 0.0 }
0x1881   :  { %2396 = vrot.lane.b32.xlu1 %v2392_v2, %s2779_s17  ;;  %s2782_s17 = smov [#allocation2]  }
0x1882   :  { %s2415_s1 = sshll.u32 %s2782_s17, 4  ;;  %s2416_s1 = int_to_ptr.vmem [resolvable:$true] %s2415_s1 }
0x18a7   :  { %v803_v63 = vpop.xlane.xlu0 %802 }
0x18a8   :  { %v805_v33 = vsel %vm804_vm13, %v803_v63, 0.0 }
0x18a9   :  { %v806_v59 = vadd.f32 %v805_v33, %v518_v53 }
0x18ab   :  { %v1094_v62 = vadd.f32 %v1093_v44, %v806_v59 }
0x18ad   :  { %v1382_v3 = vadd.f32 %v1381_v0, %v1094_v62 }
0x18af   :  { %v2243_v23 = vpop.xlane.xlu0 %2242  ;;  %v1670_v7 = vadd.f32 %v1669_v58, %v1382_v3 }
0x18b0   :  { %v2245_v37 = vsel %vm2244_vm6, %v2243_v23, 0.0 }
0x18b1   :  { %v1958_v13 = vadd.f32 %v1957_v11, %v1670_v7 }
0x18b3   :  { %v2246_v35 = vadd.f32 %v2245_v37, %v1958_v13  ;;  %v2399_v47 = vpop.permute.xlu2 %2398 }
0x18b4   :  { %2404 = vst.msk [vmem:[#allocation6 + $0x78] sm:$0xff] %vm46_vm5, %v2399_v47 }
0x18b5   :  { %v2408_v1 = vadd.f32 %v2407_v10, %v2246_v35  ;;  %2406 = vst.msk [vmem:[#allocation4 + $0x8] sm:$0xff] %vm46_vm5, %v2399_v47 }
0x18b7   :  { %2409 = vst.msk [vmem:[#allocation2] sm:$0x1] %vm84_vm0, %v2408_v1 }
0x18b8   :  { %2420 = dma.vmem_to_hbm [thread:$0]  %s2416_s1, 16, %s2418_s16, [#allocation3]  }
0x18f3   :  { %v2397_v61 = vpop.permute.xlu1 %2396 }
0x18f4   :  { %2403 = vst.msk [vmem:[#allocation6 + $0x70] sm:$0xff] %vm46_vm5, %v2397_v61 }
0x18f5   :  { %2405 = vst.msk [vmem:[#allocation4] sm:$0xff] %vm46_vm5, %v2397_v61 }
0x18f6   :  { %2433 = dma.vmem_to_hbm [thread:$0]  %s2426_s9, 256, %s2428_s20, [#allocation5], %s2785_s8, %s2785_s8, %s2786_s6  }
0x18f7   :  { %2446 = dma.vmem_to_hbm [thread:$0]  %s2439_s12, 2048, %s2441_s22, [#allocation5], %s2785_s8, %s2785_s8, %s2786_s6  }
0x18f8   :  { %2772 = dma.done.wait [#allocation3], 16  }
0x18f9   :  { %2773 = vsyncadd [#allocation3], 4294967280 }
0x18fa   :  { %2774 = dma.done.wait [#allocation5], 2304  }
0x18fb   :  { %2775 = vsyncadd [#allocation5], 4294964992 }
0x18fc   :  { %2459 = vsyncpa [#allocation3], 1 }
0x18fd   :  { %2460 = vsyncpa [#allocation5], 1 }

</bundles_post_ra>
